<compile_context>
chip_gen: v7x
topology: tpu7x:2x2x1
jax: 0.10.0
libtpu: 0.0.40
codegen_flags: <defaults>
</compile_context>

<pallas_src>
import functools

import jax
import jax.numpy as jnp
from jax.experimental import pallas as pl
from jax.experimental.pallas import tpu as pltpu


def _hybrid_kernel(taps_ref, wslab_ref, cslab_ref, out_ref, gx1_ref,
                   *, B_pad, T, H1, HP, unroll, carry_bf16):
    f32 = jnp.float32
    bf16 = jnp.bfloat16
    act = bf16 if carry_bf16 else f32
    n = T * B_pad

    # ---- Conv1d(1->64,k=3,pad=1) + ReLU + MaxPool1d(2): one MXU matmul ----
    # taps_ref rows [0, n) are even sequence positions, [n, 2n) are odd ones
    # (row index = t*B_pad + b); K is padded 3 -> 8.
    wc = cslab_ref[8:16, 0:64]                     # (8, 64) conv taps, rows 3..7 zero
    bc = cslab_ref[2:3, 0:64]                      # (1, 64)
    y = jnp.dot(taps_ref[...], wc, preferred_element_type=f32) + bc
    y = jnp.maximum(y, 0.0)                        # ReLU
    pooled = jnp.maximum(y[:n], y[n:])             # fused MaxPool1d(2): (n, 64)

    # ---- Hoisted LSTM1 input projection: one big-M matmul cached in VMEM ----
    wih1 = wslab_ref[0:64, :]                      # (64, 512)  bf16
    b1 = cslab_ref[0:1, :]                         # (1, 512)
    gx1_ref[...] = jnp.dot(pooled.astype(bf16), wih1,
                           preferred_element_type=f32) + b1

    whh1 = wslab_ref[64:192, :]                    # (128, 512) bf16
    wih2 = wslab_ref[192:320, :]                   # (128, 512) bf16 (gate-padded)
    whh2 = wslab_ref[320:448, :]                   # (128, 512) bf16 (rows 64+ zero)
    b2 = cslab_ref[1:2, :]                         # (1, 512)   (gate-padded)

    def step(t, carry):
        h1, c1, h2, c2 = carry
        row = pl.multiple_of(t * B_pad, B_pad)     # B_pad % 8 == 0 -> tile-aligned
        # --- LSTM1 (gate column order i | f | o | g) ---
        g1 = (gx1_ref[pl.ds(row, B_pad), :]
              + jnp.dot(h1.astype(bf16), whh1, preferred_element_type=f32))
        s1 = jax.nn.sigmoid(g1[:, :3 * H1])        # i | f | o  (one EUP pass)
        gg1 = jnp.tanh(g1[:, 3 * H1:])             # g
        c1 = s1[:, H1:2 * H1] * c1 + s1[:, :H1] * gg1
        h1 = (s1[:, 2 * H1:3 * H1] * jnp.tanh(c1)).astype(act)

        # --- LSTM2: two accumulating dots (no per-step lane concat) ---
        g2 = (jnp.dot(h1.astype(bf16), wih2, preferred_element_type=f32)
              + jnp.dot(h2.astype(bf16), whh2, preferred_element_type=f32)
              + b2)
        s2 = jax.nn.sigmoid(g2[:, :3 * HP])
        gg2 = jnp.tanh(g2[:, 3 * HP:])
        c2 = s2[:, HP:2 * HP] * c2 + s2[:, :HP] * gg2
        h2 = (s2[:, 2 * HP:3 * HP] * jnp.tanh(c2)).astype(act)
        return h1, c1, h2, c2

    init = (jnp.zeros((B_pad, H1), act), jnp.zeros((B_pad, H1), f32),
            jnp.zeros((B_pad, HP), act), jnp.zeros((B_pad, HP), f32))
    _, _, h2, _ = jax.lax.fori_loop(0, T, step, init, unroll=unroll)

    # ---- FC head (runs once, f32): FC(64->32) -> ReLU -> FC(32->1) -> sigmoid ----
    hf = h2.astype(f32)                            # (B_pad, 128); lanes 64+ are zero
    wfc1 = cslab_ref[16:144, 0:128]                # valid block [0:64, 0:32]
    bfc1 = cslab_ref[3:4, 0:128]
    wfc2 = cslab_ref[16:144, 128:256]              # valid block [0:32, 0:1]
    bfc2 = cslab_ref[4:5, 0:128]
    z = jnp.maximum(jnp.dot(hf, wfc1, preferred_element_type=f32) + bfc1, 0.0)
    out = jax.nn.sigmoid(jnp.dot(z, wfc2, preferred_element_type=f32) + bfc2)
    out_ref[...] = out.astype(out_ref.dtype)       # (B_pad, 128); column 0 is the result


def _reorder_gates(w, H):
    # PyTorch packs LSTM gate rows as (i, f, g, o); regroup to (i, f, o, g) so
    # one sigmoid covers the first 3 gate blocks and one tanh the last one.
    return jnp.concatenate([w[0:2 * H], w[3 * H:4 * H], w[2 * H:3 * H]], axis=0)


def _pad_gate_lanes(w, H, HP):
    # Zero-pad each of the 4 gate column blocks from H to HP lanes.
    rows = w.shape[0]
    w = w.reshape(rows, 4, H)
    w = jnp.pad(w, ((0, 0), (0, 0), (0, HP - H)))
    return w.reshape(rows, 4 * HP)


def _use_bf16_hidden_state():
    # Carry h in bf16 only on chips with a bf16 VPU/EUP (v6e, v7x); keep all
    # elementwise/transcendental math strictly f32 on v5e and older.
    try:
        kind = jax.devices()[0].device_kind.lower()
    except Exception:
        return True
    return not any(tag in kind for tag in ("v2", "v3", "v4", "v5"))


def make_params(key):
    """Deterministic synthetic parameters with the PyTorch module's shapes."""
    ks = jax.random.split(key, 14)

    def init(k, shape, scale=0.1):
        return scale * jax.random.normal(k, shape, dtype=jnp.float32)

    H1, H2 = 128, 64
    return {
        "conv_w": init(ks[0], (64, 1, 3)),
        "conv_b": init(ks[1], (64,)),
        "w_ih1": init(ks[2], (4 * H1, 64)),
        "w_hh1": init(ks[3], (4 * H1, H1)),
        "b_ih1": init(ks[4], (4 * H1,)),
        "b_hh1": init(ks[5], (4 * H1,)),
        "w_ih2": init(ks[6], (4 * H2, H1)),
        "w_hh2": init(ks[7], (4 * H2, H2)),
        "b_ih2": init(ks[8], (4 * H2,)),
        "b_hh2": init(ks[9], (4 * H2,)),
        "fc1_w": init(ks[10], (32, 64)),
        "fc1_b": init(ks[11], (32,)),
        "fc2_w": init(ks[12], (1, 32)),
        "fc2_b": init(ks[13], (1,)),
    }


def hybrid_forward(x, params):
    # x: (B, 1, L) float32 — the NCW layout PyTorch's Conv1d expects.
    B, C, L = x.shape
    assert C == 1 and L % 2 == 0
    H1, H2, HP = 128, 64, 128
    T = L // 2
    B_pad = ((B + 7) // 8) * 8                # sublane-tile-aligned batch
    f32, bf16 = jnp.float32, jnp.bfloat16

    # ---------------- data staging (pure layout work, no model math) --------
    # Zero-pad batch rows and the conv halo in one go; build im2col taps,
    # time-major with rows ordered (t, b), even positions then odd positions.
    xpad = jnp.pad(x[:, 0, :], ((0, B_pad - B), (1, 1)))          # (B_pad, L+2)
    taps = jnp.stack([xpad[:, 0:L], xpad[:, 1:L + 1], xpad[:, 2:L + 2]],
                     axis=-1)                                     # (B_pad, L, 3)
    taps_tm = jnp.transpose(taps, (1, 0, 2))                      # (L, B_pad, 3)
    taps_even = taps_tm[0::2].reshape(T * B_pad, 3)
    taps_odd = taps_tm[1::2].reshape(T * B_pad, 3)
    taps_all = jnp.concatenate([taps_even, taps_odd], axis=0)     # (2*T*B_pad, 3)
    taps_all = jnp.pad(taps_all, ((0, 0), (0, 5)))                # K padded 3 -> 8

    # ---------------- weight prep: two slabs instead of 13 tiny operands ----
    # bf16 matmul-weight slab: [wih1 | whh1 | wih2_padded | whh2_padded].
    wih1 = _reorder_gates(params["w_ih1"], H1).T                  # (64, 512)
    whh1 = _reorder_gates(params["w_hh1"], H1).T                  # (128, 512)
    wih2 = _pad_gate_lanes(_reorder_gates(params["w_ih2"], H2).T, H2, HP)  # (128, 512)
    whh2 = _pad_gate_lanes(_reorder_gates(params["w_hh2"], H2).T, H2, HP)  # (64, 512)
    wslab = jnp.zeros((448, 4 * H1), f32)
    wslab = wslab.at[0:64].set(wih1)
    wslab = wslab.at[64:192].set(whh1)
    wslab = wslab.at[192:320].set(wih2)
    wslab = wslab.at[320:384].set(whh2)                           # rows 384..447 stay 0
    wslab = wslab.astype(bf16)

    # f32 constant slab: biases, conv taps, FC weights (all lane-padded).
    b1 = _reorder_gates(params["b_ih1"] + params["b_hh1"], H1)          # (512,)
    b2 = _pad_gate_lanes(
        _reorder_gates(params["b_ih2"] + params["b_hh2"], H2)[None, :], H2, HP)[0]
    cslab = jnp.zeros((144, 4 * H1), f32)
    cslab = cslab.at[0, :].set(b1)
    cslab = cslab.at[1, :].set(b2)
    cslab = cslab.at[2, :64].set(params["conv_b"])
    cslab = cslab.at[3, :32].set(params["fc1_b"])
    cslab = cslab.at[4, 0].set(params["fc2_b"][0])
    cslab = cslab.at[8:11, :64].set(jnp.transpose(params["conv_w"][:, 0, :], (1, 0)))
    cslab = cslab.at[16:80, 0:32].set(params["fc1_w"].T)          # wfc1 (64, 32)
    cslab = cslab.at[16:48, 128:129].set(params["fc2_w"].T)       # wfc2 (32, 1)

    operands = (taps_all, wslab, cslab)

    # Advisory cost estimate for the XLA scheduler around the custom call.
    flops = (2 * (2 * T * B_pad) * 8 * 64                         # conv matmul
             + 2 * (T * B_pad) * 64 * 4 * H1                      # hoisted input proj
             + 2 * T * B_pad * (H1 * 4 * H1 + H1 * 4 * HP + HP * 4 * HP)  # recurrence
             + 2 * B_pad * (HP * HP + HP * HP))                   # FC head (padded)
    transcendentals = T * B_pad * (4 * H1 + 4 * HP + H1 + HP) + B_pad * HP
    bytes_accessed = (sum(int(a.size) * a.dtype.itemsize for a in operands)
                      + B_pad * HP * 4)

    kernel = functools.partial(
        _hybrid_kernel, B_pad=B_pad, T=T, H1=H1, HP=HP,
        unroll=(T if T <= 16 else 8),           # partial unroll for long sequences
        carry_bf16=_use_bf16_hidden_state())
    vmem = pl.BlockSpec(memory_space=pltpu.MemorySpace.VMEM)

    out = pl.pallas_call(
        kernel,
        out_shape=jax.ShapeDtypeStruct((B_pad, HP), jnp.float32),
        in_specs=[vmem] * len(operands),
        out_specs=vmem,
        scratch_shapes=[pltpu.VMEM((T * B_pad, 4 * H1), jnp.float32)],
        compiler_params=pltpu.CompilerParams(vmem_limit_bytes=32 * 1024 * 1024),
        cost_estimate=pl.CostEstimate(flops=flops,
                                      transcendentals=transcendentals,
                                      bytes_accessed=bytes_accessed),
    )(*operands)
    # Real batch rows, real (single-lane) output column.
    return out[:B, 0:1]


if __name__ == "__main__":
    key = jax.random.PRNGKey(0)
    kx, kp = jax.random.split(key)

    B, input_size = 2, 16
    x = jax.random.normal(kx, (B, 1, input_size), dtype=jnp.float32)
    params = make_params(kp)

    out = jax.jit(hybrid_forward)(x, params)
    out = jax.block_until_ready(out)

    assert out.shape == (B, 1)
    assert bool(jnp.all(jnp.isfinite(out)))
    assert bool(jnp.all((out >= 0.0) & (out <= 1.0)))  # sigmoid output range
    print("KERNEL_OK")
</pallas_src>

<mosaic_0001>
module attributes {stable_mosaic.version = 11 : i64} {
  func.func @_hybrid_kernel(%arg0: memref<128x8xf32, #tpu.memory_space<vmem>>, %arg1: memref<448x512xbf16, #tpu.memory_space<vmem>>, %arg2: memref<144x512xf32, #tpu.memory_space<vmem>>, %arg3: memref<8x128xf32, #tpu.memory_space<vmem>>, %arg4: memref<64x512xf32, #tpu.memory_space<vmem>>) attributes {dimension_semantics = [], scalar_prefetch = 0 : i64, scratch_operands = 1 : i64, tpu.core_type = #tpu.core_type<tc>} {
    %c8 = arith.constant 8 : index
    %c0 = arith.constant 0 : index
    %0 = vector.load %arg2[%c8, %c0] : memref<144x512xf32, #tpu.memory_space<vmem>>, vector<8x64xf32>
    %c2 = arith.constant 2 : index
    %c0_0 = arith.constant 0 : index
    %1 = vector.load %arg2[%c2, %c0_0] : memref<144x512xf32, #tpu.memory_space<vmem>>, vector<1x64xf32>
    %c0_1 = arith.constant 0 : index
    %c0_2 = arith.constant 0 : index
    %2 = vector.load %arg0[%c0_1, %c0_2] : memref<128x8xf32, #tpu.memory_space<vmem>>, vector<128x8xf32>
    %cst = arith.constant dense<0.000000e+00> : vector<128x64xf32>
    %3 = tpu.matmul %2, %0, %cst {dimension_numbers = #tpu.dot_dimension_numbers<[1], [0], [0], [1], [0, 0, 1, 1], [], []>} : vector<128x8xf32>, vector<8x64xf32>, vector<128x64xf32> -> vector<128x64xf32>
    %4 = vector.broadcast %1 : vector<1x64xf32> to vector<128x64xf32>
    %5 = arith.addf %3, %4 : vector<128x64xf32>
    %cst_3 = arith.constant 0.000000e+00 : f32
    %6 = vector.broadcast %cst_3 : f32 to vector<128x64xf32>
    %7 = arith.maximumf %5, %6 : vector<128x64xf32>
    %8 = vector.extract_strided_slice %7 {offsets = [0, 0], sizes = [64, 64], strides = [1, 1]} : vector<128x64xf32> to vector<64x64xf32>
    %9 = vector.extract_strided_slice %7 {offsets = [64, 0], sizes = [64, 64], strides = [1, 1]} : vector<128x64xf32> to vector<64x64xf32>
    %10 = arith.maximumf %8, %9 : vector<64x64xf32>
    %c0_4 = arith.constant 0 : index
    %c0_5 = arith.constant 0 : index
    %11 = vector.load %arg1[%c0_4, %c0_5] : memref<448x512xbf16, #tpu.memory_space<vmem>>, vector<64x512xbf16>
    %c0_6 = arith.constant 0 : index
    %c0_7 = arith.constant 0 : index
    %12 = vector.load %arg2[%c0_6, %c0_7] : memref<144x512xf32, #tpu.memory_space<vmem>>, vector<1x512xf32>
    %13 = arith.truncf %10 : vector<64x64xf32> to vector<64x64xbf16>
    %cst_8 = arith.constant dense<0.000000e+00> : vector<64x512xf32>
    %14 = tpu.matmul %13, %11, %cst_8 {dimension_numbers = #tpu.dot_dimension_numbers<[1], [0], [0], [1], [0, 0, 1, 1], [], []>} : vector<64x64xbf16>, vector<64x512xbf16>, vector<64x512xf32> -> vector<64x512xf32>
    %15 = vector.broadcast %12 : vector<1x512xf32> to vector<64x512xf32>
    %16 = arith.addf %14, %15 : vector<64x512xf32>
    %c0_9 = arith.constant 0 : index
    %c0_10 = arith.constant 0 : index
    %17 = vector.load %arg4[%c0_9, %c0_10] : memref<64x512xf32, #tpu.memory_space<vmem>>, vector<64x512xf32>
    tpu.vector_store %arg4[%c0_9, %c0_10], %16 {strides = array<i32>} : memref<64x512xf32, #tpu.memory_space<vmem>>, vector<64x512xf32>,
    %c64 = arith.constant 64 : index
    %c0_11 = arith.constant 0 : index
    %18 = vector.load %arg1[%c64, %c0_11] : memref<448x512xbf16, #tpu.memory_space<vmem>>, vector<128x512xbf16>
    %c192 = arith.constant 192 : index
    %c0_12 = arith.constant 0 : index
    %19 = vector.load %arg1[%c192, %c0_12] : memref<448x512xbf16, #tpu.memory_space<vmem>>, vector<128x512xbf16>
    %c320 = arith.constant 320 : index
    %c0_13 = arith.constant 0 : index
    %20 = vector.load %arg1[%c320, %c0_13] : memref<448x512xbf16, #tpu.memory_space<vmem>>, vector<128x512xbf16>
    %c1 = arith.constant 1 : index
    %c0_14 = arith.constant 0 : index
    %21 = vector.load %arg2[%c1, %c0_14] : memref<144x512xf32, #tpu.memory_space<vmem>>, vector<1x512xf32>
    %cst_15 = arith.constant 0.000000e+00 : bf16
    %22 = vector.broadcast %cst_15 : bf16 to vector<8x128xbf16>
    %cst_16 = arith.constant 0.000000e+00 : f32
    %23 = vector.broadcast %cst_16 : f32 to vector<8x128xf32>
    %cst_17 = arith.constant 0.000000e+00 : bf16
    %24 = vector.broadcast %cst_17 : bf16 to vector<8x128xbf16>
    %cst_18 = arith.constant 0.000000e+00 : f32
    %25 = vector.broadcast %cst_18 : f32 to vector<8x128xf32>
    %c0_i32 = arith.constant 0 : i32
    %c8_i32 = arith.constant 8 : i32
    %26 = arith.muli %c0_i32, %c8_i32 : i32
    %27 = tpu.assume_multiple %26, 8 : i32
    %28 = arith.index_cast %27 : i32 to index
    %c0_19 = arith.constant 0 : index
    %29 = vector.load %arg4[%28, %c0_19] : memref<64x512xf32, #tpu.memory_space<vmem>>, vector<8x512xf32>
    %cst_20 = arith.constant dense<0.000000e+00> : vector<8x512xf32>
    %30 = tpu.matmul %22, %18, %cst_20 {dimension_numbers = #tpu.dot_dimension_numbers<[1], [0], [0], [1], [0, 0, 1, 1], [], []>} : vector<8x128xbf16>, vector<128x512xbf16>, vector<8x512xf32> -> vector<8x512xf32>
    %31 = arith.addf %29, %30 : vector<8x512xf32>
    %32 = vector.extract_strided_slice %31 {offsets = [0, 0], sizes = [8, 384], strides = [1, 1]} : vector<8x512xf32> to vector<8x384xf32>
    %33 = arith.negf %32 : vector<8x384xf32>
    %34 = math.exp %33 : vector<8x384xf32>
    %cst_21 = arith.constant 1.000000e+00 : f32
    %35 = vector.broadcast %cst_21 : f32 to vector<8x384xf32>
    %36 = arith.addf %35, %34 : vector<8x384xf32>
    %37 = arith.divf %35, %36 : vector<8x384xf32>
    %38 = vector.extract_strided_slice %31 {offsets = [0, 384], sizes = [8, 128], strides = [1, 1]} : vector<8x512xf32> to vector<8x128xf32>
    %39 = math.tanh %38 : vector<8x128xf32>
    %40 = vector.extract_strided_slice %37 {offsets = [0, 128], sizes = [8, 128], strides = [1, 1]} : vector<8x384xf32> to vector<8x128xf32>
    %41 = arith.mulf %40, %23 : vector<8x128xf32>
    %42 = vector.extract_strided_slice %37 {offsets = [0, 0], sizes = [8, 128], strides = [1, 1]} : vector<8x384xf32> to vector<8x128xf32>
    %43 = arith.mulf %42, %39 : vector<8x128xf32>
    %44 = arith.addf %41, %43 : vector<8x128xf32>
    %45 = vector.extract_strided_slice %37 {offsets = [0, 256], sizes = [8, 128], strides = [1, 1]} : vector<8x384xf32> to vector<8x128xf32>
    %46 = math.tanh %44 : vector<8x128xf32>
    %47 = arith.mulf %45, %46 : vector<8x128xf32>
    %48 = arith.truncf %47 : vector<8x128xf32> to vector<8x128xbf16>
    %cst_22 = arith.constant dense<0.000000e+00> : vector<8x512xf32>
    %49 = tpu.matmul %48, %19, %cst_22 {dimension_numbers = #tpu.dot_dimension_numbers<[1], [0], [0], [1], [0, 0, 1, 1], [], []>} : vector<8x128xbf16>, vector<128x512xbf16>, vector<8x512xf32> -> vector<8x512xf32>
    %cst_23 = arith.constant dense<0.000000e+00> : vector<8x512xf32>
    %50 = tpu.matmul %24, %20, %cst_23 {dimension_numbers = #tpu.dot_dimension_numbers<[1], [0], [0], [1], [0, 0, 1, 1], [], []>} : vector<8x128xbf16>, vector<128x512xbf16>, vector<8x512xf32> -> vector<8x512xf32>
    %51 = arith.addf %49, %50 : vector<8x512xf32>
    %52 = vector.broadcast %21 : vector<1x512xf32> to vector<8x512xf32>
    %53 = arith.addf %51, %52 : vector<8x512xf32>
    %54 = vector.extract_strided_slice %53 {offsets = [0, 0], sizes = [8, 384], strides = [1, 1]} : vector<8x512xf32> to vector<8x384xf32>
    %55 = arith.negf %54 : vector<8x384xf32>
    %56 = math.exp %55 : vector<8x384xf32>
    %cst_24 = arith.constant 1.000000e+00 : f32
    %57 = vector.broadcast %cst_24 : f32 to vector<8x384xf32>
    %58 = arith.addf %57, %56 : vector<8x384xf32>
    %59 = arith.divf %57, %58 : vector<8x384xf32>
    %60 = vector.extract_strided_slice %53 {offsets = [0, 384], sizes = [8, 128], strides = [1, 1]} : vector<8x512xf32> to vector<8x128xf32>
    %61 = math.tanh %60 : vector<8x128xf32>
    %62 = vector.extract_strided_slice %59 {offsets = [0, 128], sizes = [8, 128], strides = [1, 1]} : vector<8x384xf32> to vector<8x128xf32>
    %63 = arith.mulf %62, %25 : vector<8x128xf32>
    %64 = vector.extract_strided_slice %59 {offsets = [0, 0], sizes = [8, 128], strides = [1, 1]} : vector<8x384xf32> to vector<8x128xf32>
    %65 = arith.mulf %64, %61 : vector<8x128xf32>
    %66 = arith.addf %63, %65 : vector<8x128xf32>
    %67 = vector.extract_strided_slice %59 {offsets = [0, 256], sizes = [8, 128], strides = [1, 1]} : vector<8x384xf32> to vector<8x128xf32>
    %68 = math.tanh %66 : vector<8x128xf32>
    %69 = arith.mulf %67, %68 : vector<8x128xf32>
    %70 = arith.truncf %69 : vector<8x128xf32> to vector<8x128xbf16>
    %c1_i32 = arith.constant 1 : i32
    %c8_i32_25 = arith.constant 8 : i32
    %71 = arith.muli %c1_i32, %c8_i32_25 : i32
    %72 = tpu.assume_multiple %71, 8 : i32
    %73 = arith.index_cast %72 : i32 to index
    %c0_26 = arith.constant 0 : index
    %74 = vector.load %arg4[%73, %c0_26] : memref<64x512xf32, #tpu.memory_space<vmem>>, vector<8x512xf32>
    %cst_27 = arith.constant dense<0.000000e+00> : vector<8x512xf32>
    %75 = tpu.matmul %48, %18, %cst_27 {dimension_numbers = #tpu.dot_dimension_numbers<[1], [0], [0], [1], [0, 0, 1, 1], [], []>} : vector<8x128xbf16>, vector<128x512xbf16>, vector<8x512xf32> -> vector<8x512xf32>
    %76 = arith.addf %74, %75 : vector<8x512xf32>
    %77 = vector.extract_strided_slice %76 {offsets = [0, 0], sizes = [8, 384], strides = [1, 1]} : vector<8x512xf32> to vector<8x384xf32>
    %78 = arith.negf %77 : vector<8x384xf32>
    %79 = math.exp %78 : vector<8x384xf32>
    %cst_28 = arith.constant 1.000000e+00 : f32
    %80 = vector.broadcast %cst_28 : f32 to vector<8x384xf32>
    %81 = arith.addf %80, %79 : vector<8x384xf32>
    %82 = arith.divf %80, %81 : vector<8x384xf32>
    %83 = vector.extract_strided_slice %76 {offsets = [0, 384], sizes = [8, 128], strides = [1, 1]} : vector<8x512xf32> to vector<8x128xf32>
    %84 = math.tanh %83 : vector<8x128xf32>
    %85 = vector.extract_strided_slice %82 {offsets = [0, 128], sizes = [8, 128], strides = [1, 1]} : vector<8x384xf32> to vector<8x128xf32>
    %86 = arith.mulf %85, %44 : vector<8x128xf32>
    %87 = vector.extract_strided_slice %82 {offsets = [0, 0], sizes = [8, 128], strides = [1, 1]} : vector<8x384xf32> to vector<8x128xf32>
    %88 = arith.mulf %87, %84 : vector<8x128xf32>
    %89 = arith.addf %86, %88 : vector<8x128xf32>
    %90 = vector.extract_strided_slice %82 {offsets = [0, 256], sizes = [8, 128], strides = [1, 1]} : vector<8x384xf32> to vector<8x128xf32>
    %91 = math.tanh %89 : vector<8x128xf32>
    %92 = arith.mulf %90, %91 : vector<8x128xf32>
    %93 = arith.truncf %92 : vector<8x128xf32> to vector<8x128xbf16>
    %cst_29 = arith.constant dense<0.000000e+00> : vector<8x512xf32>
    %94 = tpu.matmul %93, %19, %cst_29 {dimension_numbers = #tpu.dot_dimension_numbers<[1], [0], [0], [1], [0, 0, 1, 1], [], []>} : vector<8x128xbf16>, vector<128x512xbf16>, vector<8x512xf32> -> vector<8x512xf32>
    %cst_30 = arith.constant dense<0.000000e+00> : vector<8x512xf32>
    %95 = tpu.matmul %70, %20, %cst_30 {dimension_numbers = #tpu.dot_dimension_numbers<[1], [0], [0], [1], [0, 0, 1, 1], [], []>} : vector<8x128xbf16>, vector<128x512xbf16>, vector<8x512xf32> -> vector<8x512xf32>
    %96 = arith.addf %94, %95 : vector<8x512xf32>
    %97 = vector.broadcast %21 : vector<1x512xf32> to vector<8x512xf32>
    %98 = arith.addf %96, %97 : vector<8x512xf32>
    %99 = vector.extract_strided_slice %98 {offsets = [0, 0], sizes = [8, 384], strides = [1, 1]} : vector<8x512xf32> to vector<8x384xf32>
    %100 = arith.negf %99 : vector<8x384xf32>
    %101 = math.exp %100 : vector<8x384xf32>
    %cst_31 = arith.constant 1.000000e+00 : f32
    %102 = vector.broadcast %cst_31 : f32 to vector<8x384xf32>
    %103 = arith.addf %102, %101 : vector<8x384xf32>
    %104 = arith.divf %102, %103 : vector<8x384xf32>
    %105 = vector.extract_strided_slice %98 {offsets = [0, 384], sizes = [8, 128], strides = [1, 1]} : vector<8x512xf32> to vector<8x128xf32>
    %106 = math.tanh %105 : vector<8x128xf32>
    %107 = vector.extract_strided_slice %104 {offsets = [0, 128], sizes = [8, 128], strides = [1, 1]} : vector<8x384xf32> to vector<8x128xf32>
    %108 = arith.mulf %107, %66 : vector<8x128xf32>
    %109 = vector.extract_strided_slice %104 {offsets = [0, 0], sizes = [8, 128], strides = [1, 1]} : vector<8x384xf32> to vector<8x128xf32>
    %110 = arith.mulf %109, %106 : vector<8x128xf32>
    %111 = arith.addf %108, %110 : vector<8x128xf32>
    %112 = vector.extract_strided_slice %104 {offsets = [0, 256], sizes = [8, 128], strides = [1, 1]} : vector<8x384xf32> to vector<8x128xf32>
    %113 = math.tanh %111 : vector<8x128xf32>
    %114 = arith.mulf %112, %113 : vector<8x128xf32>
    %115 = arith.truncf %114 : vector<8x128xf32> to vector<8x128xbf16>
    %c2_i32 = arith.constant 2 : i32
    %c8_i32_32 = arith.constant 8 : i32
    %116 = arith.muli %c2_i32, %c8_i32_32 : i32
    %117 = tpu.assume_multiple %116, 8 : i32
    %118 = arith.index_cast %117 : i32 to index
    %c0_33 = arith.constant 0 : index
    %119 = vector.load %arg4[%118, %c0_33] : memref<64x512xf32, #tpu.memory_space<vmem>>, vector<8x512xf32>
    %cst_34 = arith.constant dense<0.000000e+00> : vector<8x512xf32>
    %120 = tpu.matmul %93, %18, %cst_34 {dimension_numbers = #tpu.dot_dimension_numbers<[1], [0], [0], [1], [0, 0, 1, 1], [], []>} : vector<8x128xbf16>, vector<128x512xbf16>, vector<8x512xf32> -> vector<8x512xf32>
    %121 = arith.addf %119, %120 : vector<8x512xf32>
    %122 = vector.extract_strided_slice %121 {offsets = [0, 0], sizes = [8, 384], strides = [1, 1]} : vector<8x512xf32> to vector<8x384xf32>
    %123 = arith.negf %122 : vector<8x384xf32>
    %124 = math.exp %123 : vector<8x384xf32>
    %cst_35 = arith.constant 1.000000e+00 : f32
    %125 = vector.broadcast %cst_35 : f32 to vector<8x384xf32>
    %126 = arith.addf %125, %124 : vector<8x384xf32>
    %127 = arith.divf %125, %126 : vector<8x384xf32>
    %128 = vector.extract_strided_slice %121 {offsets = [0, 384], sizes = [8, 128], strides = [1, 1]} : vector<8x512xf32> to vector<8x128xf32>
    %129 = math.tanh %128 : vector<8x128xf32>
    %130 = vector.extract_strided_slice %127 {offsets = [0, 128], sizes = [8, 128], strides = [1, 1]} : vector<8x384xf32> to vector<8x128xf32>
    %131 = arith.mulf %130, %89 : vector<8x128xf32>
    %132 = vector.extract_strided_slice %127 {offsets = [0, 0], sizes = [8, 128], strides = [1, 1]} : vector<8x384xf32> to vector<8x128xf32>
    %133 = arith.mulf %132, %129 : vector<8x128xf32>
    %134 = arith.addf %131, %133 : vector<8x128xf32>
    %135 = vector.extract_strided_slice %127 {offsets = [0, 256], sizes = [8, 128], strides = [1, 1]} : vector<8x384xf32> to vector<8x128xf32>
    %136 = math.tanh %134 : vector<8x128xf32>
    %137 = arith.mulf %135, %136 : vector<8x128xf32>
    %138 = arith.truncf %137 : vector<8x128xf32> to vector<8x128xbf16>
    %cst_36 = arith.constant dense<0.000000e+00> : vector<8x512xf32>
    %139 = tpu.matmul %138, %19, %cst_36 {dimension_numbers = #tpu.dot_dimension_numbers<[1], [0], [0], [1], [0, 0, 1, 1], [], []>} : vector<8x128xbf16>, vector<128x512xbf16>, vector<8x512xf32> -> vector<8x512xf32>
    %cst_37 = arith.constant dense<0.000000e+00> : vector<8x512xf32>
    %140 = tpu.matmul %115, %20, %cst_37 {dimension_numbers = #tpu.dot_dimension_numbers<[1], [0], [0], [1], [0, 0, 1, 1], [], []>} : vector<8x128xbf16>, vector<128x512xbf16>, vector<8x512xf32> -> vector<8x512xf32>
    %141 = arith.addf %139, %140 : vector<8x512xf32>
    %142 = vector.broadcast %21 : vector<1x512xf32> to vector<8x512xf32>
    %143 = arith.addf %141, %142 : vector<8x512xf32>
    %144 = vector.extract_strided_slice %143 {offsets = [0, 0], sizes = [8, 384], strides = [1, 1]} : vector<8x512xf32> to vector<8x384xf32>
    %145 = arith.negf %144 : vector<8x384xf32>
    %146 = math.exp %145 : vector<8x384xf32>
    %cst_38 = arith.constant 1.000000e+00 : f32
    %147 = vector.broadcast %cst_38 : f32 to vector<8x384xf32>
    %148 = arith.addf %147, %146 : vector<8x384xf32>
    %149 = arith.divf %147, %148 : vector<8x384xf32>
    %150 = vector.extract_strided_slice %143 {offsets = [0, 384], sizes = [8, 128], strides = [1, 1]} : vector<8x512xf32> to vector<8x128xf32>
    %151 = math.tanh %150 : vector<8x128xf32>
    %152 = vector.extract_strided_slice %149 {offsets = [0, 128], sizes = [8, 128], strides = [1, 1]} : vector<8x384xf32> to vector<8x128xf32>
    %153 = arith.mulf %152, %111 : vector<8x128xf32>
    %154 = vector.extract_strided_slice %149 {offsets = [0, 0], sizes = [8, 128], strides = [1, 1]} : vector<8x384xf32> to vector<8x128xf32>
    %155 = arith.mulf %154, %151 : vector<8x128xf32>
    %156 = arith.addf %153, %155 : vector<8x128xf32>
    %157 = vector.extract_strided_slice %149 {offsets = [0, 256], sizes = [8, 128], strides = [1, 1]} : vector<8x384xf32> to vector<8x128xf32>
    %158 = math.tanh %156 : vector<8x128xf32>
    %159 = arith.mulf %157, %158 : vector<8x128xf32>
    %160 = arith.truncf %159 : vector<8x128xf32> to vector<8x128xbf16>
    %c3_i32 = arith.constant 3 : i32
    %c8_i32_39 = arith.constant 8 : i32
    %161 = arith.muli %c3_i32, %c8_i32_39 : i32
    %162 = tpu.assume_multiple %161, 8 : i32
    %163 = arith.index_cast %162 : i32 to index
    %c0_40 = arith.constant 0 : index
    %164 = vector.load %arg4[%163, %c0_40] : memref<64x512xf32, #tpu.memory_space<vmem>>, vector<8x512xf32>
    %cst_41 = arith.constant dense<0.000000e+00> : vector<8x512xf32>
    %165 = tpu.matmul %138, %18, %cst_41 {dimension_numbers = #tpu.dot_dimension_numbers<[1], [0], [0], [1], [0, 0, 1, 1], [], []>} : vector<8x128xbf16>, vector<128x512xbf16>, vector<8x512xf32> -> vector<8x512xf32>
    %166 = arith.addf %164, %165 : vector<8x512xf32>
    %167 = vector.extract_strided_slice %166 {offsets = [0, 0], sizes = [8, 384], strides = [1, 1]} : vector<8x512xf32> to vector<8x384xf32>
    %168 = arith.negf %167 : vector<8x384xf32>
    %169 = math.exp %168 : vector<8x384xf32>
    %cst_42 = arith.constant 1.000000e+00 : f32
    %170 = vector.broadcast %cst_42 : f32 to vector<8x384xf32>
    %171 = arith.addf %170, %169 : vector<8x384xf32>
    %172 = arith.divf %170, %171 : vector<8x384xf32>
    %173 = vector.extract_strided_slice %166 {offsets = [0, 384], sizes = [8, 128], strides = [1, 1]} : vector<8x512xf32> to vector<8x128xf32>
    %174 = math.tanh %173 : vector<8x128xf32>
    %175 = vector.extract_strided_slice %172 {offsets = [0, 128], sizes = [8, 128], strides = [1, 1]} : vector<8x384xf32> to vector<8x128xf32>
    %176 = arith.mulf %175, %134 : vector<8x128xf32>
    %177 = vector.extract_strided_slice %172 {offsets = [0, 0], sizes = [8, 128], strides = [1, 1]} : vector<8x384xf32> to vector<8x128xf32>
    %178 = arith.mulf %177, %174 : vector<8x128xf32>
    %179 = arith.addf %176, %178 : vector<8x128xf32>
    %180 = vector.extract_strided_slice %172 {offsets = [0, 256], sizes = [8, 128], strides = [1, 1]} : vector<8x384xf32> to vector<8x128xf32>
    %181 = math.tanh %179 : vector<8x128xf32>
    %182 = arith.mulf %180, %181 : vector<8x128xf32>
    %183 = arith.truncf %182 : vector<8x128xf32> to vector<8x128xbf16>
    %cst_43 = arith.constant dense<0.000000e+00> : vector<8x512xf32>
    %184 = tpu.matmul %183, %19, %cst_43 {dimension_numbers = #tpu.dot_dimension_numbers<[1], [0], [0], [1], [0, 0, 1, 1], [], []>} : vector<8x128xbf16>, vector<128x512xbf16>, vector<8x512xf32> -> vector<8x512xf32>
    %cst_44 = arith.constant dense<0.000000e+00> : vector<8x512xf32>
    %185 = tpu.matmul %160, %20, %cst_44 {dimension_numbers = #tpu.dot_dimension_numbers<[1], [0], [0], [1], [0, 0, 1, 1], [], []>} : vector<8x128xbf16>, vector<128x512xbf16>, vector<8x512xf32> -> vector<8x512xf32>
    %186 = arith.addf %184, %185 : vector<8x512xf32>
    %187 = vector.broadcast %21 : vector<1x512xf32> to vector<8x512xf32>
    %188 = arith.addf %186, %187 : vector<8x512xf32>
    %189 = vector.extract_strided_slice %188 {offsets = [0, 0], sizes = [8, 384], strides = [1, 1]} : vector<8x512xf32> to vector<8x384xf32>
    %190 = arith.negf %189 : vector<8x384xf32>
    %191 = math.exp %190 : vector<8x384xf32>
    %cst_45 = arith.constant 1.000000e+00 : f32
    %192 = vector.broadcast %cst_45 : f32 to vector<8x384xf32>
    %193 = arith.addf %192, %191 : vector<8x384xf32>
    %194 = arith.divf %192, %193 : vector<8x384xf32>
    %195 = vector.extract_strided_slice %188 {offsets = [0, 384], sizes = [8, 128], strides = [1, 1]} : vector<8x512xf32> to vector<8x128xf32>
    %196 = math.tanh %195 : vector<8x128xf32>
    %197 = vector.extract_strided_slice %194 {offsets = [0, 128], sizes = [8, 128], strides = [1, 1]} : vector<8x384xf32> to vector<8x128xf32>
    %198 = arith.mulf %197, %156 : vector<8x128xf32>
    %199 = vector.extract_strided_slice %194 {offsets = [0, 0], sizes = [8, 128], strides = [1, 1]} : vector<8x384xf32> to vector<8x128xf32>
    %200 = arith.mulf %199, %196 : vector<8x128xf32>
    %201 = arith.addf %198, %200 : vector<8x128xf32>
    %202 = vector.extract_strided_slice %194 {offsets = [0, 256], sizes = [8, 128], strides = [1, 1]} : vector<8x384xf32> to vector<8x128xf32>
    %203 = math.tanh %201 : vector<8x128xf32>
    %204 = arith.mulf %202, %203 : vector<8x128xf32>
    %205 = arith.truncf %204 : vector<8x128xf32> to vector<8x128xbf16>
    %c4_i32 = arith.constant 4 : i32
    %c8_i32_46 = arith.constant 8 : i32
    %206 = arith.muli %c4_i32, %c8_i32_46 : i32
    %207 = tpu.assume_multiple %206, 8 : i32
    %208 = arith.index_cast %207 : i32 to index
    %c0_47 = arith.constant 0 : index
    %209 = vector.load %arg4[%208, %c0_47] : memref<64x512xf32, #tpu.memory_space<vmem>>, vector<8x512xf32>
    %cst_48 = arith.constant dense<0.000000e+00> : vector<8x512xf32>
    %210 = tpu.matmul %183, %18, %cst_48 {dimension_numbers = #tpu.dot_dimension_numbers<[1], [0], [0], [1], [0, 0, 1, 1], [], []>} : vector<8x128xbf16>, vector<128x512xbf16>, vector<8x512xf32> -> vector<8x512xf32>
    %211 = arith.addf %209, %210 : vector<8x512xf32>
    %212 = vector.extract_strided_slice %211 {offsets = [0, 0], sizes = [8, 384], strides = [1, 1]} : vector<8x512xf32> to vector<8x384xf32>
    %213 = arith.negf %212 : vector<8x384xf32>
    %214 = math.exp %213 : vector<8x384xf32>
    %cst_49 = arith.constant 1.000000e+00 : f32
    %215 = vector.broadcast %cst_49 : f32 to vector<8x384xf32>
    %216 = arith.addf %215, %214 : vector<8x384xf32>
    %217 = arith.divf %215, %216 : vector<8x384xf32>
    %218 = vector.extract_strided_slice %211 {offsets = [0, 384], sizes = [8, 128], strides = [1, 1]} : vector<8x512xf32> to vector<8x128xf32>
    %219 = math.tanh %218 : vector<8x128xf32>
    %220 = vector.extract_strided_slice %217 {offsets = [0, 128], sizes = [8, 128], strides = [1, 1]} : vector<8x384xf32> to vector<8x128xf32>
    %221 = arith.mulf %220, %179 : vector<8x128xf32>
    %222 = vector.extract_strided_slice %217 {offsets = [0, 0], sizes = [8, 128], strides = [1, 1]} : vector<8x384xf32> to vector<8x128xf32>
    %223 = arith.mulf %222, %219 : vector<8x128xf32>
    %224 = arith.addf %221, %223 : vector<8x128xf32>
    %225 = vector.extract_strided_slice %217 {offsets = [0, 256], sizes = [8, 128], strides = [1, 1]} : vector<8x384xf32> to vector<8x128xf32>
    %226 = math.tanh %224 : vector<8x128xf32>
    %227 = arith.mulf %225, %226 : vector<8x128xf32>
    %228 = arith.truncf %227 : vector<8x128xf32> to vector<8x128xbf16>
    %cst_50 = arith.constant dense<0.000000e+00> : vector<8x512xf32>
    %229 = tpu.matmul %228, %19, %cst_50 {dimension_numbers = #tpu.dot_dimension_numbers<[1], [0], [0], [1], [0, 0, 1, 1], [], []>} : vector<8x128xbf16>, vector<128x512xbf16>, vector<8x512xf32> -> vector<8x512xf32>
    %cst_51 = arith.constant dense<0.000000e+00> : vector<8x512xf32>
    %230 = tpu.matmul %205, %20, %cst_51 {dimension_numbers = #tpu.dot_dimension_numbers<[1], [0], [0], [1], [0, 0, 1, 1], [], []>} : vector<8x128xbf16>, vector<128x512xbf16>, vector<8x512xf32> -> vector<8x512xf32>
    %231 = arith.addf %229, %230 : vector<8x512xf32>
    %232 = vector.broadcast %21 : vector<1x512xf32> to vector<8x512xf32>
    %233 = arith.addf %231, %232 : vector<8x512xf32>
    %234 = vector.extract_strided_slice %233 {offsets = [0, 0], sizes = [8, 384], strides = [1, 1]} : vector<8x512xf32> to vector<8x384xf32>
    %235 = arith.negf %234 : vector<8x384xf32>
    %236 = math.exp %235 : vector<8x384xf32>
    %cst_52 = arith.constant 1.000000e+00 : f32
    %237 = vector.broadcast %cst_52 : f32 to vector<8x384xf32>
    %238 = arith.addf %237, %236 : vector<8x384xf32>
    %239 = arith.divf %237, %238 : vector<8x384xf32>
    %240 = vector.extract_strided_slice %233 {offsets = [0, 384], sizes = [8, 128], strides = [1, 1]} : vector<8x512xf32> to vector<8x128xf32>
    %241 = math.tanh %240 : vector<8x128xf32>
    %242 = vector.extract_strided_slice %239 {offsets = [0, 128], sizes = [8, 128], strides = [1, 1]} : vector<8x384xf32> to vector<8x128xf32>
    %243 = arith.mulf %242, %201 : vector<8x128xf32>
    %244 = vector.extract_strided_slice %239 {offsets = [0, 0], sizes = [8, 128], strides = [1, 1]} : vector<8x384xf32> to vector<8x128xf32>
    %245 = arith.mulf %244, %241 : vector<8x128xf32>
    %246 = arith.addf %243, %245 : vector<8x128xf32>
    %247 = vector.extract_strided_slice %239 {offsets = [0, 256], sizes = [8, 128], strides = [1, 1]} : vector<8x384xf32> to vector<8x128xf32>
    %248 = math.tanh %246 : vector<8x128xf32>
    %249 = arith.mulf %247, %248 : vector<8x128xf32>
    %250 = arith.truncf %249 : vector<8x128xf32> to vector<8x128xbf16>
    %c5_i32 = arith.constant 5 : i32
    %c8_i32_53 = arith.constant 8 : i32
    %251 = arith.muli %c5_i32, %c8_i32_53 : i32
    %252 = tpu.assume_multiple %251, 8 : i32
    %253 = arith.index_cast %252 : i32 to index
    %c0_54 = arith.constant 0 : index
    %254 = vector.load %arg4[%253, %c0_54] : memref<64x512xf32, #tpu.memory_space<vmem>>, vector<8x512xf32>
    %cst_55 = arith.constant dense<0.000000e+00> : vector<8x512xf32>
    %255 = tpu.matmul %228, %18, %cst_55 {dimension_numbers = #tpu.dot_dimension_numbers<[1], [0], [0], [1], [0, 0, 1, 1], [], []>} : vector<8x128xbf16>, vector<128x512xbf16>, vector<8x512xf32> -> vector<8x512xf32>
    %256 = arith.addf %254, %255 : vector<8x512xf32>
    %257 = vector.extract_strided_slice %256 {offsets = [0, 0], sizes = [8, 384], strides = [1, 1]} : vector<8x512xf32> to vector<8x384xf32>
    %258 = arith.negf %257 : vector<8x384xf32>
    %259 = math.exp %258 : vector<8x384xf32>
    %cst_56 = arith.constant 1.000000e+00 : f32
    %260 = vector.broadcast %cst_56 : f32 to vector<8x384xf32>
    %261 = arith.addf %260, %259 : vector<8x384xf32>
    %262 = arith.divf %260, %261 : vector<8x384xf32>
    %263 = vector.extract_strided_slice %256 {offsets = [0, 384], sizes = [8, 128], strides = [1, 1]} : vector<8x512xf32> to vector<8x128xf32>
    %264 = math.tanh %263 : vector<8x128xf32>
    %265 = vector.extract_strided_slice %262 {offsets = [0, 128], sizes = [8, 128], strides = [1, 1]} : vector<8x384xf32> to vector<8x128xf32>
    %266 = arith.mulf %265, %224 : vector<8x128xf32>
    %267 = vector.extract_strided_slice %262 {offsets = [0, 0], sizes = [8, 128], strides = [1, 1]} : vector<8x384xf32> to vector<8x128xf32>
    %268 = arith.mulf %267, %264 : vector<8x128xf32>
    %269 = arith.addf %266, %268 : vector<8x128xf32>
    %270 = vector.extract_strided_slice %262 {offsets = [0, 256], sizes = [8, 128], strides = [1, 1]} : vector<8x384xf32> to vector<8x128xf32>
    %271 = math.tanh %269 : vector<8x128xf32>
    %272 = arith.mulf %270, %271 : vector<8x128xf32>
    %273 = arith.truncf %272 : vector<8x128xf32> to vector<8x128xbf16>
    %cst_57 = arith.constant dense<0.000000e+00> : vector<8x512xf32>
    %274 = tpu.matmul %273, %19, %cst_57 {dimension_numbers = #tpu.dot_dimension_numbers<[1], [0], [0], [1], [0, 0, 1, 1], [], []>} : vector<8x128xbf16>, vector<128x512xbf16>, vector<8x512xf32> -> vector<8x512xf32>
    %cst_58 = arith.constant dense<0.000000e+00> : vector<8x512xf32>
    %275 = tpu.matmul %250, %20, %cst_58 {dimension_numbers = #tpu.dot_dimension_numbers<[1], [0], [0], [1], [0, 0, 1, 1], [], []>} : vector<8x128xbf16>, vector<128x512xbf16>, vector<8x512xf32> -> vector<8x512xf32>
    %276 = arith.addf %274, %275 : vector<8x512xf32>
    %277 = vector.broadcast %21 : vector<1x512xf32> to vector<8x512xf32>
    %278 = arith.addf %276, %277 : vector<8x512xf32>
    %279 = vector.extract_strided_slice %278 {offsets = [0, 0], sizes = [8, 384], strides = [1, 1]} : vector<8x512xf32> to vector<8x384xf32>
    %280 = arith.negf %279 : vector<8x384xf32>
    %281 = math.exp %280 : vector<8x384xf32>
    %cst_59 = arith.constant 1.000000e+00 : f32
    %282 = vector.broadcast %cst_59 : f32 to vector<8x384xf32>
    %283 = arith.addf %282, %281 : vector<8x384xf32>
    %284 = arith.divf %282, %283 : vector<8x384xf32>
    %285 = vector.extract_strided_slice %278 {offsets = [0, 384], sizes = [8, 128], strides = [1, 1]} : vector<8x512xf32> to vector<8x128xf32>
    %286 = math.tanh %285 : vector<8x128xf32>
    %287 = vector.extract_strided_slice %284 {offsets = [0, 128], sizes = [8, 128], strides = [1, 1]} : vector<8x384xf32> to vector<8x128xf32>
    %288 = arith.mulf %287, %246 : vector<8x128xf32>
    %289 = vector.extract_strided_slice %284 {offsets = [0, 0], sizes = [8, 128], strides = [1, 1]} : vector<8x384xf32> to vector<8x128xf32>
    %290 = arith.mulf %289, %286 : vector<8x128xf32>
    %291 = arith.addf %288, %290 : vector<8x128xf32>
    %292 = vector.extract_strided_slice %284 {offsets = [0, 256], sizes = [8, 128], strides = [1, 1]} : vector<8x384xf32> to vector<8x128xf32>
    %293 = math.tanh %291 : vector<8x128xf32>
    %294 = arith.mulf %292, %293 : vector<8x128xf32>
    %295 = arith.truncf %294 : vector<8x128xf32> to vector<8x128xbf16>
    %c6_i32 = arith.constant 6 : i32
    %c8_i32_60 = arith.constant 8 : i32
    %296 = arith.muli %c6_i32, %c8_i32_60 : i32
    %297 = tpu.assume_multiple %296, 8 : i32
    %298 = arith.index_cast %297 : i32 to index
    %c0_61 = arith.constant 0 : index
    %299 = vector.load %arg4[%298, %c0_61] : memref<64x512xf32, #tpu.memory_space<vmem>>, vector<8x512xf32>
    %cst_62 = arith.constant dense<0.000000e+00> : vector<8x512xf32>
    %300 = tpu.matmul %273, %18, %cst_62 {dimension_numbers = #tpu.dot_dimension_numbers<[1], [0], [0], [1], [0, 0, 1, 1], [], []>} : vector<8x128xbf16>, vector<128x512xbf16>, vector<8x512xf32> -> vector<8x512xf32>
    %301 = arith.addf %299, %300 : vector<8x512xf32>
    %302 = vector.extract_strided_slice %301 {offsets = [0, 0], sizes = [8, 384], strides = [1, 1]} : vector<8x512xf32> to vector<8x384xf32>
    %303 = arith.negf %302 : vector<8x384xf32>
    %304 = math.exp %303 : vector<8x384xf32>
    %cst_63 = arith.constant 1.000000e+00 : f32
    %305 = vector.broadcast %cst_63 : f32 to vector<8x384xf32>
    %306 = arith.addf %305, %304 : vector<8x384xf32>
    %307 = arith.divf %305, %306 : vector<8x384xf32>
    %308 = vector.extract_strided_slice %301 {offsets = [0, 384], sizes = [8, 128], strides = [1, 1]} : vector<8x512xf32> to vector<8x128xf32>
    %309 = math.tanh %308 : vector<8x128xf32>
    %310 = vector.extract_strided_slice %307 {offsets = [0, 128], sizes = [8, 128], strides = [1, 1]} : vector<8x384xf32> to vector<8x128xf32>
    %311 = arith.mulf %310, %269 : vector<8x128xf32>
    %312 = vector.extract_strided_slice %307 {offsets = [0, 0], sizes = [8, 128], strides = [1, 1]} : vector<8x384xf32> to vector<8x128xf32>
    %313 = arith.mulf %312, %309 : vector<8x128xf32>
    %314 = arith.addf %311, %313 : vector<8x128xf32>
    %315 = vector.extract_strided_slice %307 {offsets = [0, 256], sizes = [8, 128], strides = [1, 1]} : vector<8x384xf32> to vector<8x128xf32>
    %316 = math.tanh %314 : vector<8x128xf32>
    %317 = arith.mulf %315, %316 : vector<8x128xf32>
    %318 = arith.truncf %317 : vector<8x128xf32> to vector<8x128xbf16>
    %cst_64 = arith.constant dense<0.000000e+00> : vector<8x512xf32>
    %319 = tpu.matmul %318, %19, %cst_64 {dimension_numbers = #tpu.dot_dimension_numbers<[1], [0], [0], [1], [0, 0, 1, 1], [], []>} : vector<8x128xbf16>, vector<128x512xbf16>, vector<8x512xf32> -> vector<8x512xf32>
    %cst_65 = arith.constant dense<0.000000e+00> : vector<8x512xf32>
    %320 = tpu.matmul %295, %20, %cst_65 {dimension_numbers = #tpu.dot_dimension_numbers<[1], [0], [0], [1], [0, 0, 1, 1], [], []>} : vector<8x128xbf16>, vector<128x512xbf16>, vector<8x512xf32> -> vector<8x512xf32>
    %321 = arith.addf %319, %320 : vector<8x512xf32>
    %322 = vector.broadcast %21 : vector<1x512xf32> to vector<8x512xf32>
    %323 = arith.addf %321, %322 : vector<8x512xf32>
    %324 = vector.extract_strided_slice %323 {offsets = [0, 0], sizes = [8, 384], strides = [1, 1]} : vector<8x512xf32> to vector<8x384xf32>
    %325 = arith.negf %324 : vector<8x384xf32>
    %326 = math.exp %325 : vector<8x384xf32>
    %cst_66 = arith.constant 1.000000e+00 : f32
    %327 = vector.broadcast %cst_66 : f32 to vector<8x384xf32>
    %328 = arith.addf %327, %326 : vector<8x384xf32>
    %329 = arith.divf %327, %328 : vector<8x384xf32>
    %330 = vector.extract_strided_slice %323 {offsets = [0, 384], sizes = [8, 128], strides = [1, 1]} : vector<8x512xf32> to vector<8x128xf32>
    %331 = math.tanh %330 : vector<8x128xf32>
    %332 = vector.extract_strided_slice %329 {offsets = [0, 128], sizes = [8, 128], strides = [1, 1]} : vector<8x384xf32> to vector<8x128xf32>
    %333 = arith.mulf %332, %291 : vector<8x128xf32>
    %334 = vector.extract_strided_slice %329 {offsets = [0, 0], sizes = [8, 128], strides = [1, 1]} : vector<8x384xf32> to vector<8x128xf32>
    %335 = arith.mulf %334, %331 : vector<8x128xf32>
    %336 = arith.addf %333, %335 : vector<8x128xf32>
    %337 = vector.extract_strided_slice %329 {offsets = [0, 256], sizes = [8, 128], strides = [1, 1]} : vector<8x384xf32> to vector<8x128xf32>
    %338 = math.tanh %336 : vector<8x128xf32>
    %339 = arith.mulf %337, %338 : vector<8x128xf32>
    %340 = arith.truncf %339 : vector<8x128xf32> to vector<8x128xbf16>
    %c7_i32 = arith.constant 7 : i32
    %c8_i32_67 = arith.constant 8 : i32
    %341 = arith.muli %c7_i32, %c8_i32_67 : i32
    %342 = tpu.assume_multiple %341, 8 : i32
    %343 = arith.index_cast %342 : i32 to index
    %c0_68 = arith.constant 0 : index
    %344 = vector.load %arg4[%343, %c0_68] : memref<64x512xf32, #tpu.memory_space<vmem>>, vector<8x512xf32>
    %cst_69 = arith.constant dense<0.000000e+00> : vector<8x512xf32>
    %345 = tpu.matmul %318, %18, %cst_69 {dimension_numbers = #tpu.dot_dimension_numbers<[1], [0], [0], [1], [0, 0, 1, 1], [], []>} : vector<8x128xbf16>, vector<128x512xbf16>, vector<8x512xf32> -> vector<8x512xf32>
    %346 = arith.addf %344, %345 : vector<8x512xf32>
    %347 = vector.extract_strided_slice %346 {offsets = [0, 0], sizes = [8, 384], strides = [1, 1]} : vector<8x512xf32> to vector<8x384xf32>
    %348 = arith.negf %347 : vector<8x384xf32>
    %349 = math.exp %348 : vector<8x384xf32>
    %cst_70 = arith.constant 1.000000e+00 : f32
    %350 = vector.broadcast %cst_70 : f32 to vector<8x384xf32>
    %351 = arith.addf %350, %349 : vector<8x384xf32>
    %352 = arith.divf %350, %351 : vector<8x384xf32>
    %353 = vector.extract_strided_slice %346 {offsets = [0, 384], sizes = [8, 128], strides = [1, 1]} : vector<8x512xf32> to vector<8x128xf32>
    %354 = math.tanh %353 : vector<8x128xf32>
    %355 = vector.extract_strided_slice %352 {offsets = [0, 128], sizes = [8, 128], strides = [1, 1]} : vector<8x384xf32> to vector<8x128xf32>
    %356 = arith.mulf %355, %314 : vector<8x128xf32>
    %357 = vector.extract_strided_slice %352 {offsets = [0, 0], sizes = [8, 128], strides = [1, 1]} : vector<8x384xf32> to vector<8x128xf32>
    %358 = arith.mulf %357, %354 : vector<8x128xf32>
    %359 = arith.addf %356, %358 : vector<8x128xf32>
    %360 = vector.extract_strided_slice %352 {offsets = [0, 256], sizes = [8, 128], strides = [1, 1]} : vector<8x384xf32> to vector<8x128xf32>
    %361 = math.tanh %359 : vector<8x128xf32>
    %362 = arith.mulf %360, %361 : vector<8x128xf32>
    %363 = arith.truncf %362 : vector<8x128xf32> to vector<8x128xbf16>
    %cst_71 = arith.constant dense<0.000000e+00> : vector<8x512xf32>
    %364 = tpu.matmul %363, %19, %cst_71 {dimension_numbers = #tpu.dot_dimension_numbers<[1], [0], [0], [1], [0, 0, 1, 1], [], []>} : vector<8x128xbf16>, vector<128x512xbf16>, vector<8x512xf32> -> vector<8x512xf32>
    %cst_72 = arith.constant dense<0.000000e+00> : vector<8x512xf32>
    %365 = tpu.matmul %340, %20, %cst_72 {dimension_numbers = #tpu.dot_dimension_numbers<[1], [0], [0], [1], [0, 0, 1, 1], [], []>} : vector<8x128xbf16>, vector<128x512xbf16>, vector<8x512xf32> -> vector<8x512xf32>
    %366 = arith.addf %364, %365 : vector<8x512xf32>
    %367 = vector.broadcast %21 : vector<1x512xf32> to vector<8x512xf32>
    %368 = arith.addf %366, %367 : vector<8x512xf32>
    %369 = vector.extract_strided_slice %368 {offsets = [0, 0], sizes = [8, 384], strides = [1, 1]} : vector<8x512xf32> to vector<8x384xf32>
    %370 = arith.negf %369 : vector<8x384xf32>
    %371 = math.exp %370 : vector<8x384xf32>
    %cst_73 = arith.constant 1.000000e+00 : f32
    %372 = vector.broadcast %cst_73 : f32 to vector<8x384xf32>
    %373 = arith.addf %372, %371 : vector<8x384xf32>
    %374 = arith.divf %372, %373 : vector<8x384xf32>
    %375 = vector.extract_strided_slice %368 {offsets = [0, 384], sizes = [8, 128], strides = [1, 1]} : vector<8x512xf32> to vector<8x128xf32>
    %376 = math.tanh %375 : vector<8x128xf32>
    %377 = vector.extract_strided_slice %374 {offsets = [0, 128], sizes = [8, 128], strides = [1, 1]} : vector<8x384xf32> to vector<8x128xf32>
    %378 = arith.mulf %377, %336 : vector<8x128xf32>
    %379 = vector.extract_strided_slice %374 {offsets = [0, 0], sizes = [8, 128], strides = [1, 1]} : vector<8x384xf32> to vector<8x128xf32>
    %380 = arith.mulf %379, %376 : vector<8x128xf32>
    %381 = arith.addf %378, %380 : vector<8x128xf32>
    %382 = vector.extract_strided_slice %374 {offsets = [0, 256], sizes = [8, 128], strides = [1, 1]} : vector<8x384xf32> to vector<8x128xf32>
    %383 = math.tanh %381 : vector<8x128xf32>
    %384 = arith.mulf %382, %383 : vector<8x128xf32>
    %385 = arith.truncf %384 : vector<8x128xf32> to vector<8x128xbf16>
    %c8_i32_74 = arith.constant 8 : i32
    %386 = arith.extf %385 : vector<8x128xbf16> to vector<8x128xf32>
    %c16 = arith.constant 16 : index
    %c0_75 = arith.constant 0 : index
    %387 = vector.load %arg2[%c16, %c0_75] : memref<144x512xf32, #tpu.memory_space<vmem>>, vector<128x128xf32>
    %c3 = arith.constant 3 : index
    %c0_76 = arith.constant 0 : index
    %388 = vector.load %arg2[%c3, %c0_76] : memref<144x512xf32, #tpu.memory_space<vmem>>, vector<1x128xf32>
    %c16_77 = arith.constant 16 : index
    %c128 = arith.constant 128 : index
    %389 = vector.load %arg2[%c16_77, %c128] : memref<144x512xf32, #tpu.memory_space<vmem>>, vector<128x128xf32>
    %c4 = arith.constant 4 : index
    %c0_78 = arith.constant 0 : index
    %390 = vector.load %arg2[%c4, %c0_78] : memref<144x512xf32, #tpu.memory_space<vmem>>, vector<1x128xf32>
    %cst_79 = arith.constant dense<0.000000e+00> : vector<8x128xf32>
    %391 = tpu.matmul %386, %387, %cst_79 {dimension_numbers = #tpu.dot_dimension_numbers<[1], [0], [0], [1], [0, 0, 1, 1], [], []>} : vector<8x128xf32>, vector<128x128xf32>, vector<8x128xf32> -> vector<8x128xf32>
    %392 = vector.broadcast %388 : vector<1x128xf32> to vector<8x128xf32>
    %393 = arith.addf %391, %392 : vector<8x128xf32>
    %cst_80 = arith.constant 0.000000e+00 : f32
    %394 = vector.broadcast %cst_80 : f32 to vector<8x128xf32>
    %395 = arith.maximumf %393, %394 : vector<8x128xf32>
    %cst_81 = arith.constant dense<0.000000e+00> : vector<8x128xf32>
    %396 = tpu.matmul %395, %389, %cst_81 {dimension_numbers = #tpu.dot_dimension_numbers<[1], [0], [0], [1], [0, 0, 1, 1], [], []>} : vector<8x128xf32>, vector<128x128xf32>, vector<8x128xf32> -> vector<8x128xf32>
    %397 = vector.broadcast %390 : vector<1x128xf32> to vector<8x128xf32>
    %398 = arith.addf %396, %397 : vector<8x128xf32>
    %399 = arith.negf %398 : vector<8x128xf32>
    %400 = math.exp %399 : vector<8x128xf32>
    %cst_82 = arith.constant 1.000000e+00 : f32
    %401 = vector.broadcast %cst_82 : f32 to vector<8x128xf32>
    %402 = arith.addf %401, %400 : vector<8x128xf32>
    %403 = arith.divf %401, %402 : vector<8x128xf32>
    %c0_83 = arith.constant 0 : index
    %c0_84 = arith.constant 0 : index
    %404 = vector.load %arg3[%c0_83, %c0_84] : memref<8x128xf32, #tpu.memory_space<vmem>>, vector<8x128xf32>
    tpu.vector_store %arg3[%c0_83, %c0_84], %403 {strides = array<i32>} : memref<8x128xf32, #tpu.memory_space<vmem>>, vector<8x128xf32>,
    return
  }
}

</mosaic_0001>

<bundles_post_ra>
// kernel: hybrid_forward.1
= control target key start
LH: loop header
LB: loop body
LE: loop exit
PB: predicated region body
PF: predicated region fallthrough
CT: control target
= control target key end

     0   :  { %vm33_vm0 = vcmask 64512   ;;  %v7627_v35 = vmov 0   ;;  %vm373_vm1 = vcmask 523264   ;;  %vm4854_vm2 = vmmov 0   ;;  %s7623_s2 = inlined_call_operand.vmem [shape: f32[144,512], index: 2, kind: input, shape index: {}]   ;;  %s7624_s0 = inlined_call_operand.vmem [shape: f32[128,8], index: 0, kind: input, shape index: {}]   ;;  %s7625_s1 = inlined_call_operand.vmem [shape: bf16[448,512], index: 1, kind: input, shape index: {}]   ;;  %s7626_s3 = inlined_call_operand.vmem [shape: f32[8,128], index: 3, kind: output, shape index: {}]  }
   0x1   :  { %v15_v0 = vld [vmem:[%s7623_s2 + $0x20] sm:$0xff]  ;;  %v18_v3 = vld [vmem:[%s7624_s0 + $0x8] sm:$0xff]  ;;  %v19_v5 = vld [vmem:[%s7624_s0 + $0x10] sm:$0xff] }
   0x2   :  { %v17_v1 = vld [vmem:[%s7624_s0] sm:$0xff]  ;;  %4082 = vmatprep.subr.mxu0 %v15_v0  ;;  %4226 = vmatprep.subr.mxu1 %v15_v0  ;;  %v26_v4 = vld [vmem:[%s7624_s0 + $0x48] sm:$0xff]  ;;  %v27_v6 = vld [vmem:[%s7624_s0 + $0x50] sm:$0xff] }
   0x3   :  { %v25_v2 = vld [vmem:[%s7624_s0 + $0x40] sm:$0xff]  ;;  %4083 = vmatpush3.msra.mxu0 %v15_v0  ;;  %4227 = vmatpush3.msra.mxu1 %v15_v0  ;;  %v20_v7 = vld [vmem:[%s7624_s0 + $0x18] sm:$0xff]  ;;  %v22_v13 = vld [vmem:[%s7624_s0 + $0x28] sm:$0xff] }
   0x4   :  { %4084 = vmatprep.mubr.msk.f32.mxu0 %vm33_vm0, %v17_v1  ;;  %4096 = vmatprep.mubr.msk.f32.mxu1 %vm33_vm0, %v25_v2  ;;  %v28_v8 = vld [vmem:[%s7624_s0 + $0x58] sm:$0xff]  ;;  %v21_v9 = vld [vmem:[%s7624_s0 + $0x20] sm:$0xff]  ;;  %v30_v14 = vld [vmem:[%s7624_s0 + $0x68] sm:$0xff] }
   0x5   :  { %4085 = vmatmul.mubr.msk.f32.vlgmr.msra.gmra.mrb[0].mxu0 %vm33_vm0, %v18_v3  ;;  %4097 = vmatmul.mubr.msk.f32.vlgmr.msra.gmra.mrb[0].mxu1 %vm33_vm0, %v26_v4  ;;  %v29_v10 = vld [vmem:[%s7624_s0 + $0x60] sm:$0xff]  ;;  %v4235_v15 = vld [vmem:[%s7625_s1 + $0x8] ss:$16 sps:$4 sm:$0xff]   ;;  %v23_v16 = vld [vmem:[%s7624_s0 + $0x30] sm:$0xff] }
   0x6   :  { %4087 = vmatprep.mubr.msk.f32.mxu0 %vm33_vm0, %v19_v5  ;;  %4099 = vmatprep.mubr.msk.f32.mxu1 %vm33_vm0, %v27_v6  ;;  %v4232_v11 = vld [vmem:[%s7625_s1] ss:$16 sps:$4 sm:$0xff]   ;;  %v4234_v12 = vld [vmem:[%s7625_s1 + $0x4] ss:$16 sps:$4 sm:$0xff]   ;;  %v4237_v18 = vld [vmem:[%s7625_s1 + $0xc] ss:$16 sps:$4 sm:$0xff]  }
   0x7   :  { %v31_v17 = vld [vmem:[%s7624_s0 + $0x70] sm:$0xff]  ;;  %386 = vmatprep.subr.bf16.mxu1 %v4234_v12  ;;  %459 = vmatprep.subr.bf16.mxu0 %v4237_v18  ;;  %v4241_v21 = vld [vmem:[%s7625_s1 + $0x28] ss:$16 sps:$4 sm:$0xff]   ;;  %v4243_v22 = vld [vmem:[%s7625_s1 + $0x2c] ss:$16 sps:$4 sm:$0xff]  }
   0x8   :  { %v4238_v19 = vld [vmem:[%s7625_s1 + $0x20] ss:$16 sps:$4 sm:$0xff]   ;;  %v4240_v20 = vld [vmem:[%s7625_s1 + $0x24] ss:$16 sps:$4 sm:$0xff]   ;;  %v24_v23 = vld [vmem:[%s7624_s0 + $0x38] sm:$0xff]  ;;  %387 = vmatpush1.bf16.msra.mxu1 %v4232_v11  ;;  %460 = vmatpush1.bf16.msra.mxu0 %v4235_v15 }
   0x9   :  { %4088 = vmatmul.mubr.msk.f32.gmra.mrb[2].mxu0 %vm33_vm0, %v20_v7  ;;  %4100 = vmatmul.mubr.msk.f32.gmra.mrb[2].mxu1 %vm33_vm0, %v28_v8  ;;  %v32_v24 = vld [vmem:[%s7624_s0 + $0x78] sm:$0xff]  ;;  %v4246_v25 = vld [vmem:[%s7625_s1 + $0x44] ss:$16 sps:$4 sm:$0xff]   ;;  %v4244_v27 = vld [vmem:[%s7625_s1 + $0x40] ss:$16 sps:$4 sm:$0xff]  }
   0xa   :  { %4090 = vmatprep.mubr.msk.f32.mxu0 %vm33_vm0, %v21_v9  ;;  %4102 = vmatprep.mubr.msk.f32.mxu1 %vm33_vm0, %v29_v10  ;;  %v4249_v26 = vld [vmem:[%s7625_s1 + $0x4c] ss:$16 sps:$4 sm:$0xff]   ;;  %v4247_v28 = vld [vmem:[%s7625_s1 + $0x48] ss:$16 sps:$4 sm:$0xff]   ;;  %v4252_v29 = vld [vmem:[%s7625_s1 + $0x64] ss:$16 sps:$4 sm:$0xff]  }
   0xb   :  { %388 = vmatprep.subr.bf16.mxu1 %v4240_v20  ;;  %461 = vmatprep.subr.bf16.mxu0 %v4243_v22  ;;  %v4255_v30 = vld [vmem:[%s7625_s1 + $0x6c] ss:$16 sps:$4 sm:$0xff]   ;;  %v4250_v31 = vld [vmem:[%s7625_s1 + $0x60] ss:$16 sps:$4 sm:$0xff]   ;;  %v4253_v32 = vld [vmem:[%s7625_s1 + $0x68] ss:$16 sps:$4 sm:$0xff]  }
   0xc   :  { %389 = vmatpush1.bf16.msra.mxu1 %v4238_v19  ;;  %462 = vmatpush1.bf16.msra.mxu0 %v4241_v21  ;;  %v4994_v33 = vld [vmem:[%s7625_s1 + $0x84] ss:$16 sps:$4 sm:$0xff]   ;;  %v4999_v34 = vld [vmem:[%s7625_s1 + $0x8c] ss:$16 sps:$4 sm:$0xff]   ;;  %v5008_v36 = vld [vmem:[%s7623_s2 + $0x2] ss:$0 sm:$0xff] }
   0xd   :  { %4091 = vmatmul.mubr.msk.f32.gmra.mrb[4].mxu0 %vm33_vm0, %v22_v13  ;;  %4103 = vmatmul.mubr.msk.f32.gmra.mrb[4].mxu1 %vm33_vm0, %v30_v14  ;;  %v5021_v59 = vld [vmem:[%s7625_s1 + $0x80] ss:$16 sps:$4 sm:$0xff]   ;;  %v5026_v62 = vld [vmem:[%s7625_s1 + $0x88] ss:$16 sps:$4 sm:$0xff]   ;;  %v5031_v63 = vld [vmem:[%s7625_s1 + $0xa4] ss:$16 sps:$4 sm:$0xff]  }
   0xe   :  { %4093 = vmatprep.mubr.msk.f32.mxu0 %vm33_vm0, %v23_v16  ;;  %4105 = vmatprep.mubr.msk.f32.mxu1 %vm33_vm0, %v31_v17  ;;  %v5036_v3 = vld [vmem:[%s7625_s1 + $0xac] ss:$16 sps:$4 sm:$0xff]   ;;  %v5045_v12 = vld [vmem:[%s7625_s1 + $0xa0] ss:$16 sps:$4 sm:$0xff]   ;;  %v5054_v17 = vld [vmem:[%s7625_s1 + $0xa8] ss:$16 sps:$4 sm:$0xff]  }
   0xf   :  { %390 = vmatprep.subr.bf16.mxu1 %v4246_v25  ;;  %463 = vmatprep.subr.bf16.mxu0 %v4249_v26  ;;  %v5059_v18 = vld [vmem:[%s7625_s1 + $0xc4] ss:$16 sps:$4 sm:$0xff]   ;;  %v5066_v22 = vld [vmem:[%s7625_s1 + $0xcc] ss:$16 sps:$4 sm:$0xff]  }
  0x10   :  { %391 = vmatpush1.bf16.msra.mxu1 %v4244_v27  ;;  %464 = vmatpush1.bf16.msra.mxu0 %v4247_v28 }
  0x11   :  { %4094 = vmatmul.mubr.msk.f32.gmra.mrb[6].mxu0 %vm33_vm0, %v24_v23  ;;  %4106 = vmatmul.mubr.msk.f32.gmra.mrb[6].mxu1 %vm33_vm0, %v32_v24 }
  0x12   :  { %392 = vmatprep.subr.bf16.mxu1 %v4252_v29  ;;  %465 = vmatprep.subr.bf16.mxu0 %v4255_v30 }
  0x13   :  { %418 = vmatprep.mubr.bf16.mxu1 %v7627_v35  ;;  %491 = vmatprep.mubr.bf16.mxu0 %v7627_v35 }
  0x14   :  { %393 = vmatpush1.bf16.msra.mxu1 %v4250_v31  ;;  %466 = vmatpush1.bf16.msra.mxu0 %v4253_v32 }
  0x15   :  { %829 = vmatprep.subr.bf16.mxu1 %v4994_v33  ;;  %870 = vmatprep.subr.bf16.mxu0 %v4999_v34 }
  0xd8   :  { %v4086_v37 = vpop.f32.mrb[0].mxu0  ;;  %v4098_v38 = vpop.f32.mrb[0].mxu1 }
  0xd9   :  { %v154_v39 = vadd.f32 %v4086_v37, %v5008_v36  ;;  %v194_v40 = vadd.f32 %v4098_v38, %v5008_v36  ;;  %v148_v41 = vpop.f32.mrb[1].mxu0  ;;  %v188_v42 = vpop.f32.mrb[1].mxu1  ;;  %v5079_v37 = vld [vmem:[%s7625_s1 + $0xc0] ss:$16 sps:$4 sm:$0xff]   ;;  %v5084_v38 = vld [vmem:[%s7625_s1 + $0xc8] ss:$16 sps:$4 sm:$0xff]  }
  0xda   :  { %v149_v43 = vadd.f32 %v148_v41, %v5008_v36  ;;  %v189_v44 = vadd.f32 %v188_v42, %v5008_v36  ;;  %v5096_v42 = vld [vmem:[%s7625_s1 + $0xec] ss:$16 sps:$4 sm:$0xff]  }
  0xdb   :  { %v228_v45 = vmax.f32 %v154_v39, 0.0  ;;  %v236_v46 = vmax.f32 %v194_v40, 0.0 }
  0xdc   :  { %v227_v47 = vmax.f32 %v149_v43, 0.0  ;;  %v235_v48 = vmax.f32 %v189_v44, 0.0  ;;  %v4089_v49 = vpop.f32.mrb[2].mxu0  ;;  %v4101_v50 = vpop.f32.mrb[2].mxu1 }
  0xdd   :  { %v244_v51 = vmax.f32 %v228_v45, %v236_v46  ;;  %v164_v52 = vadd.f32 %v4089_v49, %v5008_v36  ;;  %v204_v53 = vadd.f32 %v4101_v50, %v5008_v36  ;;  %v158_v54 = vpop.f32.mrb[3].mxu0  ;;  %v198_v55 = vpop.f32.mrb[3].mxu1  ;;  %v5117_v50 = vld [vmem:[%s7625_s1 + $0x104] ss:$16 sps:$4 sm:$0xff]  }
  0xde   :  { %v243_v56 = vmax.f32 %v227_v47, %v235_v48  ;;  %v159_v57 = vadd.f32 %v158_v54, %v5008_v36  ;;  %v199_v58 = vadd.f32 %v198_v55, %v5008_v36  ;;  %v5105_v47 = vld [vmem:[%s7625_s1 + $0xe0] ss:$16 sps:$4 sm:$0xff]   ;;  %v5110_v48 = vld [vmem:[%s7625_s1 + $0xe8] ss:$16 sps:$4 sm:$0xff]   ;;  %v5143_v54 = vld [vmem:[%s7625_s1 + $0x124] ss:$16 sps:$4 sm:$0xff]  }
  0xdf   :  { %v230_v60 = vmax.f32 %v164_v52, 0.0  ;;  %v238_v61 = vmax.f32 %v204_v53, 0.0  ;;  %v5131_v52 = vld [vmem:[%s7625_s1 + $0x100] ss:$16 sps:$4 sm:$0xff]   ;;  %v5136_v53 = vld [vmem:[%s7625_s1 + $0x108] ss:$16 sps:$4 sm:$0xff]  }
  0xe0   :  { %v268_v0 = vpack.c.bf16 %v244_v51, %v243_v56  ;;  %v229_v1 = vmax.f32 %v159_v57, 0.0  ;;  %v237_v2 = vmax.f32 %v199_v58, 0.0  ;;  %v4092_v4 = vpop.f32.mrb[4].mxu0  ;;  %v4104_v5 = vpop.f32.mrb[4].mxu1  ;;  %v5122_v51 = vld [vmem:[%s7625_s1 + $0x10c] ss:$16 sps:$4 sm:$0xff]  }
  0xe1   :  { %v246_v6 = vmax.f32 %v230_v60, %v238_v61  ;;  %v174_v7 = vadd.f32 %v4092_v4, %v5008_v36  ;;  %v214_v8 = vadd.f32 %v4104_v5, %v5008_v36  ;;  %v168_v9 = vpop.f32.mrb[5].mxu0  ;;  %v208_v10 = vpop.f32.mrb[5].mxu1  ;;  %v5148_v55 = vld [vmem:[%s7625_s1 + $0x12c] ss:$16 sps:$4 sm:$0xff]   ;;  %v5157_v56 = vld [vmem:[%s7625_s1 + $0x120] ss:$16 sps:$4 sm:$0xff]  }
  0xe2   :  { %v245_v11 = vmax.f32 %v229_v1, %v237_v2  ;;  %3877 = vmatmul.mubr.msk.bf16.vlgmr.msra.gmra.mrb[8].mxu1 %vm373_vm1, %v268_v0  ;;  %3881 = vmatmul.mubr.msk.bf16.vlgmr.msra.gmra.mrb[8].mxu0 %vm373_vm1, %v268_v0  ;;  %v169_v13 = vadd.f32 %v168_v9, %v5008_v36  ;;  %v209_v14 = vadd.f32 %v208_v10, %v5008_v36  ;;  %v5162_v57 = vld [vmem:[%s7625_s1 + $0x128] ss:$16 sps:$4 sm:$0xff]   ;;  %v5169_v58 = vld [vmem:[%s7625_s1 + $0x144] ss:$16 sps:$4 sm:$0xff]   ;;  %v5174_v60 = vld [vmem:[%s7625_s1 + $0x14c] ss:$16 sps:$4 sm:$0xff]  }
  0xe3   :  { %830 = vmatpush1.bf16.msra.mxu1 %v5021_v59  ;;  %871 = vmatpush1.bf16.msra.mxu0 %v5026_v62  ;;  %v232_v15 = vmax.f32 %v174_v7, 0.0  ;;  %v240_v16 = vmax.f32 %v214_v8, 0.0  ;;  %v5183_v61 = vld [vmem:[%s7625_s1 + $0x140] ss:$16 sps:$4 sm:$0xff]   ;;  %v5188_v0 = vld [vmem:[%s7625_s1 + $0x148] ss:$16 sps:$4 sm:$0xff]  }
  0xe4   :  { %v269_v19 = vpack.c.bf16 %v246_v6, %v245_v11  ;;  %831 = vmatprep.subr.bf16.mxu1 %v5031_v63  ;;  %872 = vmatprep.subr.bf16.mxu0 %v5036_v3  ;;  %v231_v20 = vmax.f32 %v169_v13, 0.0  ;;  %v239_v21 = vmax.f32 %v209_v14, 0.0  ;;  %v4095_v23 = vpop.f32.mrb[6].mxu0  ;;  %v4107_v24 = vpop.f32.mrb[6].mxu1  ;;  %v5195_v1 = vld [vmem:[%s7625_s1 + $0x164] ss:$16 sps:$4 sm:$0xff]  }
  0xe5   :  { %v248_v25 = vmax.f32 %v232_v15, %v240_v16  ;;  %428 = vmatprep.mubr.bf16.mxu1 %v7627_v35  ;;  %501 = vmatprep.mubr.bf16.mxu0 %v7627_v35  ;;  %v184_v26 = vadd.f32 %v4095_v23, %v5008_v36  ;;  %v224_v27 = vadd.f32 %v4107_v24, %v5008_v36  ;;  %v178_v28 = vpop.f32.mrb[7].mxu0  ;;  %v218_v29 = vpop.f32.mrb[7].mxu1  ;;  %v5200_v2 = vld [vmem:[%s7625_s1 + $0x16c] ss:$16 sps:$4 sm:$0xff]   ;;  %v5209_v4 = vld [vmem:[%s7625_s1 + $0x160] ss:$16 sps:$4 sm:$0xff]  }
  0xe6   :  { %v247_v30 = vmax.f32 %v231_v20, %v239_v21  ;;  %v179_v31 = vadd.f32 %v178_v28, %v5008_v36  ;;  %v219_v32 = vadd.f32 %v218_v29, %v5008_v36  ;;  %v5091_v36 = vld [vmem:[%s7625_s1 + $0xe4] ss:$16 sps:$4 sm:$0xff]   ;;  %v5214_v5 = vld [vmem:[%s7625_s1 + $0x168] ss:$16 sps:$4 sm:$0xff]   ;;  %v5235_v7 = vld [vmem:[%s7625_s1 + $0x280] ss:$16 sps:$4 sm:$0xff]  }
  0xe7   :  { %832 = vmatpush1.bf16.msra.mxu1 %v5045_v12  ;;  %873 = vmatpush1.bf16.msra.mxu0 %v5054_v17  ;;  %v234_v39 = vmax.f32 %v184_v26, 0.0  ;;  %v242_v40 = vmax.f32 %v224_v27, 0.0  ;;  %v5229_v6 = vld [vmem:[%s7625_s1 + $0x284] ss:$16 sps:$4 sm:$0xff]   ;;  %v5240_v8 = vld [vmem:[%s7625_s1 + $0x28c] ss:$16 sps:$4 sm:$0xff]  }
  0xe8   :  { %v270_v41 = vpack.c.bf16 %v248_v25, %v247_v30  ;;  %833 = vmatprep.subr.bf16.mxu1 %v5059_v18  ;;  %874 = vmatprep.subr.bf16.mxu0 %v5066_v22  ;;  %v233_v43 = vmax.f32 %v179_v31, 0.0  ;;  %v241_v44 = vmax.f32 %v219_v32, 0.0  ;;  %v5245_v9 = vld [vmem:[%s7625_s1 + $0x288] ss:$16 sps:$4 sm:$0xff]   ;;  %v5253_v10 = vld [vmem:[%s7625_s1 + $0x2a4] ss:$16 sps:$4 sm:$0xff]  }
  0xe9   :  { %v250_v45 = vmax.f32 %v234_v39, %v242_v40  ;;  %v5258_v11 = vld [vmem:[%s7625_s1 + $0x2a0] ss:$16 sps:$4 sm:$0xff]   ;;  %v5263_v13 = vld [vmem:[%s7625_s1 + $0x2ac] ss:$16 sps:$4 sm:$0xff]   ;;  %v5269_v14 = vld [vmem:[%s7625_s1 + $0x2a8] ss:$16 sps:$4 sm:$0xff]  }
  0xea   :  { %3878 = vmatmul.mubr.msk.bf16.gmra.mrb[12].mxu1 %vm373_vm1, %v269_v19  ;;  %3882 = vmatmul.mubr.msk.bf16.gmra.mrb[12].mxu0 %vm373_vm1, %v269_v19  ;;  %v249_v46 = vmax.f32 %v233_v43, %v241_v44  ;;  %7893 = vst [vmem:[#allocation3_spill] sm:$0xff] %v5269_v14  ;;  %v5276_v15 = vld [vmem:[%s7625_s1 + $0x2c4] ss:$16 sps:$4 sm:$0xff]   ;;  %v5283_v16 = vld [vmem:[%s7625_s1 + $0x2c0] ss:$16 sps:$4 sm:$0xff]  }
  0xeb   :  { %834 = vmatpush1.bf16.msra.mxu1 %v5079_v37  ;;  %875 = vmatpush1.bf16.msra.mxu0 %v5084_v38  ;;  %7894 = vst [vmem:[#allocation4_spill] sm:$0xff] %v5276_v15  ;;  %7895 = vst [vmem:[#allocation5_spill] sm:$0xff] %v5283_v16  ;;  %v5288_v19 = vld [vmem:[%s7625_s1 + $0x2cc] ss:$16 sps:$4 sm:$0xff]   ;;  %v5293_v20 = vld [vmem:[%s7625_s1 + $0x2c8] ss:$16 sps:$4 sm:$0xff]  }
  0xec   :  { %835 = vmatprep.subr.bf16.mxu1 %v5091_v36  ;;  %876 = vmatprep.subr.bf16.mxu0 %v5096_v42  ;;  %v271_v49 = vpack.c.bf16 %v250_v45, %v249_v46  ;;  %7896 = vst [vmem:[#allocation6_spill] sm:$0xff] %v5288_v19  ;;  %7897 = vst [vmem:[#allocation7_spill] sm:$0xff] %v5293_v20  ;;  %v5301_v21 = vld [vmem:[%s7625_s1 + $0x2e4] ss:$16 sps:$4 sm:$0xff]   ;;  %v5306_v23 = vld [vmem:[%s7625_s1 + $0x2e0] ss:$16 sps:$4 sm:$0xff]  }
  0xed   :  { %438 = vmatprep.mubr.bf16.mxu1 %v7627_v35  ;;  %511 = vmatprep.mubr.bf16.mxu0 %v7627_v35  ;;  %7898 = vst [vmem:[#allocation8_spill] sm:$0xff] %v5301_v21  ;;  %7899 = vst [vmem:[#allocation9_spill] sm:$0xff] %v5306_v23  ;;  %v5311_v24 = vld [vmem:[%s7625_s1 + $0x2ec] ss:$16 sps:$4 sm:$0xff]   ;;  %v5317_v25 = vld [vmem:[%s7625_s1 + $0x2e8] ss:$16 sps:$4 sm:$0xff]  }
  0xee   :  { %7900 = vst [vmem:[#allocation10_spill] sm:$0xff] %v5311_v24  ;;  %7901 = vst [vmem:[#allocation11_spill] sm:$0xff] %v5317_v25  ;;  %v5324_v26 = vld [vmem:[%s7625_s1 + $0x304] ss:$16 sps:$4 sm:$0xff]   ;;  %v5331_v27 = vld [vmem:[%s7625_s1 + $0x300] ss:$16 sps:$4 sm:$0xff]  }
  0xef   :  { %836 = vmatpush1.bf16.msra.mxu1 %v5105_v47  ;;  %877 = vmatpush1.bf16.msra.mxu0 %v5110_v48  ;;  %7902 = vst [vmem:[#allocation12_spill] sm:$0xff] %v5324_v26  ;;  %7903 = vst [vmem:[#allocation13_spill] sm:$0xff] %v5331_v27  ;;  %v5336_v28 = vld [vmem:[%s7625_s1 + $0x30c] ss:$16 sps:$4 sm:$0xff]   ;;  %v5341_v29 = vld [vmem:[%s7625_s1 + $0x308] ss:$16 sps:$4 sm:$0xff]  }
  0xf0   :  { %837 = vmatprep.subr.bf16.mxu1 %v5117_v50  ;;  %878 = vmatprep.subr.bf16.mxu0 %v5122_v51  ;;  %7904 = vst [vmem:[#allocation14_spill] sm:$0xff] %v5336_v28  ;;  %7905 = vst [vmem:[#allocation15_spill] sm:$0xff] %v5341_v29  ;;  %v5349_v30 = vld [vmem:[%s7625_s1 + $0x324] ss:$16 sps:$4 sm:$0xff]   ;;  %v5354_v31 = vld [vmem:[%s7625_s1 + $0x320] ss:$16 sps:$4 sm:$0xff]  }
  0xf1   :  { %7906 = vst [vmem:[#allocation16_spill] sm:$0xff] %v5349_v30  ;;  %7907 = vst [vmem:[#allocation17_spill] sm:$0xff] %v5354_v31  ;;  %v5359_v32 = vld [vmem:[%s7625_s1 + $0x32c] ss:$16 sps:$4 sm:$0xff]   ;;  %v5365_v39 = vld [vmem:[%s7625_s1 + $0x328] ss:$16 sps:$4 sm:$0xff]  }
  0xf2   :  { %3879 = vmatmul.mubr.msk.bf16.gmra.mrb[16].mxu1 %vm373_vm1, %v270_v41  ;;  %3883 = vmatmul.mubr.msk.bf16.gmra.mrb[16].mxu0 %vm373_vm1, %v270_v41  ;;  %7908 = vst [vmem:[#allocation18_spill] sm:$0xff] %v5359_v32  ;;  %7909 = vst [vmem:[#allocation19_spill] sm:$0xff] %v5365_v39  ;;  %v5373_v40 = vld [vmem:[%s7625_s1 + $0x344] ss:$16 sps:$4 sm:$0xff]   ;;  %v5378_v41 = vld [vmem:[%s7625_s1 + $0x340] ss:$16 sps:$4 sm:$0xff]  }
  0xf3   :  { %838 = vmatpush1.bf16.msra.mxu1 %v5131_v52  ;;  %879 = vmatpush1.bf16.msra.mxu0 %v5136_v53  ;;  %7910 = vst [vmem:[#allocation20_spill] sm:$0xff] %v5373_v40  ;;  %7911 = vst [vmem:[#allocation21_spill] sm:$0xff] %v5378_v41  ;;  %v5383_v43 = vld [vmem:[%s7625_s1 + $0x34c] ss:$16 sps:$4 sm:$0xff]   ;;  %v5389_v44 = vld [vmem:[%s7625_s1 + $0x348] ss:$16 sps:$4 sm:$0xff]  }
  0xf4   :  { %839 = vmatprep.subr.bf16.mxu1 %v5143_v54  ;;  %880 = vmatprep.subr.bf16.mxu0 %v5148_v55  ;;  %7912 = vst [vmem:[#allocation22_spill] sm:$0xff] %v5383_v43  ;;  %7913 = vst [vmem:[#allocation23_spill] sm:$0xff] %v5389_v44  ;;  %v5397_v45 = vld [vmem:[%s7625_s1 + $0x364] ss:$16 sps:$4 sm:$0xff]   ;;  %v5402_v46 = vld [vmem:[%s7625_s1 + $0x360] ss:$16 sps:$4 sm:$0xff]  }
  0xf5   :  { %448 = vmatprep.mubr.bf16.mxu1 %v7627_v35  ;;  %521 = vmatprep.mubr.bf16.mxu0 %v7627_v35  ;;  %7914 = vst [vmem:[#allocation24_spill] sm:$0xff] %v5397_v45  ;;  %7915 = vst [vmem:[#allocation25_spill] sm:$0xff] %v5402_v46 }
  0xf7   :  { %840 = vmatpush1.bf16.msra.mxu1 %v5157_v56  ;;  %881 = vmatpush1.bf16.msra.mxu0 %v5162_v57 }
  0xf8   :  { %841 = vmatprep.subr.bf16.mxu1 %v5169_v58  ;;  %882 = vmatprep.subr.bf16.mxu0 %v5174_v60 }
  0xfa   :  { %3880 = vmatmul.mubr.msk.bf16.gmra.mrb[20].mxu1 %vm373_vm1, %v271_v49  ;;  %3884 = vmatmul.mubr.msk.bf16.gmra.mrb[20].mxu0 %vm373_vm1, %v271_v49  ;;  %v5407_v49 = vld [vmem:[%s7625_s1 + $0x36c] ss:$16 sps:$4 sm:$0xff]  }
  0xfb   :  { %842 = vmatpush1.bf16.msra.mxu1 %v5183_v61  ;;  %883 = vmatpush1.bf16.msra.mxu0 %v5188_v0  ;;  %7916 = vst [vmem:[#allocation26_spill] sm:$0xff] %v5407_v49 }
  0xfc   :  { %843 = vmatprep.subr.bf16.mxu1 %v5195_v1  ;;  %884 = vmatprep.subr.bf16.mxu0 %v5200_v2 }
  0xfd   :  { %861 = vmatprep.mubr.bf16.mxu1 %v7627_v35  ;;  %902 = vmatprep.mubr.bf16.mxu0 %v7627_v35 }
  0xff   :  { %844 = vmatpush1.bf16.msra.mxu1 %v5209_v4  ;;  %885 = vmatpush1.bf16.msra.mxu0 %v5214_v5 }
 0x100   :  { %1100 = vmatprep.subr.bf16.mxu1 %v5229_v6  ;;  %1141 = vmatprep.subr.bf16.mxu0 %v5240_v8 }
 0x102   :  { %862 = vmatmul.mubr.bf16.vlgmr.msra.gmra.mrb[24].mxu1 %v7627_v35  ;;  %903 = vmatmul.mubr.bf16.vlgmr.msra.gmra.mrb[24].mxu0 %v7627_v35 }
 0x103   :  { %1132 = vmatprep.mubr.bf16.mxu1 %v7627_v35  ;;  %1173 = vmatprep.mubr.bf16.mxu0 %v7627_v35  ;;  %v5413_v35 = vld [vmem:[%s7625_s1 + $0x368] ss:$16 sps:$4 sm:$0xff]  }
 0x104   :  { %1101 = vmatpush1.bf16.msra.mxu1 %v5235_v7  ;;  %1142 = vmatpush1.bf16.msra.mxu0 %v5245_v9  ;;  %7917 = vst [vmem:[#allocation27_spill] sm:$0xff] %v5413_v35 }
 0x105   :  { %1102 = vmatprep.subr.bf16.mxu1 %v5253_v10  ;;  %1143 = vmatprep.subr.bf16.mxu0 %v5263_v13 }
 0x108   :  { %1103 = vmatpush1.bf16.msra.mxu1 %v5258_v11  ;;  %1144 = vmatpush1.bf16.msra.mxu0 %v5269_v14 }
 0x109   :  { %1104 = vmatprep.subr.bf16.mxu1 %v5276_v15  ;;  %1145 = vmatprep.subr.bf16.mxu0 %v5288_v19 }
 0x10c   :  { %1105 = vmatpush1.bf16.msra.mxu1 %v5283_v16  ;;  %1146 = vmatpush1.bf16.msra.mxu0 %v5293_v20 }
 0x10d   :  { %1106 = vmatprep.subr.bf16.mxu1 %v5301_v21  ;;  %1147 = vmatprep.subr.bf16.mxu0 %v5311_v24 }
 0x110   :  { %1107 = vmatpush1.bf16.msra.mxu1 %v5306_v23  ;;  %1148 = vmatpush1.bf16.msra.mxu0 %v5317_v25 }
 0x111   :  { %1108 = vmatprep.subr.bf16.mxu1 %v5324_v26  ;;  %1149 = vmatprep.subr.bf16.mxu0 %v5336_v28 }
 0x114   :  { %1109 = vmatpush1.bf16.msra.mxu1 %v5331_v27  ;;  %1150 = vmatpush1.bf16.msra.mxu0 %v5341_v29 }
 0x115   :  { %1110 = vmatprep.subr.bf16.mxu1 %v5349_v30  ;;  %1151 = vmatprep.subr.bf16.mxu0 %v5359_v32 }
 0x118   :  { %1111 = vmatpush1.bf16.msra.mxu1 %v5354_v31  ;;  %1152 = vmatpush1.bf16.msra.mxu0 %v5365_v39  ;;  %v5585_v39 = vld [vmem:[%s7625_s1 + $0x248] ss:$16 sps:$4 sm:$0xff]  }
 0x119   :  { %1112 = vmatprep.subr.bf16.mxu1 %v5373_v40  ;;  %1153 = vmatprep.subr.bf16.mxu0 %v5383_v43  ;;  %v5452_v43 = vld [vmem:[%s7625_s1 + $0x1ac] ss:$16 sps:$4 sm:$0xff]   ;;  %v5578_v40 = vld [vmem:[%s7625_s1 + $0x240] ss:$16 sps:$4 sm:$0xff]   ;;  %7946 = vst [vmem:[#allocation55_spill] sm:$0xff] %v5585_v39 }
 0x11a   :  { %7924 = vst [vmem:[#allocation33_spill] sm:$0xff] %v5452_v43  ;;  %7945 = vst [vmem:[#allocation54_spill] sm:$0xff] %v5578_v40 }
 0x11c   :  { %1113 = vmatpush1.bf16.msra.mxu1 %v5378_v41  ;;  %1154 = vmatpush1.bf16.msra.mxu0 %v5389_v44  ;;  %v5421_v44 = vld [vmem:[%s7625_s1 + $0x184] ss:$16 sps:$4 sm:$0xff]   ;;  %v7920_v41 = vmov 0  }
 0x11d   :  { %1114 = vmatprep.subr.bf16.mxu1 %v5397_v45  ;;  %1155 = vmatprep.subr.bf16.mxu0 %v5407_v49  ;;  %7918 = vst [vmem:[#allocation28_spill] sm:$0xff] %v5421_v44  ;;  %v5426_v45 = vld [vmem:[%s7625_s1 + $0x18c] ss:$16 sps:$4 sm:$0xff]   ;;  %v5447_v49 = vld [vmem:[%s7625_s1 + $0x1a4] ss:$16 sps:$4 sm:$0xff]  }
 0x11e   :  { %7919 = vst [vmem:[#allocation29_spill] sm:$0xff] %v5426_v45  ;;  %7923 = vst [vmem:[#allocation32_spill] sm:$0xff] %v5447_v49 }
 0x120   :  { %1115 = vmatpush1.bf16.msra.mxu1 %v5402_v46  ;;  %1156 = vmatpush1.bf16.msra.mxu0 %v5413_v35  ;;  %v5432_v46 = vld [vmem:[%s7625_s1 + $0x180] ss:$16 sps:$4 sm:$0xff]   ;;  %v5437_v35 = vld [vmem:[%s7625_s1 + $0x188] ss:$16 sps:$4 sm:$0xff]  }
 0x121   :  { %7921 = vst [vmem:[#allocation30_spill] sm:$0xff] %v5432_v46  ;;  %7922 = vst [vmem:[#allocation31_spill] sm:$0xff] %v5437_v35  ;;  %1342 = vmatprep.subr.bf16.mxu1 %v5421_v44  ;;  %1383 = vmatprep.subr.bf16.mxu0 %v5426_v45  ;;  %v5458_v45 = vld [vmem:[%s7625_s1 + $0x1a0] ss:$16 sps:$4 sm:$0xff]   ;;  %v5478_v44 = vld [vmem:[%s7625_s1 + $0x1cc] ss:$16 sps:$4 sm:$0xff]  }
 0x122   :  { %7925 = vst [vmem:[#allocation34_spill] sm:$0xff] %v5458_v45  ;;  %7928 = vst [vmem:[#allocation37_spill] sm:$0xff] %v5478_v44 }
 0x123   :  { %1133 = vmatmul.mubr.bf16.vlgmr.msra.gmra.mrb[28].mxu1 %v7920_v41  ;;  %1174 = vmatmul.mubr.bf16.vlgmr.msra.gmra.mrb[28].mxu0 %v7920_v41 }
 0x124   :  { %1343 = vmatpush1.bf16.msra.mxu1 %v5432_v46  ;;  %1384 = vmatpush1.bf16.msra.mxu0 %v5437_v35  ;;  %v5463_v35 = vld [vmem:[%s7625_s1 + $0x1a8] ss:$16 sps:$4 sm:$0xff]   ;;  %v5473_v46 = vld [vmem:[%s7625_s1 + $0x1c4] ss:$16 sps:$4 sm:$0xff]  }
 0x125   :  { %1374 = vmatprep.mubr.bf16.mxu1 %v7920_v41  ;;  %7926 = vst [vmem:[#allocation35_spill] sm:$0xff] %v5463_v35  ;;  %1415 = vmatprep.mubr.bf16.mxu0 %v7920_v41  ;;  %7927 = vst [vmem:[#allocation36_spill] sm:$0xff] %v5473_v46 }
 0x126   :  { %1344 = vmatprep.subr.bf16.mxu1 %v5447_v49  ;;  %1385 = vmatprep.subr.bf16.mxu0 %v5452_v43  ;;  %v5483_v49 = vld [vmem:[%s7625_s1 + $0x1c0] ss:$16 sps:$4 sm:$0xff]   ;;  %v5502_v43 = vld [vmem:[%s7625_s1 + $0x1ec] ss:$16 sps:$4 sm:$0xff]  }
 0x127   :  { %7929 = vst [vmem:[#allocation38_spill] sm:$0xff] %v5483_v49  ;;  %7932 = vst [vmem:[#allocation41_spill] sm:$0xff] %v5502_v43 }
 0x128   :  { %1345 = vmatpush1.bf16.msra.mxu1 %v5458_v45  ;;  %1386 = vmatpush1.bf16.msra.mxu0 %v5463_v35  ;;  %v5488_v45 = vld [vmem:[%s7625_s1 + $0x1c8] ss:$16 sps:$4 sm:$0xff]   ;;  %v5497_v35 = vld [vmem:[%s7625_s1 + $0x1e4] ss:$16 sps:$4 sm:$0xff]  }
 0x129   :  { %7930 = vst [vmem:[#allocation39_spill] sm:$0xff] %v5488_v45  ;;  %1346 = vmatprep.subr.bf16.mxu1 %v5473_v46  ;;  %1387 = vmatprep.subr.bf16.mxu0 %v5478_v44  ;;  %7931 = vst [vmem:[#allocation40_spill] sm:$0xff] %v5497_v35  ;;  %v5507_v46 = vld [vmem:[%s7625_s1 + $0x1e0] ss:$16 sps:$4 sm:$0xff]   ;;  %v5526_v44 = vld [vmem:[%s7625_s1 + $0x20c] ss:$16 sps:$4 sm:$0xff]  }
 0x12a   :  { %7933 = vst [vmem:[#allocation42_spill] sm:$0xff] %v5507_v46  ;;  %7936 = vst [vmem:[#allocation45_spill] sm:$0xff] %v5526_v44 }
 0x12c   :  { %1347 = vmatpush1.bf16.msra.mxu1 %v5483_v49  ;;  %1388 = vmatpush1.bf16.msra.mxu0 %v5488_v45  ;;  %v5512_v49 = vld [vmem:[%s7625_s1 + $0x1e8] ss:$16 sps:$4 sm:$0xff]   ;;  %v5521_v45 = vld [vmem:[%s7625_s1 + $0x204] ss:$16 sps:$4 sm:$0xff]  }
 0x12d   :  { %7934 = vst [vmem:[#allocation43_spill] sm:$0xff] %v5512_v49  ;;  %1348 = vmatprep.subr.bf16.mxu1 %v5497_v35  ;;  %1389 = vmatprep.subr.bf16.mxu0 %v5502_v43  ;;  %7935 = vst [vmem:[#allocation44_spill] sm:$0xff] %v5521_v45  ;;  %v5531_v35 = vld [vmem:[%s7625_s1 + $0x200] ss:$16 sps:$4 sm:$0xff]   ;;  %v5550_v43 = vld [vmem:[%s7625_s1 + $0x22c] ss:$16 sps:$4 sm:$0xff]  }
 0x12e   :  { %7937 = vst [vmem:[#allocation46_spill] sm:$0xff] %v5531_v35  ;;  %7940 = vst [vmem:[#allocation49_spill] sm:$0xff] %v5550_v43 }
 0x130   :  { %1349 = vmatpush1.bf16.msra.mxu1 %v5507_v46  ;;  %1390 = vmatpush1.bf16.msra.mxu0 %v5512_v49  ;;  %v5536_v46 = vld [vmem:[%s7625_s1 + $0x208] ss:$16 sps:$4 sm:$0xff]   ;;  %v5545_v49 = vld [vmem:[%s7625_s1 + $0x224] ss:$16 sps:$4 sm:$0xff]  }
 0x131   :  { %7938 = vst [vmem:[#allocation47_spill] sm:$0xff] %v5536_v46  ;;  %1350 = vmatprep.subr.bf16.mxu1 %v5521_v45  ;;  %1391 = vmatprep.subr.bf16.mxu0 %v5526_v44  ;;  %7939 = vst [vmem:[#allocation48_spill] sm:$0xff] %v5545_v49  ;;  %v5555_v45 = vld [vmem:[%s7625_s1 + $0x220] ss:$16 sps:$4 sm:$0xff]   ;;  %v5570_v44 = vld [vmem:[%s7625_s1 + $0x24c] ss:$16 sps:$4 sm:$0xff]  }
 0x132   :  { %7941 = vst [vmem:[#allocation50_spill] sm:$0xff] %v5555_v45  ;;  %7944 = vst [vmem:[#allocation53_spill] sm:$0xff] %v5570_v44 }
 0x134   :  { %1351 = vmatpush1.bf16.msra.mxu1 %v5531_v35  ;;  %1392 = vmatpush1.bf16.msra.mxu0 %v5536_v46  ;;  %v5560_v35 = vld [vmem:[%s7625_s1 + $0x228] ss:$16 sps:$4 sm:$0xff]   ;;  %v5565_v46 = vld [vmem:[%s7625_s1 + $0x244] ss:$16 sps:$4 sm:$0xff]  }
 0x135   :  { %7942 = vst [vmem:[#allocation51_spill] sm:$0xff] %v5560_v35  ;;  %7943 = vst [vmem:[#allocation52_spill] sm:$0xff] %v5565_v46  ;;  %1352 = vmatprep.subr.bf16.mxu1 %v5545_v49  ;;  %1393 = vmatprep.subr.bf16.mxu0 %v5550_v43  ;;  %v5590_v43 = vld [vmem:[%s7625_s1 + $0x264] ss:$16 sps:$4 sm:$0xff]  }
 0x136   :  { %7947 = vst [vmem:[#allocation56_spill] sm:$0xff] %v5590_v43  ;;  %v267_v49 = vld [vmem:[%s7623_s2] ss:$8 sm:$0xf] }
 0x138   :  { %1353 = vmatpush1.bf16.msra.mxu1 %v5555_v45  ;;  %1394 = vmatpush1.bf16.msra.mxu0 %v5560_v35  ;;  %v5596_v45 = vld [vmem:[%s7625_s1 + $0x26c] ss:$16 sps:$4 sm:$0xff]  }
 0x139   :  { %1354 = vmatprep.subr.bf16.mxu1 %v5565_v46  ;;  %1395 = vmatprep.subr.bf16.mxu0 %v5570_v44  ;;  %7948 = vst [vmem:[#allocation57_spill] sm:$0xff] %v5596_v45  ;;  %v5602_v46 = vld [vmem:[%s7625_s1 + $0x260] ss:$16 sps:$4 sm:$0xff]   ;;  %v5609_v44 = vld [vmem:[%s7625_s1 + $0x268] ss:$16 sps:$4 sm:$0xff]  }
 0x13a   :  { %7949 = vst [vmem:[#allocation58_spill] sm:$0xff] %v5602_v46  ;;  %7950 = vst [vmem:[#allocation59_spill] sm:$0xff] %v5609_v44 }
 0x13c   :  { %1355 = vmatpush1.bf16.msra.mxu1 %v5578_v40  ;;  %1396 = vmatpush1.bf16.msra.mxu0 %v5585_v39  ;;  %v273_v40 = vlaneseq }
 0x13d   :  { %1356 = vmatprep.subr.bf16.mxu1 %v5590_v43  ;;  %1397 = vmatprep.subr.bf16.mxu0 %v5596_v45 }
 0x13e   :  { %v5616_v35 = vshrl.u32 %v273_v40, 7 }
 0x140   :  { %1357 = vmatpush1.bf16.msra.mxu1 %v5602_v46  ;;  %1398 = vmatpush1.bf16.msra.mxu0 %v5609_v44  ;;  %7951 = vst [vmem:[#allocation60_spill] sm:$0xff] %v5616_v35  ;;  %v7701_v43 = vsub.s32 0, %v5616_v35  ;;  %v7704_v39 = vsub.s32 2, %v5616_v35  ;;  %v7709_v45 = vsub.s32 1, %v5616_v35  ;;  %v7712_v46 = vsub.s32 3, %v5616_v35 }
 0x141   :  { %1481 = vmatprep.subr.bf16.mxu1 %v4994_v33  ;;  %1522 = vmatprep.subr.bf16.mxu0 %v4999_v34 }
 0x142   :  { %v276_v34 = vrot.slane %v267_v49, %v7701_v43  ;;  %v284_v40 = vrot.slane %v267_v49, %v7704_v39  ;;  %v280_v30 = vrot.slane %v267_v49, %v7709_v45  ;;  %v288_v29 = vrot.slane %v267_v49, %v7712_v46 }
 0x1b5   :  { %v5625_v44 = vpop.f32.mrb[8].mxu1  ;;  %v5627_v33 = vpop.f32.mrb[8].mxu0 }
 0x1b6   :  { %v422_v31 = vpop.f32.mrb[9].mxu1  ;;  %v495_v32 = vpop.f32.mrb[9].mxu0 }
 0x1b7   :  { %v424_v27 = vpop.f32.mrb[10].mxu1  ;;  %v497_v28 = vpop.f32.mrb[10].mxu0 }
 0x1b8   :  { %v5637_v26 = vadd.f32 %v424_v27, %v276_v34  ;;  %v5639_v25 = vadd.f32 %v497_v28, %v284_v40  ;;  %v426_v23 = vpop.f32.mrb[11].mxu1  ;;  %v499_v24 = vpop.f32.mrb[11].mxu0 }
 0x1b9   :  { %v5641_v43 = vadd.f32 %v426_v23, %v280_v30  ;;  %v5643_v21 = vadd.f32 %v499_v24, %v288_v29 }
 0x1ba   :  { %7952 = vst [vmem:[#allocation61_spill] sm:$0xff] %v5637_v26  ;;  %7953 = vst [vmem:[#allocation62_spill] sm:$0xff] %v5639_v25 }
 0x1bb   :  { %7954 = vst [vmem:[#allocation63_spill] sm:$0xff] %v5641_v43  ;;  %7955 = vst [vmem:[#allocation64_spill] sm:$0xff] %v5643_v21 }
 0x1bd   :  { %v430_v39 = vpop.f32.mrb[12].mxu1  ;;  %v503_v20 = vpop.f32.mrb[12].mxu0 }
 0x1be   :  { %v5645_v16 = vadd.f32 %v430_v39, %v276_v34  ;;  %v5647_v45 = vadd.f32 %v503_v20, %v284_v40  ;;  %v432_v35 = vpop.f32.mrb[13].mxu1  ;;  %v505_v49 = vpop.f32.mrb[13].mxu0 }
 0x1bf   :  { %v5649_v46 = vadd.f32 %v432_v35, %v280_v30  ;;  %v5651_v27 = vadd.f32 %v505_v49, %v288_v29  ;;  %v434_v28 = vpop.f32.mrb[14].mxu1  ;;  %v507_v25 = vpop.f32.mrb[14].mxu0 }
 0x1c0   :  { %7956 = vst [vmem:[#allocation65_spill] sm:$0xff] %v5645_v16  ;;  %7957 = vst [vmem:[#allocation66_spill] sm:$0xff] %v5647_v45  ;;  %v5653_v26 = vadd.f32 %v434_v28, %v276_v34  ;;  %v5655_v23 = vadd.f32 %v507_v25, %v284_v40  ;;  %v436_v24 = vpop.f32.mrb[15].mxu1  ;;  %v509_v21 = vpop.f32.mrb[15].mxu0 }
 0x1c1   :  { %7958 = vst [vmem:[#allocation67_spill] sm:$0xff] %v5649_v46  ;;  %7959 = vst [vmem:[#allocation68_spill] sm:$0xff] %v5651_v27  ;;  %v5657_v43 = vadd.f32 %v436_v24, %v280_v30  ;;  %v5659_v39 = vadd.f32 %v509_v21, %v288_v29 }
 0x1c2   :  { %7960 = vst [vmem:[#allocation69_spill] sm:$0xff] %v5653_v26  ;;  %7961 = vst [vmem:[#allocation70_spill] sm:$0xff] %v5655_v23 }
 0x1c3   :  { %7962 = vst [vmem:[#allocation71_spill] sm:$0xff] %v5657_v43  ;;  %7963 = vst [vmem:[#allocation72_spill] sm:$0xff] %v5659_v39 }
 0x1c5   :  { %v440_v20 = vpop.f32.mrb[16].mxu1  ;;  %v513_v45 = vpop.f32.mrb[16].mxu0 }
 0x1c6   :  { %v5661_v16 = vadd.f32 %v440_v20, %v276_v34  ;;  %v5663_v35 = vadd.f32 %v513_v45, %v284_v40  ;;  %v442_v49 = vpop.f32.mrb[17].mxu1  ;;  %v515_v27 = vpop.f32.mrb[17].mxu0 }
 0x1c7   :  { %v5665_v46 = vadd.f32 %v442_v49, %v280_v30  ;;  %v5667_v28 = vadd.f32 %v515_v27, %v288_v29  ;;  %v444_v25 = vpop.f32.mrb[18].mxu1  ;;  %v517_v23 = vpop.f32.mrb[18].mxu0 }
 0x1c8   :  { %7964 = vst [vmem:[#allocation73_spill] sm:$0xff] %v5661_v16  ;;  %7965 = vst [vmem:[#allocation74_spill] sm:$0xff] %v5663_v35  ;;  %v5669_v26 = vadd.f32 %v444_v25, %v276_v34  ;;  %v5671_v24 = vadd.f32 %v517_v23, %v284_v40  ;;  %v446_v21 = vpop.f32.mrb[19].mxu1  ;;  %v519_v39 = vpop.f32.mrb[19].mxu0 }
 0x1c9   :  { %7966 = vst [vmem:[#allocation75_spill] sm:$0xff] %v5665_v46  ;;  %7967 = vst [vmem:[#allocation76_spill] sm:$0xff] %v5667_v28  ;;  %v5673_v43 = vadd.f32 %v446_v21, %v280_v30  ;;  %v5675_v20 = vadd.f32 %v519_v39, %v288_v29 }
 0x1ca   :  { %7968 = vst [vmem:[#allocation77_spill] sm:$0xff] %v5669_v26  ;;  %7969 = vst [vmem:[#allocation78_spill] sm:$0xff] %v5671_v24 }
 0x1cb   :  { %7970 = vst [vmem:[#allocation79_spill] sm:$0xff] %v5673_v43  ;;  %7971 = vst [vmem:[#allocation80_spill] sm:$0xff] %v5675_v20 }
 0x1cd   :  { %v450_v45 = vpop.f32.mrb[20].mxu1  ;;  %v523_v35 = vpop.f32.mrb[20].mxu0 }
 0x1ce   :  { %v5677_v16 = vadd.f32 %v450_v45, %v276_v34  ;;  %v5679_v49 = vadd.f32 %v523_v35, %v284_v40  ;;  %v452_v27 = vpop.f32.mrb[21].mxu1  ;;  %v525_v28 = vpop.f32.mrb[21].mxu0  ;;  %v421_v35 = vadd.f32 %v5625_v44, %v276_v34 }
 0x1cf   :  { %v5681_v46 = vadd.f32 %v452_v27, %v280_v30  ;;  %v5683_v25 = vadd.f32 %v525_v28, %v288_v29  ;;  %v454_v23 = vpop.f32.mrb[22].mxu1  ;;  %v527_v24 = vpop.f32.mrb[22].mxu0  ;;  %v423_v27 = vadd.f32 %v422_v31, %v280_v30 }
 0x1d0   :  { %7972 = vst [vmem:[#allocation81_spill] sm:$0xff] %v5677_v16  ;;  %7973 = vst [vmem:[#allocation82_spill] sm:$0xff] %v5679_v49  ;;  %v5685_v26 = vadd.f32 %v454_v23, %v276_v34  ;;  %v5687_v21 = vadd.f32 %v527_v24, %v284_v40  ;;  %v456_v39 = vpop.f32.mrb[23].mxu1  ;;  %v529_v20 = vpop.f32.mrb[23].mxu0  ;;  %v494_v49 = vadd.f32 %v5627_v33, %v284_v40 }
 0x1d1   :  { %7974 = vst [vmem:[#allocation83_spill] sm:$0xff] %v5681_v46  ;;  %7975 = vst [vmem:[#allocation84_spill] sm:$0xff] %v5683_v25  ;;  %v5689_v43 = vadd.f32 %v456_v39, %v280_v30  ;;  %v5691_v45 = vadd.f32 %v529_v20, %v288_v29  ;;  %v496_v46 = vadd.f32 %v495_v32, %v288_v29 }
 0x1d2   :  { %7976 = vst [vmem:[#allocation85_spill] sm:$0xff] %v5685_v26  ;;  %7977 = vst [vmem:[#allocation86_spill] sm:$0xff] %v5687_v21 }
 0x1d3   :  { %7978 = vst [vmem:[#allocation87_spill] sm:$0xff] %v5689_v43  ;;  %7979 = vst [vmem:[#allocation88_spill] sm:$0xff] %v5691_v45 }
 0x1d5   :  { %v863_v28 = vpop.f32.mrb[24].mxu1  ;;  %v904_v25 = vpop.f32.mrb[24].mxu0 }
 0x1d6   :  { %v911_v16 = vadd.f32 %v863_v28, %v421_v35  ;;  %v913_v19 = vadd.f32 %v904_v25, %v494_v49  ;;  %v865_v23 = vpop.f32.mrb[25].mxu1  ;;  %v906_v26 = vpop.f32.mrb[25].mxu0  ;;  %v7995_v28 = vld [vmem:[#allocation17_spill] sm:$0xff] }
 0x1d7   :  { %v912_v24 = vadd.f32 %v865_v23, %v423_v27  ;;  %v914_v21 = vadd.f32 %v906_v26, %v496_v46  ;;  %v867_v15 = vpop.f32.mrb[26].mxu1  ;;  %v908_v14 = vpop.f32.mrb[26].mxu0  ;;  %v7996_v23 = vld [vmem:[#allocation19_spill] sm:$0xff] }
 0x1d8   :  { %v3918_v39 = vmul.f32 -1.442695, %v911_v16  ;;  %v868_v43 = vpop.f32.mrb[27].mxu1  ;;  %v909_v20 = vpop.f32.mrb[27].mxu0  ;;  %v3920_v44 = vmul.f32 -1.442695, %v913_v19 }
 0x1d9   :  { %v3919_v45 = vmul.f32 -1.442695, %v912_v24  ;;  %v7998_v20 = vld [vmem:[#allocation22_spill] sm:$0xff] }
 0x1da   :  { %4400 = vpow2.f32 %v3918_v39  ;;  %v7997_v39 = vld [vmem:[#allocation20_spill] sm:$0xff] }
 0x1db   :  { %4402 = vpow2.f32 %v3919_v45 }
 0x1dc   :  { %4404 = vtanh.f32 %v914_v21 }
 0x1dd   :  { %4406 = vpow2.f32 %v3920_v44  ;;  %v7999_v44 = vld [vmem:[#allocation21_spill] sm:$0xff] }
 0x1e4   :  { %v4401_v33 = vpop.eup %4400 }
 0x1e5   :  { %v924_v30 = vadd.f32 1.0, %v4401_v33  ;;  %v4403_v29 = vpop.eup %4402  ;;  %v8000_v33 = vld [vmem:[#allocation23_spill] sm:$0xff] }
 0x1e6   :  { %v925_v31 = vadd.f32 1.0, %v4403_v29  ;;  %v4405_v32 = vpop.eup %4404  ;;  %v8002_v29 = vld [vmem:[#allocation26_spill] sm:$0xff] }
 0x1e7   :  { %4408 = vrcp.f32 %v924_v30  ;;  %v4407_v34 = vpop.eup %4406  ;;  %v8001_v30 = vld [vmem:[#allocation24_spill] sm:$0xff] }
 0x1e8   :  { %4410 = vrcp.f32 %v925_v31  ;;  %v926_v16 = vadd.f32 1.0, %v4407_v34  ;;  %v8003_v31 = vld [vmem:[#allocation25_spill] sm:$0xff]  ;;  %v8005_v34 = vld [vmem:[#allocation28_spill] sm:$0xff] }
 0x1ea   :  { %4412 = vrcp.f32 %v926_v16 }
 0x1f1   :  { %v4409_v26 = vpop.eup %4408 }
 0x1f2   :  { %v935_v15 = vmul.f32 %v4409_v26, %v4405_v32  ;;  %v4411_v14 = vpop.eup %4410  ;;  %v8004_v32 = vld [vmem:[#allocation27_spill] sm:$0xff]  ;;  %v8006_v26 = vld [vmem:[#allocation29_spill] sm:$0xff] }
 0x1f3   :  { %v934_v43 = vmul.f32 0.0, %v4411_v14  ;;  %v8007_v14 = vld [vmem:[#allocation60_spill] sm:$0xff] }
 0x1f4   :  { %v4413_v19 = vpop.eup %4412  ;;  %v8008_v16 = vsub.s32 0, %v8007_v14 }
 0x1f5   :  { %v5695_v46 = vadd.f32 %v935_v15, %v934_v43  ;;  %v3885_v15 = vld [vmem:[%s7623_s2 + $0x1] ss:$8 sm:$0xf] }
 0x1f6   :  { %v1175_v21 = vpop.f32.mrb[28].mxu0  ;;  %v5771_v43 = vrot.slane %v3885_v15, %v8008_v16 }
 0x1f7   :  { %4414 = vtanh.f32 %v5695_v46  ;;  %v1177_v35 = vpop.f32.mrb[29].mxu0 }
 0x1f8   :  { %v1179_v27 = vpop.f32.mrb[30].mxu0 }
 0x1f9   :  { %v1180_v24 = vpop.f32.mrb[31].mxu0 }
 0x201   :  { %v4415_v40 = vpop.eup %4414 }
 0x202   :  { %v938_v49 = vmul.f32 %v4415_v40, %v4413_v19 }
 0x204   :  { %v939_v25 = vpack.c.bf16 %v938_v49, %v938_v49  ;;  %v8009_v49 = vsub.s32 1, %v8007_v14 }
 0x206   :  { %1375 = vmatmul.mubr.bf16.vlgmr.msra.gmra.mrb[32].mxu1 %v939_v25  ;;  %1416 = vmatmul.mubr.bf16.vlgmr.msra.gmra.mrb[32].mxu0 %v939_v25 }
 0x207   :  { %1482 = vmatpush1.bf16.msra.mxu1 %v5021_v59  ;;  %1523 = vmatpush1.bf16.msra.mxu0 %v5026_v62  ;;  %v7980_v59 = vld [vmem:[#allocation3_spill] sm:$0xff]  ;;  %v7981_v62 = vld [vmem:[#allocation4_spill] sm:$0xff] }
 0x208   :  { %1483 = vmatprep.subr.bf16.mxu1 %v5031_v63  ;;  %1524 = vmatprep.subr.bf16.mxu0 %v5036_v3  ;;  %v7982_v63 = vld [vmem:[#allocation6_spill] sm:$0xff]  ;;  %v7983_v3 = vld [vmem:[#allocation5_spill] sm:$0xff] }
 0x209   :  { %1513 = vmatprep.mubr.bf16.mxu1 %v7920_v41  ;;  %1554 = vmatprep.mubr.bf16.mxu0 %v7920_v41 }
 0x20b   :  { %1484 = vmatpush1.bf16.msra.mxu1 %v5045_v12  ;;  %1525 = vmatpush1.bf16.msra.mxu0 %v5054_v17  ;;  %v7984_v12 = vld [vmem:[#allocation7_spill] sm:$0xff]  ;;  %v7985_v17 = vld [vmem:[#allocation8_spill] sm:$0xff] }
 0x20c   :  { %1485 = vmatprep.subr.bf16.mxu1 %v5059_v18  ;;  %1526 = vmatprep.subr.bf16.mxu0 %v5066_v22  ;;  %v7986_v18 = vld [vmem:[#allocation10_spill] sm:$0xff]  ;;  %v7987_v22 = vld [vmem:[#allocation9_spill] sm:$0xff] }
 0x20f   :  { %1486 = vmatpush1.bf16.msra.mxu1 %v5079_v37  ;;  %1527 = vmatpush1.bf16.msra.mxu0 %v5084_v38  ;;  %v7988_v37 = vld [vmem:[#allocation11_spill] sm:$0xff]  ;;  %v7989_v38 = vld [vmem:[#allocation12_spill] sm:$0xff] }
 0x210   :  { %1487 = vmatprep.subr.bf16.mxu1 %v5091_v36  ;;  %1528 = vmatprep.subr.bf16.mxu0 %v5096_v42  ;;  %v7990_v36 = vld [vmem:[#allocation14_spill] sm:$0xff]  ;;  %v1134_v42 = vpop.f32.mrb[28].mxu1 }
 0x213   :  { %1488 = vmatpush1.bf16.msra.mxu1 %v5105_v47  ;;  %1529 = vmatpush1.bf16.msra.mxu0 %v5110_v48  ;;  %v7991_v47 = vld [vmem:[#allocation13_spill] sm:$0xff]  ;;  %v7992_v48 = vld [vmem:[#allocation15_spill] sm:$0xff] }
 0x214   :  { %1489 = vmatprep.subr.bf16.mxu1 %v5117_v50  ;;  %1530 = vmatprep.subr.bf16.mxu0 %v5122_v51  ;;  %v1136_v50 = vpop.f32.mrb[29].mxu1  ;;  %v7993_v51 = vld [vmem:[#allocation16_spill] sm:$0xff] }
 0x217   :  { %1490 = vmatpush1.bf16.msra.mxu1 %v5131_v52  ;;  %1531 = vmatpush1.bf16.msra.mxu0 %v5136_v53  ;;  %v7994_v52 = vld [vmem:[#allocation18_spill] sm:$0xff]  ;;  %v1138_v53 = vpop.f32.mrb[30].mxu1 }
 0x218   :  { %1491 = vmatprep.subr.bf16.mxu1 %v5143_v54  ;;  %1532 = vmatprep.subr.bf16.mxu0 %v5148_v55  ;;  %v1139_v45 = vpop.f32.mrb[31].mxu1 }
 0x21b   :  { %1492 = vmatpush1.bf16.msra.mxu1 %v5157_v56  ;;  %1533 = vmatpush1.bf16.msra.mxu0 %v5162_v57 }
 0x21c   :  { %1493 = vmatprep.subr.bf16.mxu1 %v5169_v58  ;;  %1534 = vmatprep.subr.bf16.mxu0 %v5174_v60 }
 0x21f   :  { %1494 = vmatpush1.bf16.msra.mxu1 %v5183_v61  ;;  %1535 = vmatpush1.bf16.msra.mxu0 %v5188_v0 }
 0x220   :  { %1495 = vmatprep.subr.bf16.mxu1 %v5195_v1  ;;  %1536 = vmatprep.subr.bf16.mxu0 %v5200_v2 }
 0x223   :  { %1496 = vmatpush1.bf16.msra.mxu1 %v5209_v4  ;;  %1537 = vmatpush1.bf16.msra.mxu0 %v5214_v5 }
 0x224   :  { %1592 = vmatprep.subr.bf16.mxu1 %v5229_v6  ;;  %1633 = vmatprep.subr.bf16.mxu0 %v5240_v8 }
 0x226   :  { %1514 = vmatmul.mubr.bf16.vlgmr.msra.gmra.mrb[36].mxu1 %v939_v25  ;;  %1555 = vmatmul.mubr.bf16.vlgmr.msra.gmra.mrb[36].mxu0 %v939_v25  ;;  %v5775_v25 = vrot.slane %v3885_v15, %v8009_v49  ;;  %v8010_v49 = vsub.s32 2, %v8007_v14 }
 0x227   :  { %1593 = vmatpush1.bf16.msra.mxu1 %v5235_v7  ;;  %1634 = vmatpush1.bf16.msra.mxu0 %v5245_v9 }
 0x228   :  { %1594 = vmatprep.subr.bf16.mxu1 %v5253_v10  ;;  %1635 = vmatprep.subr.bf16.mxu0 %v5263_v13 }
 0x229   :  { %1624 = vmatprep.mubr.bf16.mxu1 %v7920_v41  ;;  %1665 = vmatprep.mubr.bf16.mxu0 %v7920_v41 }
 0x22b   :  { %1595 = vmatpush1.bf16.msra.mxu1 %v5258_v11  ;;  %1636 = vmatpush1.bf16.msra.mxu0 %v7980_v59 }
 0x22c   :  { %1596 = vmatprep.subr.bf16.mxu1 %v7981_v62  ;;  %1637 = vmatprep.subr.bf16.mxu0 %v7982_v63 }
 0x22f   :  { %1597 = vmatpush1.bf16.msra.mxu1 %v7983_v3  ;;  %1638 = vmatpush1.bf16.msra.mxu0 %v7984_v12 }
 0x230   :  { %1598 = vmatprep.subr.bf16.mxu1 %v7985_v17  ;;  %1639 = vmatprep.subr.bf16.mxu0 %v7986_v18 }
 0x233   :  { %1599 = vmatpush1.bf16.msra.mxu1 %v7987_v22  ;;  %1640 = vmatpush1.bf16.msra.mxu0 %v7988_v37 }
 0x234   :  { %1600 = vmatprep.subr.bf16.mxu1 %v7989_v38  ;;  %1641 = vmatprep.subr.bf16.mxu0 %v7990_v36 }
 0x237   :  { %1601 = vmatpush1.bf16.msra.mxu1 %v7991_v47  ;;  %1642 = vmatpush1.bf16.msra.mxu0 %v7992_v48 }
 0x238   :  { %1602 = vmatprep.subr.bf16.mxu1 %v7993_v51  ;;  %1643 = vmatprep.subr.bf16.mxu0 %v7994_v52 }
 0x23b   :  { %1603 = vmatpush1.bf16.msra.mxu1 %v7995_v28  ;;  %1644 = vmatpush1.bf16.msra.mxu0 %v7996_v23 }
 0x23c   :  { %1604 = vmatprep.subr.bf16.mxu1 %v7997_v39  ;;  %1645 = vmatprep.subr.bf16.mxu0 %v7998_v20  ;;  %v5781_v39 = vrot.slane %v3885_v15, %v8010_v49 }
 0x23e   :  { %8011 = vst [vmem:[#allocation3_spill] sm:$0xff] %v5781_v39 }
 0x23f   :  { %1605 = vmatpush1.bf16.msra.mxu1 %v7999_v44  ;;  %1646 = vmatpush1.bf16.msra.mxu0 %v8000_v33 }
 0x240   :  { %1606 = vmatprep.subr.bf16.mxu1 %v8001_v30  ;;  %1647 = vmatprep.subr.bf16.mxu0 %v8002_v29 }
 0x243   :  { %1607 = vmatpush1.bf16.msra.mxu1 %v8003_v31  ;;  %1648 = vmatpush1.bf16.msra.mxu0 %v8004_v32 }
 0x244   :  { %1674 = vmatprep.subr.bf16.mxu1 %v8005_v34  ;;  %1715 = vmatprep.subr.bf16.mxu0 %v8006_v26 }
 0x2d9   :  { %v1376_v19 = vpop.f32.mrb[32].mxu1  ;;  %v1417_v40 = vpop.f32.mrb[32].mxu0 }
 0x2da   :  { %v1377_v53 = vadd.f32 %v1376_v19, %v1134_v42  ;;  %v1418_v45 = vadd.f32 %v1417_v40, %v1175_v21  ;;  %v1378_v27 = vpop.f32.mrb[33].mxu1  ;;  %v1419_v24 = vpop.f32.mrb[33].mxu0  ;;  %v8012_v42 = vsub.s32 3, %v8007_v14 }
 0x2db   :  { %v1379_v34 = vadd.f32 %v1378_v27, %v1136_v50  ;;  %v1420_v26 = vadd.f32 %v1419_v24, %v1177_v35  ;;  %v1380_v32 = vpop.f32.mrb[34].mxu1  ;;  %v1421_v31 = vpop.f32.mrb[34].mxu0  ;;  %v8014_v27 = vld [vmem:[#allocation61_spill] sm:$0xff]  ;;  %v8015_v24 = vld [vmem:[#allocation62_spill] sm:$0xff] }
 0x2dc   :  { %v1445_v29 = vadd.f32 %v5771_v43, %v1377_v53  ;;  %v1381_v30 = vpop.f32.mrb[35].mxu1  ;;  %v1422_v33 = vpop.f32.mrb[35].mxu0  ;;  %v5785_v50 = vrot.slane %v3885_v15, %v8012_v42  ;;  %v1447_v21 = vadd.f32 %v5781_v39, %v1418_v45 }
 0x2dd   :  { %v1446_v16 = vadd.f32 %v5775_v25, %v1379_v34 }
 0x2de   :  { %v3985_v44 = vmul.f32 -1.442695, %v1445_v29  ;;  %8013 = vst [vmem:[#allocation4_spill] sm:$0xff] %v5785_v50  ;;  %v1448_v35 = vadd.f32 %v5785_v50, %v1420_v26  ;;  %v3987_v30 = vmul.f32 -1.442695, %v1447_v21  ;;  %v8016_v21 = vld [vmem:[#allocation63_spill] sm:$0xff] }
 0x2df   :  { %v3986_v20 = vmul.f32 -1.442695, %v1446_v16 }
 0x2e0   :  { %4416 = vpow2.f32 %v3985_v44 }
 0x2e1   :  { %4418 = vpow2.f32 %v3986_v20 }
 0x2e2   :  { %4420 = vtanh.f32 %v1448_v35 }
 0x2e3   :  { %4422 = vpow2.f32 %v3987_v30  ;;  %v8017_v30 = vld [vmem:[#allocation64_spill] sm:$0xff] }
 0x2ea   :  { %v4417_v33 = vpop.eup %4416 }
 0x2eb   :  { %v1458_v31 = vadd.f32 1.0, %v4417_v33  ;;  %v4419_v29 = vpop.eup %4418 }
 0x2ec   :  { %v1459_v44 = vadd.f32 1.0, %v4419_v29  ;;  %v4421_v32 = vpop.eup %4420 }
 0x2ed   :  { %4424 = vrcp.f32 %v1458_v31  ;;  %v4423_v34 = vpop.eup %4422 }
 0x2ee   :  { %4426 = vrcp.f32 %v1459_v44  ;;  %v1460_v15 = vadd.f32 1.0, %v4423_v34 }
 0x2f0   :  { %4428 = vrcp.f32 %v1460_v15  ;;  %v8018_v15 = vld [vmem:[#allocation30_spill] sm:$0xff] }
 0x2f7   :  { %v4425_v20 = vpop.eup %4424 }
 0x2f8   :  { %v1469_v19 = vmul.f32 %v4425_v20, %v4421_v32  ;;  %v4427_v14 = vpop.eup %4426 }
 0x2f9   :  { %v1515_v40 = vpop.f32.mrb[36].mxu1  ;;  %v1556_v53 = vpop.f32.mrb[36].mxu0  ;;  %v1468_v45 = vmul.f32 0.0, %v4427_v14 }
 0x2fa   :  { %v1563_v26 = vadd.f32 %v1515_v40, %v8014_v27  ;;  %v1565_v16 = vadd.f32 %v1556_v53, %v8015_v24  ;;  %v1517_v49 = vpop.f32.mrb[37].mxu1  ;;  %v1558_v42 = vpop.f32.mrb[37].mxu0 }
 0x2fb   :  { %v1564_v35 = vadd.f32 %v1517_v49, %v8016_v21  ;;  %v1566_v33 = vadd.f32 %v1558_v42, %v8017_v30  ;;  %v1519_v31 = vpop.f32.mrb[38].mxu1  ;;  %v1560_v29 = vpop.f32.mrb[38].mxu0  ;;  %v5793_v44 = vadd.f32 %v1469_v19, %v1468_v45  ;;  %v8022_v21 = vld [vmem:[#allocation34_spill] sm:$0xff]  ;;  %v8024_v30 = vld [vmem:[#allocation36_spill] sm:$0xff] }
 0x2fc   :  { %v3988_v32 = vmul.f32 -1.442695, %v1563_v26  ;;  %v1520_v20 = vpop.f32.mrb[39].mxu1  ;;  %v1561_v34 = vpop.f32.mrb[39].mxu0  ;;  %v3990_v40 = vmul.f32 -1.442695, %v1565_v16 }
 0x2fd   :  { %v3989_v50 = vmul.f32 -1.442695, %v1564_v35  ;;  %4430 = vtanh.f32 %v5793_v44  ;;  %v4429_v14 = vpop.eup %4428  ;;  %v8019_v26 = vld [vmem:[#allocation31_spill] sm:$0xff]  ;;  %v8021_v16 = vld [vmem:[#allocation33_spill] sm:$0xff]  ;;  %v8026_v20 = vld [vmem:[#allocation38_spill] sm:$0xff] }
 0x2fe   :  { %4432 = vpow2.f32 %v3988_v32  ;;  %v8023_v35 = vld [vmem:[#allocation35_spill] sm:$0xff] }
 0x2ff   :  { %4434 = vpow2.f32 %v3989_v50  ;;  %v8020_v50 = vld [vmem:[#allocation32_spill] sm:$0xff]  ;;  %v8027_v34 = vld [vmem:[#allocation39_spill] sm:$0xff] }
 0x300   :  { %4436 = vtanh.f32 %v1566_v33  ;;  %v8025_v33 = vld [vmem:[#allocation37_spill] sm:$0xff] }
 0x301   :  { %4438 = vpow2.f32 %v3990_v40  ;;  %v8028_v40 = vld [vmem:[#allocation40_spill] sm:$0xff] }
 0x307   :  { %v4431_v53 = vpop.eup %4430 }
 0x308   :  { %v4433_v27 = vpop.eup %4432  ;;  %v1472_v24 = vmul.f32 %v4431_v53, %v4429_v14  ;;  %v8029_v53 = vld [vmem:[#allocation41_spill] sm:$0xff] }
 0x309   :  { %v1576_v49 = vadd.f32 1.0, %v4433_v27  ;;  %v4435_v42 = vpop.eup %4434 }
 0x30a   :  { %v1473_v19 = vpack.c.bf16 %v1472_v24, %v1472_v24  ;;  %v1577_v45 = vadd.f32 1.0, %v4435_v42  ;;  %v4437_v31 = vpop.eup %4436  ;;  %v8030_v42 = vld [vmem:[#allocation42_spill] sm:$0xff] }
 0x30b   :  { %4440 = vrcp.f32 %v1576_v49  ;;  %v4439_v29 = vpop.eup %4438 }
 0x30c   :  { %1625 = vmatmul.mubr.bf16.vlgmr.msra.gmra.mrb[40].mxu1 %v1473_v19  ;;  %1666 = vmatmul.mubr.bf16.vlgmr.msra.gmra.mrb[40].mxu0 %v1473_v19  ;;  %4442 = vrcp.f32 %v1577_v45  ;;  %v1578_v24 = vadd.f32 1.0, %v4439_v29  ;;  %v8031_v19 = vld [vmem:[#allocation43_spill] sm:$0xff] }
 0x30d   :  { %1675 = vmatpush1.bf16.msra.mxu1 %v8018_v15  ;;  %1716 = vmatpush1.bf16.msra.mxu0 %v8019_v26  ;;  %v8032_v15 = vld [vmem:[#allocation44_spill] sm:$0xff]  ;;  %v8033_v26 = vld [vmem:[#allocation45_spill] sm:$0xff] }
 0x30e   :  { %1676 = vmatprep.subr.bf16.mxu1 %v8020_v50  ;;  %1717 = vmatprep.subr.bf16.mxu0 %v8021_v16  ;;  %4444 = vrcp.f32 %v1578_v24  ;;  %v8034_v50 = vld [vmem:[#allocation46_spill] sm:$0xff]  ;;  %v8035_v16 = vld [vmem:[#allocation47_spill] sm:$0xff] }
 0x30f   :  { %1706 = vmatprep.mubr.bf16.mxu1 %v7920_v41  ;;  %1747 = vmatprep.mubr.bf16.mxu0 %v7920_v41  ;;  %v8047_v24 = vld [vmem:[#allocation59_spill] sm:$0xff] }
 0x311   :  { %1677 = vmatpush1.bf16.msra.mxu1 %v8022_v21  ;;  %1718 = vmatpush1.bf16.msra.mxu0 %v8023_v35  ;;  %v8036_v21 = vld [vmem:[#allocation48_spill] sm:$0xff]  ;;  %v8038_v35 = vld [vmem:[#allocation50_spill] sm:$0xff] }
 0x312   :  { %1678 = vmatprep.subr.bf16.mxu1 %v8024_v30  ;;  %1719 = vmatprep.subr.bf16.mxu0 %v8025_v33  ;;  %v8039_v30 = vld [vmem:[#allocation51_spill] sm:$0xff]  ;;  %v8040_v33 = vld [vmem:[#allocation52_spill] sm:$0xff] }
 0x315   :  { %v4441_v32 = vpop.eup %4440  ;;  %1679 = vmatpush1.bf16.msra.mxu1 %v8026_v20  ;;  %1720 = vmatpush1.bf16.msra.mxu0 %v8027_v34  ;;  %v8043_v20 = vld [vmem:[#allocation55_spill] sm:$0xff] }
 0x316   :  { %v1587_v14 = vmul.f32 %v4441_v32, %v4437_v31  ;;  %1680 = vmatprep.subr.bf16.mxu1 %v8028_v40  ;;  %1721 = vmatprep.subr.bf16.mxu0 %v8029_v53  ;;  %v4443_v27 = vpop.eup %4442  ;;  %v8041_v31 = vld [vmem:[#allocation53_spill] sm:$0xff]  ;;  %v8042_v32 = vld [vmem:[#allocation54_spill] sm:$0xff] }
 0x317   :  { %v1586_v49 = vmul.f32 %v4443_v27, %v5695_v46  ;;  %v8037_v46 = vld [vmem:[#allocation49_spill] sm:$0xff]  ;;  %v8046_v27 = vld [vmem:[#allocation58_spill] sm:$0xff] }
 0x318   :  { %v4445_v29 = vpop.eup %4444  ;;  %v8045_v40 = vld [vmem:[#allocation57_spill] sm:$0xff] }
 0x319   :  { %1681 = vmatpush1.bf16.msra.mxu1 %v8030_v42  ;;  %1722 = vmatpush1.bf16.msra.mxu0 %v8031_v19  ;;  %v5813_v45 = vadd.f32 %v1587_v14, %v1586_v49  ;;  %v8044_v14 = vld [vmem:[#allocation56_spill] sm:$0xff]  ;;  %v5835_v42 = vld [vmem:[%s7625_s1 + $0x84] ss:$16 sps:$4 sm:$0xff]  }
 0x31a   :  { %1682 = vmatprep.subr.bf16.mxu1 %v8032_v15  ;;  %1723 = vmatprep.subr.bf16.mxu0 %v8033_v26  ;;  %v5841_v19 = vld [vmem:[%s7625_s1 + $0x8c] ss:$16 sps:$4 sm:$0xff]   ;;  %v5847_v15 = vld [vmem:[%s7625_s1 + $0x80] ss:$16 sps:$4 sm:$0xff]   ;;  %v5853_v26 = vld [vmem:[%s7625_s1 + $0x88] ss:$16 sps:$4 sm:$0xff]  }
 0x31b   :  { %4446 = vtanh.f32 %v5813_v45 }
 0x31d   :  { %1683 = vmatpush1.bf16.msra.mxu1 %v8034_v50  ;;  %1724 = vmatpush1.bf16.msra.mxu0 %v8035_v16  ;;  %v5859_v50 = vld [vmem:[%s7625_s1 + $0xa4] ss:$16 sps:$4 sm:$0xff]   ;;  %v5865_v16 = vld [vmem:[%s7625_s1 + $0xac] ss:$16 sps:$4 sm:$0xff]  }
 0x31e   :  { %1684 = vmatprep.subr.bf16.mxu1 %v8036_v21  ;;  %1725 = vmatprep.subr.bf16.mxu0 %v8037_v46  ;;  %8048 = vst [vmem:[#allocation6_spill] sm:$0xff] %v5865_v16  ;;  %v5873_v21 = vld [vmem:[%s7625_s1 + $0xa0] ss:$16 sps:$4 sm:$0xff]   ;;  %v5879_v46 = vld [vmem:[%s7625_s1 + $0xa8] ss:$16 sps:$4 sm:$0xff]  }
 0x31f   :  { %8049 = vst [vmem:[#allocation5_spill] sm:$0xff] %v5873_v21  ;;  %8050 = vst [vmem:[#allocation7_spill] sm:$0xff] %v5879_v46 }
 0x321   :  { %1685 = vmatpush1.bf16.msra.mxu1 %v8038_v35  ;;  %1726 = vmatpush1.bf16.msra.mxu0 %v8039_v30  ;;  %v5885_v35 = vld [vmem:[%s7625_s1 + $0xc4] ss:$16 sps:$4 sm:$0xff]   ;;  %v5891_v30 = vld [vmem:[%s7625_s1 + $0xcc] ss:$16 sps:$4 sm:$0xff]  }
 0x322   :  { %1686 = vmatprep.subr.bf16.mxu1 %v8040_v33  ;;  %1727 = vmatprep.subr.bf16.mxu0 %v8041_v31  ;;  %8051 = vst [vmem:[#allocation8_spill] sm:$0xff] %v5885_v35  ;;  %8052 = vst [vmem:[#allocation10_spill] sm:$0xff] %v5891_v30  ;;  %v5897_v33 = vld [vmem:[%s7625_s1 + $0xc0] ss:$16 sps:$4 sm:$0xff]   ;;  %v5903_v31 = vld [vmem:[%s7625_s1 + $0xc8] ss:$16 sps:$4 sm:$0xff]  }
 0x323   :  { %8053 = vst [vmem:[#allocation9_spill] sm:$0xff] %v5897_v33  ;;  %8054 = vst [vmem:[#allocation11_spill] sm:$0xff] %v5903_v31 }
 0x325   :  { %1687 = vmatpush1.bf16.msra.mxu1 %v8042_v32  ;;  %1728 = vmatpush1.bf16.msra.mxu0 %v8043_v20  ;;  %v4447_v34 = vpop.eup %4446  ;;  %v5915_v32 = vld [vmem:[%s7625_s1 + $0xec] ss:$16 sps:$4 sm:$0xff]   ;;  %v5921_v20 = vld [vmem:[%s7625_s1 + $0xe0] ss:$16 sps:$4 sm:$0xff]  }
 0x326   :  { %1688 = vmatprep.subr.bf16.mxu1 %v8044_v14  ;;  %1729 = vmatprep.subr.bf16.mxu0 %v8045_v40  ;;  %v1590_v53 = vmul.f32 %v4447_v34, %v4445_v29  ;;  %v5909_v29 = vld [vmem:[%s7625_s1 + $0xe4] ss:$16 sps:$4 sm:$0xff]   ;;  %8056 = vst [vmem:[#allocation14_spill] sm:$0xff] %v5915_v32  ;;  %8057 = vst [vmem:[#allocation13_spill] sm:$0xff] %v5921_v20  ;;  %v5927_v34 = vld [vmem:[%s7625_s1 + $0xe8] ss:$16 sps:$4 sm:$0xff]  }
 0x327   :  { %8055 = vst [vmem:[#allocation12_spill] sm:$0xff] %v5909_v29  ;;  %8058 = vst [vmem:[#allocation15_spill] sm:$0xff] %v5927_v34  ;;  %v5933_v14 = vld [vmem:[%s7625_s1 + $0x104] ss:$16 sps:$4 sm:$0xff]   ;;  %v5939_v40 = vld [vmem:[%s7625_s1 + $0x10c] ss:$16 sps:$4 sm:$0xff]  }
 0x328   :  { %v1591_v49 = vpack.c.bf16 %v1590_v53, %v1590_v53  ;;  %8059 = vst [vmem:[#allocation16_spill] sm:$0xff] %v5933_v14  ;;  %8060 = vst [vmem:[#allocation18_spill] sm:$0xff] %v5939_v40  ;;  %v5945_v53 = vld [vmem:[%s7625_s1 + $0x100] ss:$16 sps:$4 sm:$0xff]  }
 0x329   :  { %1689 = vmatpush1.bf16.msra.mxu1 %v8046_v27  ;;  %1730 = vmatpush1.bf16.msra.mxu0 %v8047_v24  ;;  %8061 = vst [vmem:[#allocation17_spill] sm:$0xff] %v5945_v53  ;;  %v5951_v27 = vld [vmem:[%s7625_s1 + $0x108] ss:$16 sps:$4 sm:$0xff]  }
 0x32a   :  { %1792 = vmatprep.subr.bf16.mxu1 %v5835_v42  ;;  %1833 = vmatprep.subr.bf16.mxu0 %v5841_v19  ;;  %8062 = vst [vmem:[#allocation19_spill] sm:$0xff] %v5951_v27 }
 0x32c   :  { %1707 = vmatmul.mubr.bf16.vlgmr.msra.gmra.mrb[44].mxu1 %v1591_v49  ;;  %1748 = vmatmul.mubr.bf16.vlgmr.msra.gmra.mrb[44].mxu0 %v1591_v49 }
 0x32d   :  { %1793 = vmatpush1.bf16.msra.mxu1 %v5847_v15  ;;  %1834 = vmatpush1.bf16.msra.mxu0 %v5853_v26 }
 0x32e   :  { %1794 = vmatprep.subr.bf16.mxu1 %v5859_v50  ;;  %1835 = vmatprep.subr.bf16.mxu0 %v5865_v16 }
 0x32f   :  { %1824 = vmatprep.mubr.bf16.mxu1 %v7920_v41  ;;  %1865 = vmatprep.mubr.bf16.mxu0 %v7920_v41 }
 0x331   :  { %1795 = vmatpush1.bf16.msra.mxu1 %v5873_v21  ;;  %1836 = vmatpush1.bf16.msra.mxu0 %v5879_v46 }
 0x332   :  { %1796 = vmatprep.subr.bf16.mxu1 %v5885_v35  ;;  %1837 = vmatprep.subr.bf16.mxu0 %v5891_v30 }
 0x335   :  { %1797 = vmatpush1.bf16.msra.mxu1 %v5897_v33  ;;  %1838 = vmatpush1.bf16.msra.mxu0 %v5903_v31 }
 0x336   :  { %1798 = vmatprep.subr.bf16.mxu1 %v5909_v29  ;;  %1839 = vmatprep.subr.bf16.mxu0 %v5915_v32 }
 0x339   :  { %1799 = vmatpush1.bf16.msra.mxu1 %v5921_v20  ;;  %1840 = vmatpush1.bf16.msra.mxu0 %v5927_v34 }
 0x33a   :  { %1800 = vmatprep.subr.bf16.mxu1 %v5933_v14  ;;  %1841 = vmatprep.subr.bf16.mxu0 %v5939_v40 }
 0x33d   :  { %1801 = vmatpush1.bf16.msra.mxu1 %v5945_v53  ;;  %1842 = vmatpush1.bf16.msra.mxu0 %v5951_v27 }
 0x33e   :  { %1802 = vmatprep.subr.bf16.mxu1 %v5143_v54  ;;  %1843 = vmatprep.subr.bf16.mxu0 %v5148_v55  ;;  %v8063_v54 = vld [vmem:[#allocation20_spill] sm:$0xff]  ;;  %v8064_v55 = vld [vmem:[#allocation22_spill] sm:$0xff] }
 0x341   :  { %1803 = vmatpush1.bf16.msra.mxu1 %v5157_v56  ;;  %1844 = vmatpush1.bf16.msra.mxu0 %v5162_v57  ;;  %v8065_v56 = vld [vmem:[#allocation21_spill] sm:$0xff]  ;;  %v8066_v57 = vld [vmem:[#allocation23_spill] sm:$0xff] }
 0x342   :  { %1804 = vmatprep.subr.bf16.mxu1 %v5169_v58  ;;  %1845 = vmatprep.subr.bf16.mxu0 %v5174_v60  ;;  %v8067_v58 = vld [vmem:[#allocation24_spill] sm:$0xff]  ;;  %v8068_v60 = vld [vmem:[#allocation26_spill] sm:$0xff] }
 0x345   :  { %1805 = vmatpush1.bf16.msra.mxu1 %v5183_v61  ;;  %1846 = vmatpush1.bf16.msra.mxu0 %v5188_v0  ;;  %v8069_v61 = vld [vmem:[#allocation25_spill] sm:$0xff]  ;;  %v8070_v0 = vld [vmem:[#allocation27_spill] sm:$0xff] }
 0x346   :  { %1806 = vmatprep.subr.bf16.mxu1 %v5195_v1  ;;  %1847 = vmatprep.subr.bf16.mxu0 %v5200_v2  ;;  %v8071_v1 = vld [vmem:[#allocation28_spill] sm:$0xff]  ;;  %v8072_v2 = vld [vmem:[#allocation29_spill] sm:$0xff] }
 0x349   :  { %1807 = vmatpush1.bf16.msra.mxu1 %v5209_v4  ;;  %1848 = vmatpush1.bf16.msra.mxu0 %v5214_v5 }
 0x34a   :  { %1903 = vmatprep.subr.bf16.mxu1 %v5229_v6  ;;  %1944 = vmatprep.subr.bf16.mxu0 %v5240_v8 }
 0x34c   :  { %1825 = vmatmul.mubr.bf16.vlgmr.msra.gmra.mrb[48].mxu1 %v1591_v49  ;;  %1866 = vmatmul.mubr.bf16.vlgmr.msra.gmra.mrb[48].mxu0 %v1591_v49 }
 0x34d   :  { %1904 = vmatpush1.bf16.msra.mxu1 %v5235_v7  ;;  %1945 = vmatpush1.bf16.msra.mxu0 %v5245_v9 }
 0x34e   :  { %1905 = vmatprep.subr.bf16.mxu1 %v5253_v10  ;;  %1946 = vmatprep.subr.bf16.mxu0 %v5263_v13 }
 0x34f   :  { %1935 = vmatprep.mubr.bf16.mxu1 %v7920_v41  ;;  %1976 = vmatprep.mubr.bf16.mxu0 %v7920_v41 }
 0x351   :  { %1906 = vmatpush1.bf16.msra.mxu1 %v5258_v11  ;;  %1947 = vmatpush1.bf16.msra.mxu0 %v7980_v59 }
 0x352   :  { %1907 = vmatprep.subr.bf16.mxu1 %v7981_v62  ;;  %1948 = vmatprep.subr.bf16.mxu0 %v7982_v63 }
 0x355   :  { %1908 = vmatpush1.bf16.msra.mxu1 %v7983_v3  ;;  %1949 = vmatpush1.bf16.msra.mxu0 %v7984_v12 }
 0x356   :  { %1909 = vmatprep.subr.bf16.mxu1 %v7985_v17  ;;  %1950 = vmatprep.subr.bf16.mxu0 %v7986_v18 }
 0x359   :  { %1910 = vmatpush1.bf16.msra.mxu1 %v7987_v22  ;;  %1951 = vmatpush1.bf16.msra.mxu0 %v7988_v37 }
 0x35a   :  { %1911 = vmatprep.subr.bf16.mxu1 %v7989_v38  ;;  %1952 = vmatprep.subr.bf16.mxu0 %v7990_v36 }
 0x35d   :  { %1912 = vmatpush1.bf16.msra.mxu1 %v7991_v47  ;;  %1953 = vmatpush1.bf16.msra.mxu0 %v7992_v48 }
 0x35e   :  { %1913 = vmatprep.subr.bf16.mxu1 %v7993_v51  ;;  %1954 = vmatprep.subr.bf16.mxu0 %v7994_v52 }
 0x361   :  { %1914 = vmatpush1.bf16.msra.mxu1 %v7995_v28  ;;  %1955 = vmatpush1.bf16.msra.mxu0 %v7996_v23  ;;  %v8073_v23 = vld [vmem:[#allocation4_spill] sm:$0xff] }
 0x362   :  { %1915 = vmatprep.subr.bf16.mxu1 %v8063_v54  ;;  %1956 = vmatprep.subr.bf16.mxu0 %v8064_v55 }
 0x365   :  { %1916 = vmatpush1.bf16.msra.mxu1 %v8065_v56  ;;  %1957 = vmatpush1.bf16.msra.mxu0 %v8066_v57 }
 0x366   :  { %1917 = vmatprep.subr.bf16.mxu1 %v8067_v58  ;;  %1958 = vmatprep.subr.bf16.mxu0 %v8068_v60 }
 0x369   :  { %1918 = vmatpush1.bf16.msra.mxu1 %v8069_v61  ;;  %1959 = vmatpush1.bf16.msra.mxu0 %v8070_v0 }
 0x36a   :  { %1985 = vmatprep.subr.bf16.mxu1 %v8071_v1  ;;  %2026 = vmatprep.subr.bf16.mxu0 %v8072_v2 }
 0x3df   :  { %v1626_v4 = vpop.f32.mrb[40].mxu1  ;;  %v1667_v5 = vpop.f32.mrb[40].mxu0 }
 0x3e0   :  { %v1628_v6 = vpop.f32.mrb[41].mxu1  ;;  %v1669_v7 = vpop.f32.mrb[41].mxu0 }
 0x3e1   :  { %v1630_v8 = vpop.f32.mrb[42].mxu1  ;;  %v1671_v9 = vpop.f32.mrb[42].mxu0 }
 0x3e2   :  { %v1631_v10 = vpop.f32.mrb[43].mxu1  ;;  %v1672_v11 = vpop.f32.mrb[43].mxu0  ;;  %v8075_v9 = vld [vmem:[#allocation66_spill] sm:$0xff] }
 0x3ff   :  { %v1708_v13 = vpop.f32.mrb[44].mxu1  ;;  %v1749_v59 = vpop.f32.mrb[44].mxu0 }
 0x400   :  { %v1709_v62 = vadd.f32 %v1708_v13, %v1626_v4  ;;  %v1750_v63 = vadd.f32 %v1749_v59, %v1667_v5  ;;  %v1710_v3 = vpop.f32.mrb[45].mxu1  ;;  %v1751_v12 = vpop.f32.mrb[45].mxu0  ;;  %v8076_v59 = vld [vmem:[#allocation67_spill] sm:$0xff] }
 0x401   :  { %v1711_v17 = vadd.f32 %v1710_v3, %v1628_v6  ;;  %v1752_v18 = vadd.f32 %v1751_v12, %v1669_v7  ;;  %v1712_v22 = vpop.f32.mrb[46].mxu1  ;;  %v1753_v37 = vpop.f32.mrb[46].mxu0  ;;  %v8074_v7 = vld [vmem:[#allocation65_spill] sm:$0xff] }
 0x402   :  { %v1756_v38 = vadd.f32 %v1709_v62, %v5771_v43  ;;  %v1713_v36 = vpop.f32.mrb[47].mxu1  ;;  %v1754_v47 = vpop.f32.mrb[47].mxu0  ;;  %v1758_v28 = vadd.f32 %v1750_v63, %v5781_v39  ;;  %v8077_v63 = vld [vmem:[#allocation68_spill] sm:$0xff] }
 0x403   :  { %v1757_v48 = vadd.f32 %v1711_v17, %v5775_v25  ;;  %v1759_v24 = vadd.f32 %v1752_v18, %v8073_v23 }
 0x404   :  { %v3991_v51 = vmul.f32 -1.442695, %v1756_v38  ;;  %v3993_v49 = vmul.f32 -1.442695, %v1758_v28 }
 0x405   :  { %v3992_v52 = vmul.f32 -1.442695, %v1757_v48 }
 0x406   :  { %4448 = vpow2.f32 %v3991_v51 }
 0x407   :  { %4450 = vpow2.f32 %v3992_v52 }
 0x408   :  { %4452 = vtanh.f32 %v1759_v24 }
 0x409   :  { %4454 = vpow2.f32 %v3993_v49 }
 0x410   :  { %v4449_v54 = vpop.eup %4448 }
 0x411   :  { %v1769_v55 = vadd.f32 1.0, %v4449_v54  ;;  %v4451_v56 = vpop.eup %4450 }
 0x412   :  { %v1770_v57 = vadd.f32 1.0, %v4451_v56  ;;  %v4453_v58 = vpop.eup %4452  ;;  %v6023_v56 = vld [vmem:[%s7625_s1 + $0x188] ss:$16 sps:$4 sm:$0xff]  }
 0x413   :  { %4456 = vrcp.f32 %v1769_v55  ;;  %v4455_v60 = vpop.eup %4454  ;;  %v6017_v55 = vld [vmem:[%s7625_s1 + $0x180] ss:$16 sps:$4 sm:$0xff]  }
 0x414   :  { %4458 = vrcp.f32 %v1770_v57  ;;  %v1771_v2 = vadd.f32 1.0, %v4455_v60  ;;  %v6029_v57 = vld [vmem:[%s7625_s1 + $0x1a4] ss:$16 sps:$4 sm:$0xff]   ;;  %v6043_v60 = vld [vmem:[%s7625_s1 + $0x1a0] ss:$16 sps:$4 sm:$0xff]  }
 0x416   :  { %4460 = vrcp.f32 %v1771_v2 }
 0x41d   :  { %v4457_v61 = vpop.eup %4456 }
 0x41e   :  { %v1780_v0 = vmul.f32 %v4457_v61, %v4453_v58  ;;  %v4459_v1 = vpop.eup %4458  ;;  %v6035_v58 = vld [vmem:[%s7625_s1 + $0x1ac] ss:$16 sps:$4 sm:$0xff]   ;;  %v6049_v61 = vld [vmem:[%s7625_s1 + $0x1a8] ss:$16 sps:$4 sm:$0xff]  }
 0x41f   :  { %v1826_v4 = vpop.f32.mrb[48].mxu1  ;;  %v1867_v5 = vpop.f32.mrb[48].mxu0  ;;  %v1779_v6 = vmul.f32 %v4459_v1, %v5793_v44  ;;  %v6061_v1 = vld [vmem:[%s7625_s1 + $0x1cc] ss:$16 sps:$4 sm:$0xff]  }
 0x420   :  { %v1874_v8 = vadd.f32 %v1826_v4, %v8074_v7  ;;  %v1876_v10 = vadd.f32 %v1867_v5, %v8075_v9  ;;  %v1828_v11 = vpop.f32.mrb[49].mxu1  ;;  %v1869_v13 = vpop.f32.mrb[49].mxu0  ;;  %v6073_v7 = vld [vmem:[%s7625_s1 + $0x1c8] ss:$16 sps:$4 sm:$0xff]   ;;  %v6079_v9 = vld [vmem:[%s7625_s1 + $0x1e4] ss:$16 sps:$4 sm:$0xff]  }
 0x421   :  { %v1875_v62 = vadd.f32 %v1828_v11, %v8076_v59  ;;  %v1877_v3 = vadd.f32 %v1869_v13, %v8077_v63  ;;  %v1830_v12 = vpop.f32.mrb[50].mxu1  ;;  %v1871_v17 = vpop.f32.mrb[50].mxu0  ;;  %v6011_v18 = vadd.f32 %v1780_v0, %v1779_v6  ;;  %v6055_v0 = vld [vmem:[%s7625_s1 + $0x1c4] ss:$16 sps:$4 sm:$0xff]   ;;  %v6067_v6 = vld [vmem:[%s7625_s1 + $0x1c0] ss:$16 sps:$4 sm:$0xff]  }
 0x422   :  { %v3994_v22 = vmul.f32 -1.442695, %v1874_v8  ;;  %v1831_v37 = vpop.f32.mrb[51].mxu1  ;;  %v1872_v38 = vpop.f32.mrb[51].mxu0  ;;  %v3996_v47 = vmul.f32 -1.442695, %v1876_v10 }
 0x423   :  { %v3995_v36 = vmul.f32 -1.442695, %v1875_v62  ;;  %4462 = vtanh.f32 %v6011_v18  ;;  %v4461_v44 = vpop.eup %4460  ;;  %v6085_v10 = vld [vmem:[%s7625_s1 + $0x1ec] ss:$16 sps:$4 sm:$0xff]   ;;  %v6092_v62 = vld [vmem:[%s7625_s1 + $0x1e0] ss:$16 sps:$4 sm:$0xff]  }
 0x424   :  { %4464 = vpow2.f32 %v3994_v22  ;;  %v6098_v63 = vld [vmem:[%s7625_s1 + $0x1e8] ss:$16 sps:$4 sm:$0xff]   ;;  %v6112_v12 = vld [vmem:[%s7625_s1 + $0x20c] ss:$16 sps:$4 sm:$0xff]   ;;  %v6119_v17 = vld [vmem:[%s7625_s1 + $0x200] ss:$16 sps:$4 sm:$0xff]  }
 0x425   :  { %4466 = vpow2.f32 %v3995_v36  ;;  %v6125_v22 = vld [vmem:[%s7625_s1 + $0x208] ss:$16 sps:$4 sm:$0xff]   ;;  %v6131_v37 = vld [vmem:[%s7625_s1 + $0x224] ss:$16 sps:$4 sm:$0xff]   ;;  %v6137_v38 = vld [vmem:[%s7625_s1 + $0x22c] ss:$16 sps:$4 sm:$0xff]  }
 0x426   :  { %4468 = vtanh.f32 %v1877_v3  ;;  %v6143_v36 = vld [vmem:[%s7625_s1 + $0x220] ss:$16 sps:$4 sm:$0xff]  }
 0x427   :  { %4470 = vpow2.f32 %v3996_v47  ;;  %v6155_v47 = vld [vmem:[%s7625_s1 + $0x244] ss:$16 sps:$4 sm:$0xff]  }
 0x42d   :  { %v4463_v48 = vpop.eup %4462 }
 0x42e   :  { %v4465_v51 = vpop.eup %4464  ;;  %v1783_v52 = vmul.f32 %v4463_v48, %v4461_v44  ;;  %v6149_v44 = vld [vmem:[%s7625_s1 + $0x228] ss:$16 sps:$4 sm:$0xff]   ;;  %v6161_v48 = vld [vmem:[%s7625_s1 + $0x24c] ss:$16 sps:$4 sm:$0xff]  }
 0x42f   :  { %v1887_v28 = vadd.f32 1.0, %v4465_v51  ;;  %v4467_v24 = vpop.eup %4466 }
 0x430   :  { %v1784_v49 = vpack.c.bf16 %v1783_v52, %v1783_v52  ;;  %v1888_v54 = vadd.f32 1.0, %v4467_v24  ;;  %v4469_v2 = vpop.eup %4468  ;;  %v6167_v52 = vld [vmem:[%s7625_s1 + $0x240] ss:$16 sps:$4 sm:$0xff]  }
 0x431   :  { %4472 = vrcp.f32 %v1887_v28  ;;  %v4471_v4 = vpop.eup %4470  ;;  %v6173_v28 = vld [vmem:[%s7625_s1 + $0x248] ss:$16 sps:$4 sm:$0xff]  }
 0x432   :  { %1936 = vmatmul.mubr.bf16.vlgmr.msra.gmra.mrb[52].mxu1 %v1784_v49  ;;  %1977 = vmatmul.mubr.bf16.vlgmr.msra.gmra.mrb[52].mxu0 %v1784_v49  ;;  %4474 = vrcp.f32 %v1888_v54  ;;  %v1889_v13 = vadd.f32 1.0, %v4471_v4  ;;  %v6179_v49 = vld [vmem:[%s7625_s1 + $0x264] ss:$16 sps:$4 sm:$0xff]   ;;  %v6185_v54 = vld [vmem:[%s7625_s1 + $0x26c] ss:$16 sps:$4 sm:$0xff]  }
 0x433   :  { %1986 = vmatpush1.bf16.msra.mxu1 %v6017_v55  ;;  %2027 = vmatpush1.bf16.msra.mxu0 %v6023_v56  ;;  %v6191_v4 = vld [vmem:[%s7625_s1 + $0x260] ss:$16 sps:$4 sm:$0xff]  }
 0x434   :  { %1987 = vmatprep.subr.bf16.mxu1 %v6029_v57  ;;  %2028 = vmatprep.subr.bf16.mxu0 %v6035_v58  ;;  %4476 = vrcp.f32 %v1889_v13  ;;  %v6231_v13 = vld [vmem:[%s7625_s1 + $0x12c] ss:$16 sps:$4 sm:$0xff]  }
 0x435   :  { %2017 = vmatprep.mubr.bf16.mxu1 %v7920_v41  ;;  %2058 = vmatprep.mubr.bf16.mxu0 %v7920_v41  ;;  %8079 = vst [vmem:[#allocation61_spill] sm:$0xff] %v6231_v13 }
 0x437   :  { %1988 = vmatpush1.bf16.msra.mxu1 %v6043_v60  ;;  %2029 = vmatpush1.bf16.msra.mxu0 %v6049_v61 }
 0x438   :  { %1989 = vmatprep.subr.bf16.mxu1 %v6055_v0  ;;  %2030 = vmatprep.subr.bf16.mxu0 %v6061_v1 }
 0x43b   :  { %v4473_v5 = vpop.eup %4472  ;;  %1990 = vmatpush1.bf16.msra.mxu1 %v6067_v6  ;;  %2031 = vmatpush1.bf16.msra.mxu0 %v6073_v7 }
 0x43c   :  { %v1898_v8 = vmul.f32 %v4473_v5, %v4469_v2  ;;  %1991 = vmatprep.subr.bf16.mxu1 %v6079_v9  ;;  %2032 = vmatprep.subr.bf16.mxu0 %v6085_v10  ;;  %v4475_v11 = vpop.eup %4474  ;;  %v6197_v5 = vld [vmem:[%s7625_s1 + $0x268] ss:$16 sps:$4 sm:$0xff]  }
 0x43d   :  { %v1897_v59 = vmul.f32 %v4475_v11, %v5813_v45  ;;  %v6106_v45 = vld [vmem:[%s7625_s1 + $0x204] ss:$16 sps:$4 sm:$0xff]  }
 0x43e   :  { %v4477_v51 = vpop.eup %4476  ;;  %v6225_v11 = vld [vmem:[%s7625_s1 + $0x124] ss:$16 sps:$4 sm:$0xff]  }
 0x43f   :  { %1992 = vmatpush1.bf16.msra.mxu1 %v6092_v62  ;;  %2033 = vmatpush1.bf16.msra.mxu0 %v6098_v63  ;;  %v6101_v3 = vadd.f32 %v1898_v8, %v1897_v59  ;;  %8078 = vst [vmem:[#allocation60_spill] sm:$0xff] %v6225_v11  ;;  %v6237_v59 = vld [vmem:[%s7625_s1 + $0x120] ss:$16 sps:$4 sm:$0xff]  }
 0x440   :  { %1993 = vmatprep.subr.bf16.mxu1 %v6106_v45  ;;  %2034 = vmatprep.subr.bf16.mxu0 %v6112_v12  ;;  %8080 = vst [vmem:[#allocation62_spill] sm:$0xff] %v6237_v59 }
 0x441   :  { %4478 = vtanh.f32 %v6101_v3 }
 0x443   :  { %1994 = vmatpush1.bf16.msra.mxu1 %v6119_v17  ;;  %2035 = vmatpush1.bf16.msra.mxu0 %v6125_v22 }
 0x444   :  { %1995 = vmatprep.subr.bf16.mxu1 %v6131_v37  ;;  %2036 = vmatprep.subr.bf16.mxu0 %v6137_v38 }
 0x447   :  { %1996 = vmatpush1.bf16.msra.mxu1 %v6143_v36  ;;  %2037 = vmatpush1.bf16.msra.mxu0 %v6149_v44 }
 0x448   :  { %1997 = vmatprep.subr.bf16.mxu1 %v6155_v47  ;;  %2038 = vmatprep.subr.bf16.mxu0 %v6161_v48 }
 0x44b   :  { %1998 = vmatpush1.bf16.msra.mxu1 %v6167_v52  ;;  %2039 = vmatpush1.bf16.msra.mxu0 %v6173_v28  ;;  %v4479_v24 = vpop.eup %4478 }
 0x44c   :  { %1999 = vmatprep.subr.bf16.mxu1 %v6179_v49  ;;  %2040 = vmatprep.subr.bf16.mxu0 %v6185_v54  ;;  %v1901_v2 = vmul.f32 %v4479_v24, %v4477_v51  ;;  %v6243_v51 = vld [vmem:[%s7625_s1 + $0x128] ss:$16 sps:$4 sm:$0xff]   ;;  %v6249_v24 = vld [vmem:[%s7625_s1 + $0x144] ss:$16 sps:$4 sm:$0xff]  }
 0x44d   :  { %8081 = vst [vmem:[#allocation63_spill] sm:$0xff] %v6243_v51  ;;  %8082 = vst [vmem:[#allocation64_spill] sm:$0xff] %v6249_v24 }
 0x44e   :  { %v1902_v8 = vpack.c.bf16 %v1901_v2, %v1901_v2  ;;  %v6255_v2 = vld [vmem:[%s7625_s1 + $0x14c] ss:$16 sps:$4 sm:$0xff]  }
 0x44f   :  { %2000 = vmatpush1.bf16.msra.mxu1 %v6191_v4  ;;  %2041 = vmatpush1.bf16.msra.mxu0 %v6197_v5  ;;  %8083 = vst [vmem:[#allocation30_spill] sm:$0xff] %v6255_v2 }
 0x450   :  { %2103 = vmatprep.subr.bf16.mxu1 %v5835_v42  ;;  %2144 = vmatprep.subr.bf16.mxu0 %v5841_v19 }
 0x452   :  { %2018 = vmatmul.mubr.bf16.vlgmr.msra.gmra.mrb[56].mxu1 %v1902_v8  ;;  %2059 = vmatmul.mubr.bf16.vlgmr.msra.gmra.mrb[56].mxu0 %v1902_v8 }
 0x453   :  { %2104 = vmatpush1.bf16.msra.mxu1 %v5847_v15  ;;  %2145 = vmatpush1.bf16.msra.mxu0 %v5853_v26 }
 0x454   :  { %2105 = vmatprep.subr.bf16.mxu1 %v5859_v50  ;;  %2146 = vmatprep.subr.bf16.mxu0 %v5865_v16 }
 0x455   :  { %2135 = vmatprep.mubr.bf16.mxu1 %v7920_v41  ;;  %2176 = vmatprep.mubr.bf16.mxu0 %v7920_v41 }
 0x457   :  { %2106 = vmatpush1.bf16.msra.mxu1 %v5873_v21  ;;  %2147 = vmatpush1.bf16.msra.mxu0 %v5879_v46 }
 0x458   :  { %2107 = vmatprep.subr.bf16.mxu1 %v5885_v35  ;;  %2148 = vmatprep.subr.bf16.mxu0 %v5891_v30 }
 0x45b   :  { %2108 = vmatpush1.bf16.msra.mxu1 %v5897_v33  ;;  %2149 = vmatpush1.bf16.msra.mxu0 %v5903_v31 }
 0x45c   :  { %2109 = vmatprep.subr.bf16.mxu1 %v5909_v29  ;;  %2150 = vmatprep.subr.bf16.mxu0 %v5915_v32 }
 0x45f   :  { %2110 = vmatpush1.bf16.msra.mxu1 %v5921_v20  ;;  %2151 = vmatpush1.bf16.msra.mxu0 %v5927_v34 }
 0x460   :  { %2111 = vmatprep.subr.bf16.mxu1 %v5933_v14  ;;  %2152 = vmatprep.subr.bf16.mxu0 %v5939_v40 }
 0x463   :  { %2112 = vmatpush1.bf16.msra.mxu1 %v5945_v53  ;;  %2153 = vmatpush1.bf16.msra.mxu0 %v5951_v27 }
 0x464   :  { %2113 = vmatprep.subr.bf16.mxu1 %v6225_v11  ;;  %2154 = vmatprep.subr.bf16.mxu0 %v6231_v13 }
 0x467   :  { %2114 = vmatpush1.bf16.msra.mxu1 %v6237_v59  ;;  %2155 = vmatpush1.bf16.msra.mxu0 %v6243_v51  ;;  %v6261_v59 = vld [vmem:[%s7625_s1 + $0x140] ss:$16 sps:$4 sm:$0xff]   ;;  %v6267_v51 = vld [vmem:[%s7625_s1 + $0x148] ss:$16 sps:$4 sm:$0xff]  }
 0x468   :  { %2115 = vmatprep.subr.bf16.mxu1 %v6249_v24  ;;  %2156 = vmatprep.subr.bf16.mxu0 %v6255_v2  ;;  %8084 = vst [vmem:[#allocation31_spill] sm:$0xff] %v6261_v59  ;;  %8085 = vst [vmem:[#allocation32_spill] sm:$0xff] %v6267_v51  ;;  %v6273_v24 = vld [vmem:[%s7625_s1 + $0x164] ss:$16 sps:$4 sm:$0xff]   ;;  %v6279_v2 = vld [vmem:[%s7625_s1 + $0x16c] ss:$16 sps:$4 sm:$0xff]  }
 0x469   :  { %8086 = vst [vmem:[#allocation33_spill] sm:$0xff] %v6273_v24  ;;  %8087 = vst [vmem:[#allocation34_spill] sm:$0xff] %v6279_v2 }
 0x46b   :  { %2116 = vmatpush1.bf16.msra.mxu1 %v6261_v59  ;;  %2157 = vmatpush1.bf16.msra.mxu0 %v6267_v51  ;;  %v6285_v59 = vld [vmem:[%s7625_s1 + $0x160] ss:$16 sps:$4 sm:$0xff]   ;;  %v6291_v51 = vld [vmem:[%s7625_s1 + $0x168] ss:$16 sps:$4 sm:$0xff]  }
 0x46c   :  { %2117 = vmatprep.subr.bf16.mxu1 %v6273_v24  ;;  %2158 = vmatprep.subr.bf16.mxu0 %v6279_v2  ;;  %8088 = vst [vmem:[#allocation35_spill] sm:$0xff] %v6285_v59  ;;  %8089 = vst [vmem:[#allocation36_spill] sm:$0xff] %v6291_v51  ;;  %v6297_v24 = vld [vmem:[%s7625_s1 + $0x284] ss:$16 sps:$4 sm:$0xff]   ;;  %v6303_v2 = vld [vmem:[%s7625_s1 + $0x28c] ss:$16 sps:$4 sm:$0xff]  }
 0x46d   :  { %8090 = vst [vmem:[#allocation37_spill] sm:$0xff] %v6297_v24  ;;  %8091 = vst [vmem:[#allocation38_spill] sm:$0xff] %v6303_v2 }
 0x46f   :  { %2118 = vmatpush1.bf16.msra.mxu1 %v6285_v59  ;;  %2159 = vmatpush1.bf16.msra.mxu0 %v6291_v51  ;;  %v6309_v51 = vld [vmem:[%s7625_s1 + $0x280] ss:$16 sps:$4 sm:$0xff]  }
 0x470   :  { %2214 = vmatprep.subr.bf16.mxu1 %v6297_v24  ;;  %2255 = vmatprep.subr.bf16.mxu0 %v6303_v2  ;;  %8092 = vst [vmem:[#allocation39_spill] sm:$0xff] %v6309_v51  ;;  %v6315_v24 = vld [vmem:[%s7625_s1 + $0x288] ss:$16 sps:$4 sm:$0xff]   ;;  %v6321_v2 = vld [vmem:[%s7625_s1 + $0x2a4] ss:$16 sps:$4 sm:$0xff]  }
 0x471   :  { %8093 = vst [vmem:[#allocation40_spill] sm:$0xff] %v6315_v24  ;;  %8094 = vst [vmem:[#allocation41_spill] sm:$0xff] %v6321_v2 }
 0x472   :  { %2136 = vmatmul.mubr.bf16.vlgmr.msra.gmra.mrb[60].mxu1 %v1902_v8  ;;  %2177 = vmatmul.mubr.bf16.vlgmr.msra.gmra.mrb[60].mxu0 %v1902_v8  ;;  %v6327_v8 = vld [vmem:[%s7625_s1 + $0x2ac] ss:$16 sps:$4 sm:$0xff]  }
 0x473   :  { %2215 = vmatpush1.bf16.msra.mxu1 %v6309_v51  ;;  %2256 = vmatpush1.bf16.msra.mxu0 %v6315_v24  ;;  %8095 = vst [vmem:[#allocation42_spill] sm:$0xff] %v6327_v8  ;;  %v6335_v24 = vld [vmem:[%s7625_s1 + $0x2a0] ss:$16 sps:$4 sm:$0xff]   ;;  %v6353_v51 = vld [vmem:[%s7625_s1 + $0x2cc] ss:$16 sps:$4 sm:$0xff]  }
 0x474   :  { %2216 = vmatprep.subr.bf16.mxu1 %v6321_v2  ;;  %2257 = vmatprep.subr.bf16.mxu0 %v6327_v8  ;;  %8096 = vst [vmem:[#allocation43_spill] sm:$0xff] %v6335_v24  ;;  %v6341_v2 = vld [vmem:[%s7625_s1 + $0x2a8] ss:$16 sps:$4 sm:$0xff]   ;;  %v6347_v8 = vld [vmem:[%s7625_s1 + $0x2c4] ss:$16 sps:$4 sm:$0xff]   ;;  %8099 = vst [vmem:[#allocation46_spill] sm:$0xff] %v6353_v51 }
 0x475   :  { %2246 = vmatprep.mubr.bf16.mxu1 %v7920_v41  ;;  %2287 = vmatprep.mubr.bf16.mxu0 %v7920_v41  ;;  %8097 = vst [vmem:[#allocation44_spill] sm:$0xff] %v6341_v2  ;;  %8098 = vst [vmem:[#allocation45_spill] sm:$0xff] %v6347_v8 }
 0x477   :  { %2217 = vmatpush1.bf16.msra.mxu1 %v6335_v24  ;;  %2258 = vmatpush1.bf16.msra.mxu0 %v6341_v2  ;;  %v6359_v24 = vld [vmem:[%s7625_s1 + $0x2c0] ss:$16 sps:$4 sm:$0xff]   ;;  %v6365_v2 = vld [vmem:[%s7625_s1 + $0x2c8] ss:$16 sps:$4 sm:$0xff]  }
 0x478   :  { %2218 = vmatprep.subr.bf16.mxu1 %v6347_v8  ;;  %2259 = vmatprep.subr.bf16.mxu0 %v6353_v51  ;;  %8100 = vst [vmem:[#allocation47_spill] sm:$0xff] %v6359_v24  ;;  %8101 = vst [vmem:[#allocation48_spill] sm:$0xff] %v6365_v2  ;;  %v6371_v8 = vld [vmem:[%s7625_s1 + $0x2e4] ss:$16 sps:$4 sm:$0xff]   ;;  %v6377_v51 = vld [vmem:[%s7625_s1 + $0x2ec] ss:$16 sps:$4 sm:$0xff]  }
 0x479   :  { %8102 = vst [vmem:[#allocation49_spill] sm:$0xff] %v6371_v8  ;;  %8103 = vst [vmem:[#allocation50_spill] sm:$0xff] %v6377_v51 }
 0x47b   :  { %2219 = vmatpush1.bf16.msra.mxu1 %v6359_v24  ;;  %2260 = vmatpush1.bf16.msra.mxu0 %v6365_v2  ;;  %v6383_v24 = vld [vmem:[%s7625_s1 + $0x2e0] ss:$16 sps:$4 sm:$0xff]   ;;  %v6389_v2 = vld [vmem:[%s7625_s1 + $0x2e8] ss:$16 sps:$4 sm:$0xff]  }
 0x47c   :  { %2220 = vmatprep.subr.bf16.mxu1 %v6371_v8  ;;  %2261 = vmatprep.subr.bf16.mxu0 %v6377_v51  ;;  %8104 = vst [vmem:[#allocation51_spill] sm:$0xff] %v6383_v24  ;;  %8105 = vst [vmem:[#allocation52_spill] sm:$0xff] %v6389_v2  ;;  %v6395_v8 = vld [vmem:[%s7625_s1 + $0x304] ss:$16 sps:$4 sm:$0xff]   ;;  %v6401_v51 = vld [vmem:[%s7625_s1 + $0x30c] ss:$16 sps:$4 sm:$0xff]  }
 0x47d   :  { %8106 = vst [vmem:[#allocation53_spill] sm:$0xff] %v6395_v8  ;;  %8107 = vst [vmem:[#allocation54_spill] sm:$0xff] %v6401_v51 }
 0x47f   :  { %2221 = vmatpush1.bf16.msra.mxu1 %v6383_v24  ;;  %2262 = vmatpush1.bf16.msra.mxu0 %v6389_v2  ;;  %v6407_v24 = vld [vmem:[%s7625_s1 + $0x300] ss:$16 sps:$4 sm:$0xff]   ;;  %v6413_v2 = vld [vmem:[%s7625_s1 + $0x308] ss:$16 sps:$4 sm:$0xff]  }
 0x480   :  { %2222 = vmatprep.subr.bf16.mxu1 %v6395_v8  ;;  %2263 = vmatprep.subr.bf16.mxu0 %v6401_v51  ;;  %8108 = vst [vmem:[#allocation55_spill] sm:$0xff] %v6407_v24  ;;  %8109 = vst [vmem:[#allocation56_spill] sm:$0xff] %v6413_v2  ;;  %v6419_v8 = vld [vmem:[%s7625_s1 + $0x324] ss:$16 sps:$4 sm:$0xff]   ;;  %v6425_v51 = vld [vmem:[%s7625_s1 + $0x32c] ss:$16 sps:$4 sm:$0xff]  }
 0x481   :  { %8110 = vst [vmem:[#allocation57_spill] sm:$0xff] %v6419_v8  ;;  %8111 = vst [vmem:[#allocation58_spill] sm:$0xff] %v6425_v51 }
 0x483   :  { %2223 = vmatpush1.bf16.msra.mxu1 %v6407_v24  ;;  %2264 = vmatpush1.bf16.msra.mxu0 %v6413_v2  ;;  %v6431_v24 = vld [vmem:[%s7625_s1 + $0x320] ss:$16 sps:$4 sm:$0xff]   ;;  %v6437_v2 = vld [vmem:[%s7625_s1 + $0x328] ss:$16 sps:$4 sm:$0xff]  }
 0x484   :  { %2224 = vmatprep.subr.bf16.mxu1 %v6419_v8  ;;  %2265 = vmatprep.subr.bf16.mxu0 %v6425_v51  ;;  %8112 = vst [vmem:[#allocation59_spill] sm:$0xff] %v6431_v24  ;;  %8113 = vst [vmem:[#allocation20_spill] sm:$0xff] %v6437_v2  ;;  %v6443_v8 = vld [vmem:[%s7625_s1 + $0x344] ss:$16 sps:$4 sm:$0xff]   ;;  %v6449_v51 = vld [vmem:[%s7625_s1 + $0x34c] ss:$16 sps:$4 sm:$0xff]  }
 0x485   :  { %8114 = vst [vmem:[#allocation22_spill] sm:$0xff] %v6443_v8  ;;  %8115 = vst [vmem:[#allocation21_spill] sm:$0xff] %v6449_v51 }
 0x487   :  { %2225 = vmatpush1.bf16.msra.mxu1 %v6431_v24  ;;  %2266 = vmatpush1.bf16.msra.mxu0 %v6437_v2  ;;  %v6455_v24 = vld [vmem:[%s7625_s1 + $0x340] ss:$16 sps:$4 sm:$0xff]   ;;  %v6461_v2 = vld [vmem:[%s7625_s1 + $0x348] ss:$16 sps:$4 sm:$0xff]  }
 0x488   :  { %2226 = vmatprep.subr.bf16.mxu1 %v6443_v8  ;;  %2267 = vmatprep.subr.bf16.mxu0 %v6449_v51  ;;  %8116 = vst [vmem:[#allocation23_spill] sm:$0xff] %v6455_v24  ;;  %8117 = vst [vmem:[#allocation24_spill] sm:$0xff] %v6461_v2  ;;  %v6467_v8 = vld [vmem:[%s7625_s1 + $0x364] ss:$16 sps:$4 sm:$0xff]   ;;  %v6473_v51 = vld [vmem:[%s7625_s1 + $0x36c] ss:$16 sps:$4 sm:$0xff]  }
 0x489   :  { %8118 = vst [vmem:[#allocation26_spill] sm:$0xff] %v6467_v8  ;;  %8119 = vst [vmem:[#allocation25_spill] sm:$0xff] %v6473_v51 }
 0x48b   :  { %2227 = vmatpush1.bf16.msra.mxu1 %v6455_v24  ;;  %2268 = vmatpush1.bf16.msra.mxu0 %v6461_v2  ;;  %v6479_v24 = vld [vmem:[%s7625_s1 + $0x360] ss:$16 sps:$4 sm:$0xff]   ;;  %v6485_v2 = vld [vmem:[%s7625_s1 + $0x368] ss:$16 sps:$4 sm:$0xff]  }
 0x48c   :  { %2228 = vmatprep.subr.bf16.mxu1 %v6467_v8  ;;  %2269 = vmatprep.subr.bf16.mxu0 %v6473_v51  ;;  %8120 = vst [vmem:[#allocation27_spill] sm:$0xff] %v6479_v24  ;;  %8121 = vst [vmem:[#allocation28_spill] sm:$0xff] %v6485_v2  ;;  %v6491_v8 = vld [vmem:[%s7625_s1 + $0x184] ss:$16 sps:$4 sm:$0xff]   ;;  %v6497_v51 = vld [vmem:[%s7625_s1 + $0x18c] ss:$16 sps:$4 sm:$0xff]  }
 0x48d   :  { %8122 = vst [vmem:[#allocation29_spill] sm:$0xff] %v6491_v8  ;;  %8123 = vst [vmem:[#allocation65_spill] sm:$0xff] %v6497_v51 }
 0x48f   :  { %2229 = vmatpush1.bf16.msra.mxu1 %v6479_v24  ;;  %2270 = vmatpush1.bf16.msra.mxu0 %v6485_v2 }
 0x490   :  { %2296 = vmatprep.subr.bf16.mxu1 %v6491_v8  ;;  %2337 = vmatprep.subr.bf16.mxu0 %v6497_v51 }
 0x505   :  { %v1937_v24 = vpop.f32.mrb[52].mxu1  ;;  %v1978_v59 = vpop.f32.mrb[52].mxu0 }
 0x506   :  { %v1939_v13 = vpop.f32.mrb[53].mxu1  ;;  %v1980_v11 = vpop.f32.mrb[53].mxu0 }
 0x507   :  { %v1941_v27 = vpop.f32.mrb[54].mxu1  ;;  %v1982_v2 = vpop.f32.mrb[54].mxu0 }
 0x508   :  { %v1942_v53 = vpop.f32.mrb[55].mxu1  ;;  %v1983_v40 = vpop.f32.mrb[55].mxu0 }
 0x525   :  { %v2019_v14 = vpop.f32.mrb[56].mxu1  ;;  %v2060_v34 = vpop.f32.mrb[56].mxu0 }
 0x526   :  { %v2020_v20 = vadd.f32 %v2019_v14, %v1937_v24  ;;  %v2061_v32 = vadd.f32 %v2060_v34, %v1978_v59  ;;  %v2021_v8 = vpop.f32.mrb[57].mxu1  ;;  %v2062_v29 = vpop.f32.mrb[57].mxu0  ;;  %v8125_v24 = vld [vmem:[#allocation70_spill] sm:$0xff] }
 0x527   :  { %v2022_v31 = vadd.f32 %v2021_v8, %v1939_v13  ;;  %v2063_v33 = vadd.f32 %v2062_v29, %v1980_v11  ;;  %v2023_v30 = vpop.f32.mrb[58].mxu1  ;;  %v2064_v35 = vpop.f32.mrb[58].mxu0 }
 0x528   :  { %v2067_v51 = vadd.f32 %v2020_v20, %v5771_v43  ;;  %v2024_v46 = vpop.f32.mrb[59].mxu1  ;;  %v2065_v21 = vpop.f32.mrb[59].mxu0  ;;  %v2069_v40 = vadd.f32 %v2061_v32, %v5781_v39 }
 0x529   :  { %v2068_v16 = vadd.f32 %v2022_v31, %v5775_v25  ;;  %v2070_v34 = vadd.f32 %v2063_v33, %v8073_v23  ;;  %v8124_v33 = vld [vmem:[#allocation69_spill] sm:$0xff] }
 0x52a   :  { %v3997_v27 = vmul.f32 -1.442695, %v2067_v51  ;;  %v3999_v14 = vmul.f32 -1.442695, %v2069_v40  ;;  %v8126_v40 = vld [vmem:[#allocation71_spill] sm:$0xff] }
 0x52b   :  { %v3998_v2 = vmul.f32 -1.442695, %v2068_v16 }
 0x52c   :  { %4480 = vpow2.f32 %v3997_v27 }
 0x52d   :  { %4482 = vpow2.f32 %v3998_v2 }
 0x52e   :  { %4484 = vtanh.f32 %v2070_v34 }
 0x52f   :  { %4486 = vpow2.f32 %v3999_v14  ;;  %v8127_v14 = vld [vmem:[#allocation72_spill] sm:$0xff] }
 0x536   :  { %v4481_v53 = vpop.eup %4480 }
 0x537   :  { %v2080_v13 = vadd.f32 1.0, %v4481_v53  ;;  %v4483_v30 = vpop.eup %4482 }
 0x538   :  { %v2081_v35 = vadd.f32 1.0, %v4483_v30  ;;  %v4485_v21 = vpop.eup %4484 }
 0x539   :  { %4488 = vrcp.f32 %v2080_v13  ;;  %v4487_v46 = vpop.eup %4486 }
 0x53a   :  { %4490 = vrcp.f32 %v2081_v35  ;;  %v2082_v20 = vadd.f32 1.0, %v4487_v46 }
 0x53c   :  { %4492 = vrcp.f32 %v2082_v20 }
 0x543   :  { %v4489_v31 = vpop.eup %4488 }
 0x544   :  { %v2091_v29 = vmul.f32 %v4489_v31, %v4485_v21  ;;  %v4491_v16 = vpop.eup %4490 }
 0x545   :  { %v2137_v11 = vpop.f32.mrb[60].mxu1  ;;  %v2178_v59 = vpop.f32.mrb[60].mxu0  ;;  %v2090_v32 = vmul.f32 %v4491_v16, %v6011_v18 }
 0x546   :  { %v2185_v51 = vadd.f32 %v2137_v11, %v8124_v33  ;;  %v2187_v8 = vadd.f32 %v2178_v59, %v8125_v24  ;;  %v2139_v27 = vpop.f32.mrb[61].mxu1  ;;  %v2180_v2 = vpop.f32.mrb[61].mxu0 }
 0x547   :  { %v2186_v34 = vadd.f32 %v2139_v27, %v8126_v40  ;;  %v2188_v53 = vadd.f32 %v2180_v2, %v8127_v14  ;;  %v2141_v13 = vpop.f32.mrb[62].mxu1  ;;  %v2182_v30 = vpop.f32.mrb[62].mxu0  ;;  %v6509_v35 = vadd.f32 %v2091_v29, %v2090_v32 }
 0x548   :  { %v4000_v21 = vmul.f32 -1.442695, %v2185_v51  ;;  %v2142_v46 = vpop.f32.mrb[63].mxu1  ;;  %v2183_v31 = vpop.f32.mrb[63].mxu0  ;;  %v4002_v16 = vmul.f32 -1.442695, %v2187_v8 }
 0x549   :  { %v4001_v23 = vmul.f32 -1.442695, %v2186_v34  ;;  %4494 = vtanh.f32 %v6509_v35  ;;  %v4493_v18 = vpop.eup %4492  ;;  %v8129_v46 = vld [vmem:[#allocation5_spill] sm:$0xff]  ;;  %v8130_v31 = vld [vmem:[#allocation7_spill] sm:$0xff] }
 0x54a   :  { %4496 = vpow2.f32 %v4000_v21  ;;  %v8128_v21 = vld [vmem:[#allocation6_spill] sm:$0xff] }
 0x54b   :  { %4498 = vpow2.f32 %v4001_v23 }
 0x54c   :  { %4500 = vtanh.f32 %v2188_v53 }
 0x54d   :  { %4502 = vpow2.f32 %v4002_v16  ;;  %v8137_v16 = vld [vmem:[#allocation13_spill] sm:$0xff] }
 0x553   :  { %v4495_v11 = vpop.eup %4494 }
 0x554   :  { %v4497_v59 = vpop.eup %4496  ;;  %v2094_v33 = vmul.f32 %v4495_v11, %v4493_v18  ;;  %v8133_v18 = vld [vmem:[#allocation9_spill] sm:$0xff]  ;;  %v8138_v11 = vld [vmem:[#allocation15_spill] sm:$0xff] }
 0x555   :  { %v2198_v24 = vadd.f32 1.0, %v4497_v59  ;;  %v4499_v27 = vpop.eup %4498  ;;  %v8139_v59 = vld [vmem:[#allocation16_spill] sm:$0xff] }
 0x556   :  { %v2095_v29 = vpack.c.bf16 %v2094_v33, %v2094_v33  ;;  %v2199_v32 = vadd.f32 1.0, %v4499_v27  ;;  %v4501_v23 = vpop.eup %4500  ;;  %v8140_v33 = vld [vmem:[#allocation18_spill] sm:$0xff]  ;;  %v8142_v27 = vld [vmem:[#allocation19_spill] sm:$0xff] }
 0x557   :  { %4504 = vrcp.f32 %v2198_v24  ;;  %v4503_v20 = vpop.eup %4502  ;;  %v8141_v24 = vld [vmem:[#allocation17_spill] sm:$0xff] }
 0x558   :  { %2247 = vmatmul.mubr.bf16.vlgmr.msra.gmra.mrb[64].mxu1 %v2095_v29  ;;  %2288 = vmatmul.mubr.bf16.vlgmr.msra.gmra.mrb[64].mxu0 %v2095_v29  ;;  %4506 = vrcp.f32 %v2199_v32  ;;  %v2200_v40 = vadd.f32 1.0, %v4503_v20  ;;  %v8143_v29 = vld [vmem:[#allocation60_spill] sm:$0xff]  ;;  %v8144_v32 = vld [vmem:[#allocation61_spill] sm:$0xff]  ;;  %v8146_v20 = vld [vmem:[#allocation63_spill] sm:$0xff] }
 0x559   :  { %2297 = vmatpush1.bf16.msra.mxu1 %v6017_v55  ;;  %2338 = vmatpush1.bf16.msra.mxu0 %v6023_v56 }
 0x55a   :  { %2298 = vmatprep.subr.bf16.mxu1 %v6029_v57  ;;  %2339 = vmatprep.subr.bf16.mxu0 %v6035_v58  ;;  %4508 = vrcp.f32 %v2200_v40  ;;  %v8150_v40 = vld [vmem:[#allocation32_spill] sm:$0xff] }
 0x55b   :  { %2328 = vmatprep.mubr.bf16.mxu1 %v7920_v41  ;;  %2369 = vmatprep.mubr.bf16.mxu0 %v7920_v41 }
 0x55d   :  { %2299 = vmatpush1.bf16.msra.mxu1 %v6043_v60  ;;  %2340 = vmatpush1.bf16.msra.mxu0 %v6049_v61 }
 0x55e   :  { %2300 = vmatprep.subr.bf16.mxu1 %v6055_v0  ;;  %2341 = vmatprep.subr.bf16.mxu0 %v6061_v1 }
 0x561   :  { %v4505_v51 = vpop.eup %4504  ;;  %2301 = vmatpush1.bf16.msra.mxu1 %v6067_v6  ;;  %2342 = vmatpush1.bf16.msra.mxu0 %v6073_v7 }
 0x562   :  { %v2209_v8 = vmul.f32 %v4505_v51, %v4501_v23  ;;  %2302 = vmatprep.subr.bf16.mxu1 %v6079_v9  ;;  %2343 = vmatprep.subr.bf16.mxu0 %v6085_v10  ;;  %v4507_v2 = vpop.eup %4506  ;;  %v8145_v23 = vld [vmem:[#allocation62_spill] sm:$0xff]  ;;  %v8147_v51 = vld [vmem:[#allocation64_spill] sm:$0xff] }
 0x563   :  { %v2208_v34 = vmul.f32 %v4507_v2, %v6101_v3  ;;  %v8149_v2 = vld [vmem:[#allocation31_spill] sm:$0xff] }
 0x564   :  { %v4509_v3 = vpop.eup %4508 }
 0x565   :  { %2303 = vmatpush1.bf16.msra.mxu1 %v6092_v62  ;;  %2344 = vmatpush1.bf16.msra.mxu0 %v6098_v63  ;;  %v6529_v14 = vadd.f32 %v2209_v8, %v2208_v34  ;;  %v8148_v8 = vld [vmem:[#allocation30_spill] sm:$0xff]  ;;  %v8151_v34 = vld [vmem:[#allocation33_spill] sm:$0xff] }
 0x566   :  { %2304 = vmatprep.subr.bf16.mxu1 %v6106_v45  ;;  %2345 = vmatprep.subr.bf16.mxu0 %v6112_v12 }
 0x567   :  { %4510 = vtanh.f32 %v6529_v14 }
 0x569   :  { %2305 = vmatpush1.bf16.msra.mxu1 %v6119_v17  ;;  %2346 = vmatpush1.bf16.msra.mxu0 %v6125_v22 }
 0x56a   :  { %2306 = vmatprep.subr.bf16.mxu1 %v6131_v37  ;;  %2347 = vmatprep.subr.bf16.mxu0 %v6137_v38 }
 0x56d   :  { %2307 = vmatpush1.bf16.msra.mxu1 %v6143_v36  ;;  %2348 = vmatpush1.bf16.msra.mxu0 %v6149_v44 }
 0x56e   :  { %2308 = vmatprep.subr.bf16.mxu1 %v6155_v47  ;;  %2349 = vmatprep.subr.bf16.mxu0 %v6161_v48 }
 0x571   :  { %2309 = vmatpush1.bf16.msra.mxu1 %v6167_v52  ;;  %2350 = vmatpush1.bf16.msra.mxu0 %v6173_v28  ;;  %v4511_v53 = vpop.eup %4510 }
 0x572   :  { %2310 = vmatprep.subr.bf16.mxu1 %v6179_v49  ;;  %2351 = vmatprep.subr.bf16.mxu0 %v6185_v54  ;;  %v2212_v13 = vmul.f32 %v4511_v53, %v4509_v3  ;;  %v8152_v3 = vld [vmem:[#allocation34_spill] sm:$0xff]  ;;  %v8153_v53 = vld [vmem:[#allocation35_spill] sm:$0xff] }
 0x574   :  { %v2213_v30 = vpack.c.bf16 %v2212_v13, %v2212_v13  ;;  %v8154_v13 = vld [vmem:[#allocation36_spill] sm:$0xff] }
 0x575   :  { %2311 = vmatpush1.bf16.msra.mxu1 %v6191_v4  ;;  %2352 = vmatpush1.bf16.msra.mxu0 %v6197_v5 }
 0x576   :  { %2414 = vmatprep.subr.bf16.mxu1 %v5835_v42  ;;  %2455 = vmatprep.subr.bf16.mxu0 %v5841_v19  ;;  %v8131_v42 = vld [vmem:[#allocation8_spill] sm:$0xff]  ;;  %v8132_v19 = vld [vmem:[#allocation10_spill] sm:$0xff] }
 0x578   :  { %2329 = vmatmul.mubr.bf16.vlgmr.msra.gmra.mrb[68].mxu1 %v2213_v30  ;;  %2370 = vmatmul.mubr.bf16.vlgmr.msra.gmra.mrb[68].mxu0 %v2213_v30 }
 0x579   :  { %2415 = vmatpush1.bf16.msra.mxu1 %v5847_v15  ;;  %2456 = vmatpush1.bf16.msra.mxu0 %v5853_v26  ;;  %v8134_v15 = vld [vmem:[#allocation11_spill] sm:$0xff]  ;;  %v8135_v26 = vld [vmem:[#allocation12_spill] sm:$0xff] }
 0x57a   :  { %2416 = vmatprep.subr.bf16.mxu1 %v5859_v50  ;;  %2457 = vmatprep.subr.bf16.mxu0 %v8128_v21  ;;  %v8136_v50 = vld [vmem:[#allocation14_spill] sm:$0xff]  ;;  %v8155_v21 = vld [vmem:[#allocation37_spill] sm:$0xff] }
 0x57b   :  { %2446 = vmatprep.mubr.bf16.mxu1 %v7920_v41  ;;  %2487 = vmatprep.mubr.bf16.mxu0 %v7920_v41 }
 0x57d   :  { %2417 = vmatpush1.bf16.msra.mxu1 %v8129_v46  ;;  %2458 = vmatpush1.bf16.msra.mxu0 %v8130_v31  ;;  %v8156_v46 = vld [vmem:[#allocation38_spill] sm:$0xff]  ;;  %v8157_v31 = vld [vmem:[#allocation39_spill] sm:$0xff] }
 0x57e   :  { %2418 = vmatprep.subr.bf16.mxu1 %v8131_v42  ;;  %2459 = vmatprep.subr.bf16.mxu0 %v8132_v19  ;;  %v8158_v42 = vld [vmem:[#allocation40_spill] sm:$0xff]  ;;  %v8159_v19 = vld [vmem:[#allocation41_spill] sm:$0xff] }
 0x581   :  { %2419 = vmatpush1.bf16.msra.mxu1 %v8133_v18  ;;  %2460 = vmatpush1.bf16.msra.mxu0 %v8134_v15  ;;  %v8160_v18 = vld [vmem:[#allocation42_spill] sm:$0xff]  ;;  %v8161_v15 = vld [vmem:[#allocation43_spill] sm:$0xff] }
 0x582   :  { %2420 = vmatprep.subr.bf16.mxu1 %v8135_v26  ;;  %2461 = vmatprep.subr.bf16.mxu0 %v8136_v50  ;;  %v8162_v26 = vld [vmem:[#allocation44_spill] sm:$0xff]  ;;  %v8163_v50 = vld [vmem:[#allocation45_spill] sm:$0xff] }
 0x585   :  { %2421 = vmatpush1.bf16.msra.mxu1 %v8137_v16  ;;  %2462 = vmatpush1.bf16.msra.mxu0 %v8138_v11  ;;  %v8164_v16 = vld [vmem:[#allocation46_spill] sm:$0xff]  ;;  %v8166_v11 = vld [vmem:[#allocation48_spill] sm:$0xff] }
 0x586   :  { %2422 = vmatprep.subr.bf16.mxu1 %v8139_v59  ;;  %2463 = vmatprep.subr.bf16.mxu0 %v8140_v33  ;;  %v8167_v59 = vld [vmem:[#allocation49_spill] sm:$0xff]  ;;  %v8168_v33 = vld [vmem:[#allocation50_spill] sm:$0xff] }
 0x589   :  { %2423 = vmatpush1.bf16.msra.mxu1 %v8141_v24  ;;  %2464 = vmatpush1.bf16.msra.mxu0 %v8142_v27  ;;  %v8169_v24 = vld [vmem:[#allocation51_spill] sm:$0xff]  ;;  %v8170_v27 = vld [vmem:[#allocation52_spill] sm:$0xff] }
 0x58a   :  { %2424 = vmatprep.subr.bf16.mxu1 %v8143_v29  ;;  %2465 = vmatprep.subr.bf16.mxu0 %v8144_v32 }
 0x58d   :  { %2425 = vmatpush1.bf16.msra.mxu1 %v8145_v23  ;;  %2466 = vmatpush1.bf16.msra.mxu0 %v8146_v20 }
 0x58e   :  { %2426 = vmatprep.subr.bf16.mxu1 %v8147_v51  ;;  %2467 = vmatprep.subr.bf16.mxu0 %v8148_v8 }
 0x591   :  { %2427 = vmatpush1.bf16.msra.mxu1 %v8149_v2  ;;  %2468 = vmatpush1.bf16.msra.mxu0 %v8150_v40 }
 0x592   :  { %2428 = vmatprep.subr.bf16.mxu1 %v8151_v34  ;;  %2469 = vmatprep.subr.bf16.mxu0 %v8152_v3 }
 0x595   :  { %2429 = vmatpush1.bf16.msra.mxu1 %v8153_v53  ;;  %2470 = vmatpush1.bf16.msra.mxu0 %v8154_v13 }
 0x596   :  { %2525 = vmatprep.subr.bf16.mxu1 %v8155_v21  ;;  %2566 = vmatprep.subr.bf16.mxu0 %v8156_v46 }
 0x598   :  { %2447 = vmatmul.mubr.bf16.vlgmr.msra.gmra.mrb[72].mxu1 %v2213_v30  ;;  %2488 = vmatmul.mubr.bf16.vlgmr.msra.gmra.mrb[72].mxu0 %v2213_v30  ;;  %v8165_v30 = vld [vmem:[#allocation47_spill] sm:$0xff] }
 0x599   :  { %2526 = vmatpush1.bf16.msra.mxu1 %v8157_v31  ;;  %2567 = vmatpush1.bf16.msra.mxu0 %v8158_v42 }
 0x59a   :  { %2527 = vmatprep.subr.bf16.mxu1 %v8159_v19  ;;  %2568 = vmatprep.subr.bf16.mxu0 %v8160_v18  ;;  %v8171_v18 = vld [vmem:[#allocation53_spill] sm:$0xff] }
 0x59b   :  { %2557 = vmatprep.mubr.bf16.mxu1 %v7920_v41  ;;  %2598 = vmatprep.mubr.bf16.mxu0 %v7920_v41 }
 0x59d   :  { %2528 = vmatpush1.bf16.msra.mxu1 %v8161_v15  ;;  %2569 = vmatpush1.bf16.msra.mxu0 %v8162_v26  ;;  %v8172_v15 = vld [vmem:[#allocation54_spill] sm:$0xff]  ;;  %v8173_v26 = vld [vmem:[#allocation55_spill] sm:$0xff] }
 0x59e   :  { %2529 = vmatprep.subr.bf16.mxu1 %v8163_v50  ;;  %2570 = vmatprep.subr.bf16.mxu0 %v8164_v16  ;;  %v8174_v50 = vld [vmem:[#allocation56_spill] sm:$0xff]  ;;  %v8175_v16 = vld [vmem:[#allocation57_spill] sm:$0xff] }
 0x5a1   :  { %2530 = vmatpush1.bf16.msra.mxu1 %v8165_v30  ;;  %2571 = vmatpush1.bf16.msra.mxu0 %v8166_v11  ;;  %v8176_v30 = vld [vmem:[#allocation58_spill] sm:$0xff]  ;;  %v8177_v11 = vld [vmem:[#allocation59_spill] sm:$0xff] }
 0x5a2   :  { %2531 = vmatprep.subr.bf16.mxu1 %v8167_v59  ;;  %2572 = vmatprep.subr.bf16.mxu0 %v8168_v33  ;;  %v8178_v59 = vld [vmem:[#allocation20_spill] sm:$0xff]  ;;  %v8179_v33 = vld [vmem:[#allocation22_spill] sm:$0xff] }
 0x5a5   :  { %2532 = vmatpush1.bf16.msra.mxu1 %v8169_v24  ;;  %2573 = vmatpush1.bf16.msra.mxu0 %v8170_v27  ;;  %v8180_v24 = vld [vmem:[#allocation21_spill] sm:$0xff]  ;;  %v8181_v27 = vld [vmem:[#allocation23_spill] sm:$0xff] }
 0x5a6   :  { %2533 = vmatprep.subr.bf16.mxu1 %v8171_v18  ;;  %2574 = vmatprep.subr.bf16.mxu0 %v8172_v15  ;;  %v8182_v18 = vld [vmem:[#allocation24_spill] sm:$0xff]  ;;  %v8183_v15 = vld [vmem:[#allocation26_spill] sm:$0xff] }
 0x5a9   :  { %2534 = vmatpush1.bf16.msra.mxu1 %v8173_v26  ;;  %2575 = vmatpush1.bf16.msra.mxu0 %v8174_v50  ;;  %v8184_v26 = vld [vmem:[#allocation25_spill] sm:$0xff]  ;;  %v8185_v50 = vld [vmem:[#allocation27_spill] sm:$0xff] }
 0x5aa   :  { %2535 = vmatprep.subr.bf16.mxu1 %v8175_v16  ;;  %2576 = vmatprep.subr.bf16.mxu0 %v8176_v30  ;;  %v8186_v16 = vld [vmem:[#allocation28_spill] sm:$0xff]  ;;  %v8187_v30 = vld [vmem:[#allocation29_spill] sm:$0xff] }
 0x5ad   :  { %2536 = vmatpush1.bf16.msra.mxu1 %v8177_v11  ;;  %2577 = vmatpush1.bf16.msra.mxu0 %v8178_v59  ;;  %v8188_v11 = vld [vmem:[#allocation65_spill] sm:$0xff] }
 0x5ae   :  { %2537 = vmatprep.subr.bf16.mxu1 %v8179_v33  ;;  %2578 = vmatprep.subr.bf16.mxu0 %v8180_v24 }
 0x5b1   :  { %2538 = vmatpush1.bf16.msra.mxu1 %v8181_v27  ;;  %2579 = vmatpush1.bf16.msra.mxu0 %v8182_v18 }
 0x5b2   :  { %2539 = vmatprep.subr.bf16.mxu1 %v8183_v15  ;;  %2580 = vmatprep.subr.bf16.mxu0 %v8184_v26 }
 0x5b5   :  { %2540 = vmatpush1.bf16.msra.mxu1 %v8185_v50  ;;  %2581 = vmatpush1.bf16.msra.mxu0 %v8186_v16 }
 0x5b6   :  { %2607 = vmatprep.subr.bf16.mxu1 %v8187_v30  ;;  %2648 = vmatprep.subr.bf16.mxu0 %v8188_v11 }
 0x62b   :  { %v2248_v59 = vpop.f32.mrb[64].mxu1  ;;  %v2289_v33 = vpop.f32.mrb[64].mxu0 }
 0x62c   :  { %v2250_v19 = vpop.f32.mrb[65].mxu1  ;;  %v2291_v24 = vpop.f32.mrb[65].mxu0 }
 0x62d   :  { %v2252_v42 = vpop.f32.mrb[66].mxu1  ;;  %v2293_v27 = vpop.f32.mrb[66].mxu0 }
 0x62e   :  { %v2253_v31 = vpop.f32.mrb[67].mxu1  ;;  %v2294_v18 = vpop.f32.mrb[67].mxu0 }
 0x64b   :  { %v2330_v46 = vpop.f32.mrb[68].mxu1  ;;  %v2371_v15 = vpop.f32.mrb[68].mxu0 }
 0x64c   :  { %v2331_v21 = vadd.f32 %v2330_v46, %v2248_v59  ;;  %v2372_v26 = vadd.f32 %v2371_v15, %v2289_v33  ;;  %v2332_v13 = vpop.f32.mrb[69].mxu1  ;;  %v2373_v50 = vpop.f32.mrb[69].mxu0  ;;  %v8189_v46 = vld [vmem:[#allocation4_spill] sm:$0xff] }
 0x64d   :  { %v2333_v53 = vadd.f32 %v2332_v13, %v2250_v19  ;;  %v2374_v16 = vadd.f32 %v2373_v50, %v2291_v24  ;;  %v2334_v3 = vpop.f32.mrb[70].mxu1  ;;  %v2375_v30 = vpop.f32.mrb[70].mxu0  ;;  %v8191_v24 = vld [vmem:[#allocation74_spill] sm:$0xff] }
 0x64e   :  { %v2378_v11 = vadd.f32 %v2331_v21, %v5771_v43  ;;  %v2335_v34 = vpop.f32.mrb[71].mxu1  ;;  %v2376_v40 = vpop.f32.mrb[71].mxu0  ;;  %v2380_v31 = vadd.f32 %v2372_v26, %v5781_v39 }
 0x64f   :  { %v2379_v2 = vadd.f32 %v2333_v53, %v5775_v25  ;;  %v2381_v18 = vadd.f32 %v2374_v16, %v8189_v46  ;;  %v8190_v16 = vld [vmem:[#allocation73_spill] sm:$0xff] }
 0x650   :  { %v4003_v42 = vmul.f32 -1.442695, %v2378_v11  ;;  %v4005_v15 = vmul.f32 -1.442695, %v2380_v31 }
 0x651   :  { %v4004_v27 = vmul.f32 -1.442695, %v2379_v2 }
 0x652   :  { %4512 = vpow2.f32 %v4003_v42 }
 0x653   :  { %4514 = vpow2.f32 %v4004_v27 }
 0x654   :  { %4516 = vtanh.f32 %v2381_v18  ;;  %v8192_v18 = vld [vmem:[#allocation75_spill] sm:$0xff] }
 0x655   :  { %4518 = vpow2.f32 %v4005_v15 }
 0x65c   :  { %v4513_v59 = vpop.eup %4512 }
 0x65d   :  { %v2391_v13 = vadd.f32 1.0, %v4513_v59  ;;  %v4515_v3 = vpop.eup %4514  ;;  %v8193_v59 = vld [vmem:[#allocation76_spill] sm:$0xff] }
 0x65e   :  { %v2392_v21 = vadd.f32 1.0, %v4515_v3  ;;  %v4517_v40 = vpop.eup %4516 }
 0x65f   :  { %4520 = vrcp.f32 %v2391_v13  ;;  %v4519_v34 = vpop.eup %4518 }
 0x660   :  { %4522 = vrcp.f32 %v2392_v21  ;;  %v2393_v50 = vadd.f32 1.0, %v4519_v34 }
 0x662   :  { %4524 = vrcp.f32 %v2393_v50 }
 0x669   :  { %v4521_v53 = vpop.eup %4520 }
 0x66a   :  { %v2402_v19 = vmul.f32 %v4521_v53, %v4517_v40  ;;  %v4523_v2 = vpop.eup %4522 }
 0x66b   :  { %v2448_v30 = vpop.f32.mrb[72].mxu1  ;;  %v2489_v11 = vpop.f32.mrb[72].mxu0  ;;  %v2401_v26 = vmul.f32 %v4523_v2, %v6509_v35 }
 0x66c   :  { %v2496_v33 = vadd.f32 %v2448_v30, %v8190_v16  ;;  %v2498_v42 = vadd.f32 %v2489_v11, %v8191_v24  ;;  %v2450_v27 = vpop.f32.mrb[73].mxu1  ;;  %v2491_v31 = vpop.f32.mrb[73].mxu0 }
 0x66d   :  { %v2497_v15 = vadd.f32 %v2450_v27, %v8192_v18  ;;  %v2499_v13 = vadd.f32 %v2491_v31, %v8193_v59  ;;  %v2452_v3 = vpop.f32.mrb[74].mxu1  ;;  %v2493_v21 = vpop.f32.mrb[74].mxu0  ;;  %v6627_v46 = vadd.f32 %v2402_v19, %v2401_v26  ;;  %v8212_v31 = vld [vmem:[#allocation34_spill] sm:$0xff]  ;;  %v8213_v18 = vld [vmem:[#allocation35_spill] sm:$0xff] }
 0x66e   :  { %v4006_v40 = vmul.f32 -1.442695, %v2496_v33  ;;  %v2453_v34 = vpop.f32.mrb[75].mxu1  ;;  %v2494_v53 = vpop.f32.mrb[75].mxu0  ;;  %v4008_v2 = vmul.f32 -1.442695, %v2498_v42 }
 0x66f   :  { %v4007_v39 = vmul.f32 -1.442695, %v2497_v15  ;;  %4526 = vtanh.f32 %v6627_v46  ;;  %v4525_v35 = vpop.eup %4524  ;;  %v8210_v33 = vld [vmem:[#allocation32_spill] sm:$0xff]  ;;  %v8211_v42 = vld [vmem:[#allocation33_spill] sm:$0xff]  ;;  %v8220_v15 = vld [vmem:[#allocation42_spill] sm:$0xff] }
 0x670   :  { %4528 = vpow2.f32 %v4006_v40  ;;  %v8221_v59 = vld [vmem:[#allocation43_spill] sm:$0xff]  ;;  %v8223_v3 = vld [vmem:[#allocation45_spill] sm:$0xff]  ;;  %v8224_v21 = vld [vmem:[#allocation46_spill] sm:$0xff] }
 0x671   :  { %4530 = vpow2.f32 %v4007_v39  ;;  %v8225_v40 = vld [vmem:[#allocation47_spill] sm:$0xff]  ;;  %v8226_v34 = vld [vmem:[#allocation48_spill] sm:$0xff]  ;;  %v8227_v53 = vld [vmem:[#allocation49_spill] sm:$0xff] }
 0x672   :  { %4532 = vtanh.f32 %v2499_v13  ;;  %v8222_v13 = vld [vmem:[#allocation44_spill] sm:$0xff] }
 0x673   :  { %4534 = vpow2.f32 %v4008_v2  ;;  %v8229_v2 = vld [vmem:[#allocation51_spill] sm:$0xff] }
 0x679   :  { %v4527_v30 = vpop.eup %4526 }
 0x67a   :  { %v4529_v11 = vpop.eup %4528  ;;  %v2405_v16 = vmul.f32 %v4527_v30, %v4525_v35  ;;  %v8228_v35 = vld [vmem:[#allocation50_spill] sm:$0xff]  ;;  %v8230_v30 = vld [vmem:[#allocation52_spill] sm:$0xff] }
 0x67b   :  { %v2509_v24 = vadd.f32 1.0, %v4529_v11  ;;  %v4531_v27 = vpop.eup %4530  ;;  %v8231_v11 = vld [vmem:[#allocation53_spill] sm:$0xff] }
 0x67c   :  { %v2406_v19 = vpack.c.bf16 %v2405_v16, %v2405_v16  ;;  %v2510_v26 = vadd.f32 1.0, %v4531_v27  ;;  %v4533_v39 = vpop.eup %4532  ;;  %v8232_v16 = vld [vmem:[#allocation54_spill] sm:$0xff]  ;;  %v8234_v27 = vld [vmem:[#allocation56_spill] sm:$0xff] }
 0x67d   :  { %4536 = vrcp.f32 %v2509_v24  ;;  %v8233_v24 = vld [vmem:[#allocation55_spill] sm:$0xff] }
 0x67e   :  { %2558 = vmatmul.mubr.bf16.vlgmr.msra.gmra.mrb[76].mxu1 %v2406_v19  ;;  %2599 = vmatmul.mubr.bf16.vlgmr.msra.gmra.mrb[76].mxu0 %v2406_v19  ;;  %4538 = vrcp.f32 %v2510_v26  ;;  %v8235_v19 = vld [vmem:[#allocation57_spill] sm:$0xff]  ;;  %v8236_v26 = vld [vmem:[#allocation58_spill] sm:$0xff] }
 0x67f   :  { %2608 = vmatpush1.bf16.msra.mxu1 %v6017_v55  ;;  %2649 = vmatpush1.bf16.msra.mxu0 %v6023_v56  ;;  %v4535_v55 = vpop.eup %4534 }
 0x680   :  { %2609 = vmatprep.subr.bf16.mxu1 %v6029_v57  ;;  %2650 = vmatprep.subr.bf16.mxu0 %v6035_v58  ;;  %v2511_v58 = vadd.f32 1.0, %v4535_v55  ;;  %v8238_v55 = vld [vmem:[#allocation20_spill] sm:$0xff] }
 0x681   :  { %2639 = vmatprep.mubr.bf16.mxu1 %v7920_v41  ;;  %2680 = vmatprep.mubr.bf16.mxu0 %v7920_v41 }
 0x682   :  { %4540 = vrcp.f32 %v2511_v58  ;;  %v8242_v58 = vld [vmem:[#allocation24_spill] sm:$0xff] }
 0x683   :  { %2610 = vmatpush1.bf16.msra.mxu1 %v6043_v60  ;;  %2651 = vmatpush1.bf16.msra.mxu0 %v6049_v61 }
 0x684   :  { %2611 = vmatprep.subr.bf16.mxu1 %v6055_v0  ;;  %2652 = vmatprep.subr.bf16.mxu0 %v6061_v1 }
 0x687   :  { %v4537_v50 = vpop.eup %4536  ;;  %2612 = vmatpush1.bf16.msra.mxu1 %v6067_v6  ;;  %2653 = vmatpush1.bf16.msra.mxu0 %v6073_v7 }
 0x688   :  { %v2520_v56 = vmul.f32 %v4537_v50, %v4533_v39  ;;  %2613 = vmatprep.subr.bf16.mxu1 %v6079_v9  ;;  %2654 = vmatprep.subr.bf16.mxu0 %v6085_v10  ;;  %v4539_v57 = vpop.eup %4538  ;;  %v6669_v9 = vld [vmem:[%s7625_s1 + $0x84] ss:$16 sps:$4 sm:$0xff]   ;;  %v6675_v10 = vld [vmem:[%s7625_s1 + $0x8c] ss:$16 sps:$4 sm:$0xff]  }
 0x689   :  { %v2519_v60 = vmul.f32 %v4539_v57, %v6529_v14  ;;  %v8209_v14 = vld [vmem:[#allocation31_spill] sm:$0xff]  ;;  %v8239_v50 = vld [vmem:[#allocation22_spill] sm:$0xff] }
 0x68a   :  { %v8237_v39 = vld [vmem:[#allocation59_spill] sm:$0xff] }
 0x68b   :  { %2614 = vmatpush1.bf16.msra.mxu1 %v6092_v62  ;;  %2655 = vmatpush1.bf16.msra.mxu0 %v6098_v63  ;;  %v6647_v61 = vadd.f32 %v2520_v56, %v2519_v60  ;;  %v6681_v62 = vld [vmem:[%s7625_s1 + $0x80] ss:$16 sps:$4 sm:$0xff]   ;;  %v6687_v63 = vld [vmem:[%s7625_s1 + $0x88] ss:$16 sps:$4 sm:$0xff]  }
 0x68c   :  { %2615 = vmatprep.subr.bf16.mxu1 %v6106_v45  ;;  %2656 = vmatprep.subr.bf16.mxu0 %v6112_v12  ;;  %v4541_v0 = vpop.eup %4540  ;;  %v6693_v45 = vld [vmem:[%s7625_s1 + $0xa4] ss:$16 sps:$4 sm:$0xff]   ;;  %v6699_v12 = vld [vmem:[%s7625_s1 + $0xac] ss:$16 sps:$4 sm:$0xff]  }
 0x68d   :  { %4542 = vtanh.f32 %v6647_v61  ;;  %8194 = vst [vmem:[#allocation66_spill] sm:$0xff] %v6699_v12  ;;  %v8240_v56 = vld [vmem:[#allocation21_spill] sm:$0xff]  ;;  %v8241_v57 = vld [vmem:[#allocation23_spill] sm:$0xff]  ;;  %v8243_v60 = vld [vmem:[#allocation26_spill] sm:$0xff] }
 0x68f   :  { %2616 = vmatpush1.bf16.msra.mxu1 %v6119_v17  ;;  %2657 = vmatpush1.bf16.msra.mxu0 %v6125_v22  ;;  %v6707_v17 = vld [vmem:[%s7625_s1 + $0xa0] ss:$16 sps:$4 sm:$0xff]   ;;  %v6713_v22 = vld [vmem:[%s7625_s1 + $0xa8] ss:$16 sps:$4 sm:$0xff]  }
 0x690   :  { %2617 = vmatprep.subr.bf16.mxu1 %v6131_v37  ;;  %2658 = vmatprep.subr.bf16.mxu0 %v6137_v38  ;;  %8195 = vst [vmem:[#allocation67_spill] sm:$0xff] %v6707_v17  ;;  %8196 = vst [vmem:[#allocation68_spill] sm:$0xff] %v6713_v22  ;;  %v6719_v37 = vld [vmem:[%s7625_s1 + $0xc4] ss:$16 sps:$4 sm:$0xff]   ;;  %v6725_v38 = vld [vmem:[%s7625_s1 + $0xcc] ss:$16 sps:$4 sm:$0xff]  }
 0x691   :  { %8197 = vst [vmem:[#allocation69_spill] sm:$0xff] %v6719_v37  ;;  %8198 = vst [vmem:[#allocation70_spill] sm:$0xff] %v6725_v38 }
 0x693   :  { %2618 = vmatpush1.bf16.msra.mxu1 %v6143_v36  ;;  %2659 = vmatpush1.bf16.msra.mxu0 %v6149_v44  ;;  %v6731_v36 = vld [vmem:[%s7625_s1 + $0xc0] ss:$16 sps:$4 sm:$0xff]   ;;  %v6737_v44 = vld [vmem:[%s7625_s1 + $0xc8] ss:$16 sps:$4 sm:$0xff]  }
 0x694   :  { %2619 = vmatprep.subr.bf16.mxu1 %v6155_v47  ;;  %2660 = vmatprep.subr.bf16.mxu0 %v6161_v48  ;;  %8199 = vst [vmem:[#allocation71_spill] sm:$0xff] %v6731_v36  ;;  %8200 = vst [vmem:[#allocation72_spill] sm:$0xff] %v6737_v44  ;;  %v6743_v47 = vld [vmem:[%s7625_s1 + $0xe4] ss:$16 sps:$4 sm:$0xff]   ;;  %v6749_v48 = vld [vmem:[%s7625_s1 + $0xec] ss:$16 sps:$4 sm:$0xff]  }
 0x695   :  { %8201 = vst [vmem:[#allocation6_spill] sm:$0xff] %v6743_v47  ;;  %8202 = vst [vmem:[#allocation5_spill] sm:$0xff] %v6749_v48 }
 0x697   :  { %2620 = vmatpush1.bf16.msra.mxu1 %v6167_v52  ;;  %2661 = vmatpush1.bf16.msra.mxu0 %v6173_v28  ;;  %v4543_v1 = vpop.eup %4542  ;;  %v6755_v52 = vld [vmem:[%s7625_s1 + $0xe0] ss:$16 sps:$4 sm:$0xff]   ;;  %v6761_v28 = vld [vmem:[%s7625_s1 + $0xe8] ss:$16 sps:$4 sm:$0xff]  }
 0x698   :  { %2621 = vmatprep.subr.bf16.mxu1 %v6179_v49  ;;  %2662 = vmatprep.subr.bf16.mxu0 %v6185_v54  ;;  %v2523_v6 = vmul.f32 %v4543_v1, %v4541_v0  ;;  %8203 = vst [vmem:[#allocation7_spill] sm:$0xff] %v6755_v52  ;;  %8204 = vst [vmem:[#allocation8_spill] sm:$0xff] %v6761_v28  ;;  %v6767_v49 = vld [vmem:[%s7625_s1 + $0x104] ss:$16 sps:$4 sm:$0xff]   ;;  %v6773_v54 = vld [vmem:[%s7625_s1 + $0x10c] ss:$16 sps:$4 sm:$0xff]  }
 0x699   :  { %8205 = vst [vmem:[#allocation10_spill] sm:$0xff] %v6767_v49  ;;  %8206 = vst [vmem:[#allocation9_spill] sm:$0xff] %v6773_v54  ;;  %v8244_v0 = vld [vmem:[#allocation25_spill] sm:$0xff]  ;;  %v8245_v1 = vld [vmem:[#allocation27_spill] sm:$0xff] }
 0x69a   :  { %v2524_v7 = vpack.c.bf16 %v2523_v6, %v2523_v6  ;;  %v8246_v6 = vld [vmem:[#allocation28_spill] sm:$0xff] }
 0x69b   :  { %2622 = vmatpush1.bf16.msra.mxu1 %v6191_v4  ;;  %2663 = vmatpush1.bf16.msra.mxu0 %v6197_v5  ;;  %v6779_v4 = vld [vmem:[%s7625_s1 + $0x100] ss:$16 sps:$4 sm:$0xff]   ;;  %v6785_v5 = vld [vmem:[%s7625_s1 + $0x108] ss:$16 sps:$4 sm:$0xff]  }
 0x69c   :  { %2725 = vmatprep.subr.bf16.mxu1 %v6669_v9  ;;  %2766 = vmatprep.subr.bf16.mxu0 %v6675_v10  ;;  %8207 = vst [vmem:[#allocation11_spill] sm:$0xff] %v6779_v4  ;;  %8208 = vst [vmem:[#allocation12_spill] sm:$0xff] %v6785_v5 }
 0x69e   :  { %2640 = vmatmul.mubr.bf16.vlgmr.msra.gmra.mrb[80].mxu1 %v2524_v7  ;;  %2681 = vmatmul.mubr.bf16.vlgmr.msra.gmra.mrb[80].mxu0 %v2524_v7 }
 0x69f   :  { %2726 = vmatpush1.bf16.msra.mxu1 %v6681_v62  ;;  %2767 = vmatpush1.bf16.msra.mxu0 %v6687_v63 }
 0x6a0   :  { %2727 = vmatprep.subr.bf16.mxu1 %v6693_v45  ;;  %2768 = vmatprep.subr.bf16.mxu0 %v6699_v12 }
 0x6a1   :  { %2757 = vmatprep.mubr.bf16.mxu1 %v7920_v41  ;;  %2798 = vmatprep.mubr.bf16.mxu0 %v7920_v41 }
 0x6a3   :  { %2728 = vmatpush1.bf16.msra.mxu1 %v6707_v17  ;;  %2769 = vmatpush1.bf16.msra.mxu0 %v6713_v22 }
 0x6a4   :  { %2729 = vmatprep.subr.bf16.mxu1 %v6719_v37  ;;  %2770 = vmatprep.subr.bf16.mxu0 %v6725_v38 }
 0x6a7   :  { %2730 = vmatpush1.bf16.msra.mxu1 %v6731_v36  ;;  %2771 = vmatpush1.bf16.msra.mxu0 %v6737_v44 }
 0x6a8   :  { %2731 = vmatprep.subr.bf16.mxu1 %v6743_v47  ;;  %2772 = vmatprep.subr.bf16.mxu0 %v6749_v48 }
 0x6ab   :  { %2732 = vmatpush1.bf16.msra.mxu1 %v6755_v52  ;;  %2773 = vmatpush1.bf16.msra.mxu0 %v6761_v28 }
 0x6ac   :  { %2733 = vmatprep.subr.bf16.mxu1 %v6767_v49  ;;  %2774 = vmatprep.subr.bf16.mxu0 %v6773_v54 }
 0x6af   :  { %2734 = vmatpush1.bf16.msra.mxu1 %v6779_v4  ;;  %2775 = vmatpush1.bf16.msra.mxu0 %v6785_v5 }
 0x6b0   :  { %2735 = vmatprep.subr.bf16.mxu1 %v8143_v29  ;;  %2776 = vmatprep.subr.bf16.mxu0 %v8144_v32  ;;  %v8214_v29 = vld [vmem:[#allocation36_spill] sm:$0xff]  ;;  %v8215_v32 = vld [vmem:[#allocation37_spill] sm:$0xff] }
 0x6b3   :  { %2736 = vmatpush1.bf16.msra.mxu1 %v8145_v23  ;;  %2777 = vmatpush1.bf16.msra.mxu0 %v8146_v20  ;;  %v8216_v23 = vld [vmem:[#allocation38_spill] sm:$0xff]  ;;  %v8217_v20 = vld [vmem:[#allocation39_spill] sm:$0xff] }
 0x6b4   :  { %2737 = vmatprep.subr.bf16.mxu1 %v8147_v51  ;;  %2778 = vmatprep.subr.bf16.mxu0 %v8148_v8  ;;  %v8218_v51 = vld [vmem:[#allocation40_spill] sm:$0xff]  ;;  %v8219_v8 = vld [vmem:[#allocation41_spill] sm:$0xff] }
 0x6b7   :  { %2738 = vmatpush1.bf16.msra.mxu1 %v8209_v14  ;;  %2779 = vmatpush1.bf16.msra.mxu0 %v8210_v33  ;;  %v8248_v14 = vld [vmem:[#allocation65_spill] sm:$0xff] }
 0x6b8   :  { %2739 = vmatprep.subr.bf16.mxu1 %v8211_v42  ;;  %2780 = vmatprep.subr.bf16.mxu0 %v8212_v31 }
 0x6bb   :  { %2740 = vmatpush1.bf16.msra.mxu1 %v8213_v18  ;;  %2781 = vmatpush1.bf16.msra.mxu0 %v8214_v29 }
 0x6bc   :  { %2836 = vmatprep.subr.bf16.mxu1 %v8215_v32  ;;  %2877 = vmatprep.subr.bf16.mxu0 %v8216_v23 }
 0x6be   :  { %2758 = vmatmul.mubr.bf16.vlgmr.msra.gmra.mrb[84].mxu1 %v2524_v7  ;;  %2799 = vmatmul.mubr.bf16.vlgmr.msra.gmra.mrb[84].mxu0 %v2524_v7  ;;  %v8247_v7 = vld [vmem:[#allocation29_spill] sm:$0xff] }
 0x6bf   :  { %2837 = vmatpush1.bf16.msra.mxu1 %v8217_v20  ;;  %2878 = vmatpush1.bf16.msra.mxu0 %v8218_v51 }
 0x6c0   :  { %2838 = vmatprep.subr.bf16.mxu1 %v8219_v8  ;;  %2879 = vmatprep.subr.bf16.mxu0 %v8220_v15 }
 0x6c1   :  { %2868 = vmatprep.mubr.bf16.mxu1 %v7920_v41  ;;  %2909 = vmatprep.mubr.bf16.mxu0 %v7920_v41 }
 0x6c3   :  { %2839 = vmatpush1.bf16.msra.mxu1 %v8221_v59  ;;  %2880 = vmatpush1.bf16.msra.mxu0 %v8222_v13 }
 0x6c4   :  { %2840 = vmatprep.subr.bf16.mxu1 %v8223_v3  ;;  %2881 = vmatprep.subr.bf16.mxu0 %v8224_v21 }
 0x6c7   :  { %2841 = vmatpush1.bf16.msra.mxu1 %v8225_v40  ;;  %2882 = vmatpush1.bf16.msra.mxu0 %v8226_v34 }
 0x6c8   :  { %2842 = vmatprep.subr.bf16.mxu1 %v8227_v53  ;;  %2883 = vmatprep.subr.bf16.mxu0 %v8228_v35 }
 0x6cb   :  { %2843 = vmatpush1.bf16.msra.mxu1 %v8229_v2  ;;  %2884 = vmatpush1.bf16.msra.mxu0 %v8230_v30 }
 0x6cc   :  { %2844 = vmatprep.subr.bf16.mxu1 %v8231_v11  ;;  %2885 = vmatprep.subr.bf16.mxu0 %v8232_v16 }
 0x6cf   :  { %2845 = vmatpush1.bf16.msra.mxu1 %v8233_v24  ;;  %2886 = vmatpush1.bf16.msra.mxu0 %v8234_v27  ;;  %v8249_v27 = vld [vmem:[#allocation3_spill] sm:$0xff] }
 0x6d0   :  { %2846 = vmatprep.subr.bf16.mxu1 %v8235_v19  ;;  %2887 = vmatprep.subr.bf16.mxu0 %v8236_v26  ;;  %v8250_v26 = vld [vmem:[#allocation4_spill] sm:$0xff] }
 0x6d3   :  { %2847 = vmatpush1.bf16.msra.mxu1 %v8237_v39  ;;  %2888 = vmatpush1.bf16.msra.mxu0 %v8238_v55 }
 0x6d4   :  { %2848 = vmatprep.subr.bf16.mxu1 %v8239_v50  ;;  %2889 = vmatprep.subr.bf16.mxu0 %v8240_v56 }
 0x6d7   :  { %2849 = vmatpush1.bf16.msra.mxu1 %v8241_v57  ;;  %2890 = vmatpush1.bf16.msra.mxu0 %v8242_v58 }
 0x6d8   :  { %2850 = vmatprep.subr.bf16.mxu1 %v8243_v60  ;;  %2891 = vmatprep.subr.bf16.mxu0 %v8244_v0 }
 0x6db   :  { %2851 = vmatpush1.bf16.msra.mxu1 %v8245_v1  ;;  %2892 = vmatpush1.bf16.msra.mxu0 %v8246_v6 }
 0x6dc   :  { %2918 = vmatprep.subr.bf16.mxu1 %v8247_v7  ;;  %2959 = vmatprep.subr.bf16.mxu0 %v8248_v14 }
 0x751   :  { %v2559_v33 = vpop.f32.mrb[76].mxu1  ;;  %v2600_v42 = vpop.f32.mrb[76].mxu0 }
 0x752   :  { %v2561_v31 = vpop.f32.mrb[77].mxu1  ;;  %v2602_v18 = vpop.f32.mrb[77].mxu0 }
 0x753   :  { %v2563_v29 = vpop.f32.mrb[78].mxu1  ;;  %v2604_v32 = vpop.f32.mrb[78].mxu0 }
 0x754   :  { %v2564_v23 = vpop.f32.mrb[79].mxu1  ;;  %v2605_v20 = vpop.f32.mrb[79].mxu0  ;;  %v8252_v32 = vld [vmem:[#allocation78_spill] sm:$0xff] }
 0x771   :  { %v2641_v51 = vpop.f32.mrb[80].mxu1  ;;  %v2682_v8 = vpop.f32.mrb[80].mxu0 }
 0x772   :  { %v2642_v15 = vadd.f32 %v2641_v51, %v2559_v33  ;;  %v2683_v59 = vadd.f32 %v2682_v8, %v2600_v42  ;;  %v2643_v13 = vpop.f32.mrb[81].mxu1  ;;  %v2684_v3 = vpop.f32.mrb[81].mxu0  ;;  %v8253_v8 = vld [vmem:[#allocation79_spill] sm:$0xff] }
 0x773   :  { %v2644_v21 = vadd.f32 %v2643_v13, %v2561_v31  ;;  %v2685_v40 = vadd.f32 %v2684_v3, %v2602_v18  ;;  %v2645_v34 = vpop.f32.mrb[82].mxu1  ;;  %v2686_v53 = vpop.f32.mrb[82].mxu0  ;;  %v8251_v18 = vld [vmem:[#allocation77_spill] sm:$0xff] }
 0x774   :  { %v2689_v35 = vadd.f32 %v2642_v15, %v5771_v43  ;;  %v2646_v2 = vpop.f32.mrb[83].mxu1  ;;  %v2687_v30 = vpop.f32.mrb[83].mxu0  ;;  %v2691_v19 = vadd.f32 %v2683_v59, %v8249_v27  ;;  %v8254_v59 = vld [vmem:[#allocation80_spill] sm:$0xff] }
 0x775   :  { %v2690_v11 = vadd.f32 %v2644_v21, %v5775_v25  ;;  %v2692_v39 = vadd.f32 %v2685_v40, %v8250_v26 }
 0x776   :  { %v4009_v16 = vmul.f32 -1.442695, %v2689_v35  ;;  %v4011_v55 = vmul.f32 -1.442695, %v2691_v19 }
 0x777   :  { %v4010_v24 = vmul.f32 -1.442695, %v2690_v11 }
 0x778   :  { %4544 = vpow2.f32 %v4009_v16 }
 0x779   :  { %4546 = vpow2.f32 %v4010_v24 }
 0x77a   :  { %4548 = vtanh.f32 %v2692_v39 }
 0x77b   :  { %4550 = vpow2.f32 %v4011_v55 }
 0x782   :  { %v4545_v50 = vpop.eup %4544 }
 0x783   :  { %v2702_v56 = vadd.f32 1.0, %v4545_v50  ;;  %v4547_v57 = vpop.eup %4546 }
 0x784   :  { %v2703_v58 = vadd.f32 1.0, %v4547_v57  ;;  %v4549_v60 = vpop.eup %4548  ;;  %v6857_v57 = vld [vmem:[%s7625_s1 + $0x188] ss:$16 sps:$4 sm:$0xff]  }
 0x785   :  { %4552 = vrcp.f32 %v2702_v56  ;;  %v4551_v0 = vpop.eup %4550  ;;  %v6851_v56 = vld [vmem:[%s7625_s1 + $0x180] ss:$16 sps:$4 sm:$0xff]  }
 0x786   :  { %4554 = vrcp.f32 %v2703_v58  ;;  %v2704_v14 = vadd.f32 1.0, %v4551_v0  ;;  %v6863_v58 = vld [vmem:[%s7625_s1 + $0x1a4] ss:$16 sps:$4 sm:$0xff]   ;;  %v6877_v0 = vld [vmem:[%s7625_s1 + $0x1a0] ss:$16 sps:$4 sm:$0xff]  }
 0x788   :  { %4556 = vrcp.f32 %v2704_v14 }
 0x78f   :  { %v4553_v1 = vpop.eup %4552 }
 0x790   :  { %v2713_v6 = vmul.f32 %v4553_v1, %v4549_v60  ;;  %v4555_v7 = vpop.eup %4554  ;;  %v6869_v60 = vld [vmem:[%s7625_s1 + $0x1ac] ss:$16 sps:$4 sm:$0xff]   ;;  %v6883_v1 = vld [vmem:[%s7625_s1 + $0x1a8] ss:$16 sps:$4 sm:$0xff]  }
 0x791   :  { %v2759_v33 = vpop.f32.mrb[84].mxu1  ;;  %v2800_v42 = vpop.f32.mrb[84].mxu0  ;;  %v2712_v31 = vmul.f32 %v4555_v7, %v6627_v46  ;;  %v6895_v7 = vld [vmem:[%s7625_s1 + $0x1cc] ss:$16 sps:$4 sm:$0xff]  }
 0x792   :  { %v2807_v29 = vadd.f32 %v2759_v33, %v8251_v18  ;;  %v2809_v23 = vadd.f32 %v2800_v42, %v8252_v32  ;;  %v2761_v20 = vpop.f32.mrb[85].mxu1  ;;  %v2802_v51 = vpop.f32.mrb[85].mxu0  ;;  %v6907_v18 = vld [vmem:[%s7625_s1 + $0x1c8] ss:$16 sps:$4 sm:$0xff]   ;;  %v6913_v32 = vld [vmem:[%s7625_s1 + $0x1e4] ss:$16 sps:$4 sm:$0xff]  }
 0x793   :  { %v2808_v15 = vadd.f32 %v2761_v20, %v8253_v8  ;;  %v2810_v13 = vadd.f32 %v2802_v51, %v8254_v59  ;;  %v2763_v3 = vpop.f32.mrb[86].mxu1  ;;  %v2804_v21 = vpop.f32.mrb[86].mxu0  ;;  %v6845_v40 = vadd.f32 %v2713_v6, %v2712_v31  ;;  %v6889_v6 = vld [vmem:[%s7625_s1 + $0x1c4] ss:$16 sps:$4 sm:$0xff]   ;;  %v6901_v31 = vld [vmem:[%s7625_s1 + $0x1c0] ss:$16 sps:$4 sm:$0xff]  }
 0x794   :  { %v4012_v34 = vmul.f32 -1.442695, %v2807_v29  ;;  %v2764_v53 = vpop.f32.mrb[87].mxu1  ;;  %v2805_v35 = vpop.f32.mrb[87].mxu0  ;;  %v4014_v30 = vmul.f32 -1.442695, %v2809_v23 }
 0x795   :  { %v4013_v2 = vmul.f32 -1.442695, %v2808_v15  ;;  %4558 = vtanh.f32 %v6845_v40  ;;  %v4557_v46 = vpop.eup %4556  ;;  %v6919_v23 = vld [vmem:[%s7625_s1 + $0x1ec] ss:$16 sps:$4 sm:$0xff]   ;;  %v6926_v15 = vld [vmem:[%s7625_s1 + $0x1e0] ss:$16 sps:$4 sm:$0xff]  }
 0x796   :  { %4560 = vpow2.f32 %v4012_v34  ;;  %v6932_v59 = vld [vmem:[%s7625_s1 + $0x1e8] ss:$16 sps:$4 sm:$0xff]   ;;  %v6946_v3 = vld [vmem:[%s7625_s1 + $0x20c] ss:$16 sps:$4 sm:$0xff]   ;;  %v6953_v21 = vld [vmem:[%s7625_s1 + $0x200] ss:$16 sps:$4 sm:$0xff]  }
 0x797   :  { %4562 = vpow2.f32 %v4013_v2  ;;  %v6959_v34 = vld [vmem:[%s7625_s1 + $0x208] ss:$16 sps:$4 sm:$0xff]   ;;  %v6965_v53 = vld [vmem:[%s7625_s1 + $0x224] ss:$16 sps:$4 sm:$0xff]   ;;  %v6971_v35 = vld [vmem:[%s7625_s1 + $0x22c] ss:$16 sps:$4 sm:$0xff]  }
 0x798   :  { %4564 = vtanh.f32 %v2810_v13  ;;  %v6977_v2 = vld [vmem:[%s7625_s1 + $0x220] ss:$16 sps:$4 sm:$0xff]  }
 0x799   :  { %4566 = vpow2.f32 %v4014_v30  ;;  %v6989_v30 = vld [vmem:[%s7625_s1 + $0x244] ss:$16 sps:$4 sm:$0xff]  }
 0x79f   :  { %v4559_v11 = vpop.eup %4558 }
 0x7a0   :  { %v4561_v16 = vpop.eup %4560  ;;  %v2716_v24 = vmul.f32 %v4559_v11, %v4557_v46  ;;  %v6983_v46 = vld [vmem:[%s7625_s1 + $0x228] ss:$16 sps:$4 sm:$0xff]   ;;  %v6995_v11 = vld [vmem:[%s7625_s1 + $0x24c] ss:$16 sps:$4 sm:$0xff]  }
 0x7a1   :  { %v2820_v19 = vadd.f32 1.0, %v4561_v16  ;;  %v4563_v39 = vpop.eup %4562 }
 0x7a2   :  { %v2717_v55 = vpack.c.bf16 %v2716_v24, %v2716_v24  ;;  %v2821_v50 = vadd.f32 1.0, %v4563_v39  ;;  %v4565_v14 = vpop.eup %4564  ;;  %v7001_v24 = vld [vmem:[%s7625_s1 + $0x240] ss:$16 sps:$4 sm:$0xff]  }
 0x7a3   :  { %4568 = vrcp.f32 %v2820_v19  ;;  %v4567_v33 = vpop.eup %4566  ;;  %v7007_v19 = vld [vmem:[%s7625_s1 + $0x248] ss:$16 sps:$4 sm:$0xff]  }
 0x7a4   :  { %2869 = vmatmul.mubr.bf16.vlgmr.msra.gmra.mrb[88].mxu1 %v2717_v55  ;;  %2910 = vmatmul.mubr.bf16.vlgmr.msra.gmra.mrb[88].mxu0 %v2717_v55  ;;  %4570 = vrcp.f32 %v2821_v50  ;;  %v2822_v51 = vadd.f32 1.0, %v4567_v33  ;;  %v7013_v55 = vld [vmem:[%s7625_s1 + $0x264] ss:$16 sps:$4 sm:$0xff]   ;;  %v7019_v50 = vld [vmem:[%s7625_s1 + $0x26c] ss:$16 sps:$4 sm:$0xff]  }
 0x7a5   :  { %2919 = vmatpush1.bf16.msra.mxu1 %v6851_v56  ;;  %2960 = vmatpush1.bf16.msra.mxu0 %v6857_v57  ;;  %v7025_v33 = vld [vmem:[%s7625_s1 + $0x260] ss:$16 sps:$4 sm:$0xff]  }
 0x7a6   :  { %2920 = vmatprep.subr.bf16.mxu1 %v6863_v58  ;;  %2961 = vmatprep.subr.bf16.mxu0 %v6869_v60  ;;  %4572 = vrcp.f32 %v2822_v51  ;;  %v7065_v51 = vld [vmem:[%s7625_s1 + $0x12c] ss:$16 sps:$4 sm:$0xff]  }
 0x7a7   :  { %2950 = vmatprep.mubr.bf16.mxu1 %v7920_v41  ;;  %2991 = vmatprep.mubr.bf16.mxu0 %v7920_v41  ;;  %8256 = vst [vmem:[#allocation13_spill] sm:$0xff] %v7065_v51 }
 0x7a9   :  { %2921 = vmatpush1.bf16.msra.mxu1 %v6877_v0  ;;  %2962 = vmatpush1.bf16.msra.mxu0 %v6883_v1 }
 0x7aa   :  { %2922 = vmatprep.subr.bf16.mxu1 %v6889_v6  ;;  %2963 = vmatprep.subr.bf16.mxu0 %v6895_v7 }
 0x7ad   :  { %v4569_v42 = vpop.eup %4568  ;;  %2923 = vmatpush1.bf16.msra.mxu1 %v6901_v31  ;;  %2964 = vmatpush1.bf16.msra.mxu0 %v6907_v18 }
 0x7ae   :  { %v2831_v29 = vmul.f32 %v4569_v42, %v4565_v14  ;;  %2924 = vmatprep.subr.bf16.mxu1 %v6913_v32  ;;  %2965 = vmatprep.subr.bf16.mxu0 %v6919_v23  ;;  %v4571_v20 = vpop.eup %4570  ;;  %v7031_v42 = vld [vmem:[%s7625_s1 + $0x268] ss:$16 sps:$4 sm:$0xff]  }
 0x7af   :  { %v2830_v8 = vmul.f32 %v4571_v20, %v6647_v61  ;;  %v6940_v61 = vld [vmem:[%s7625_s1 + $0x204] ss:$16 sps:$4 sm:$0xff]  }
 0x7b0   :  { %v4573_v16 = vpop.eup %4572  ;;  %v7059_v20 = vld [vmem:[%s7625_s1 + $0x124] ss:$16 sps:$4 sm:$0xff]  }
 0x7b1   :  { %2925 = vmatpush1.bf16.msra.mxu1 %v6926_v15  ;;  %2966 = vmatpush1.bf16.msra.mxu0 %v6932_v59  ;;  %v6935_v13 = vadd.f32 %v2831_v29, %v2830_v8  ;;  %8255 = vst [vmem:[#allocation14_spill] sm:$0xff] %v7059_v20  ;;  %v7071_v8 = vld [vmem:[%s7625_s1 + $0x120] ss:$16 sps:$4 sm:$0xff]  }
 0x7b2   :  { %2926 = vmatprep.subr.bf16.mxu1 %v6940_v61  ;;  %2967 = vmatprep.subr.bf16.mxu0 %v6946_v3  ;;  %8257 = vst [vmem:[#allocation15_spill] sm:$0xff] %v7071_v8 }
 0x7b3   :  { %4574 = vtanh.f32 %v6935_v13 }
 0x7b5   :  { %2927 = vmatpush1.bf16.msra.mxu1 %v6953_v21  ;;  %2968 = vmatpush1.bf16.msra.mxu0 %v6959_v34 }
 0x7b6   :  { %2928 = vmatprep.subr.bf16.mxu1 %v6965_v53  ;;  %2969 = vmatprep.subr.bf16.mxu0 %v6971_v35 }
 0x7b9   :  { %2929 = vmatpush1.bf16.msra.mxu1 %v6977_v2  ;;  %2970 = vmatpush1.bf16.msra.mxu0 %v6983_v46 }
 0x7ba   :  { %2930 = vmatprep.subr.bf16.mxu1 %v6989_v30  ;;  %2971 = vmatprep.subr.bf16.mxu0 %v6995_v11 }
 0x7bd   :  { %2931 = vmatpush1.bf16.msra.mxu1 %v7001_v24  ;;  %2972 = vmatpush1.bf16.msra.mxu0 %v7007_v19  ;;  %v4575_v39 = vpop.eup %4574 }
 0x7be   :  { %2932 = vmatprep.subr.bf16.mxu1 %v7013_v55  ;;  %2973 = vmatprep.subr.bf16.mxu0 %v7019_v50  ;;  %v2834_v14 = vmul.f32 %v4575_v39, %v4573_v16  ;;  %v7077_v16 = vld [vmem:[%s7625_s1 + $0x128] ss:$16 sps:$4 sm:$0xff]   ;;  %v7083_v39 = vld [vmem:[%s7625_s1 + $0x144] ss:$16 sps:$4 sm:$0xff]  }
 0x7bf   :  { %8258 = vst [vmem:[#allocation16_spill] sm:$0xff] %v7077_v16  ;;  %8259 = vst [vmem:[#allocation18_spill] sm:$0xff] %v7083_v39 }
 0x7c0   :  { %v2835_v29 = vpack.c.bf16 %v2834_v14, %v2834_v14  ;;  %v7089_v14 = vld [vmem:[%s7625_s1 + $0x14c] ss:$16 sps:$4 sm:$0xff]  }
 0x7c1   :  { %2933 = vmatpush1.bf16.msra.mxu1 %v7025_v33  ;;  %2974 = vmatpush1.bf16.msra.mxu0 %v7031_v42  ;;  %8260 = vst [vmem:[#allocation17_spill] sm:$0xff] %v7089_v14 }
 0x7c2   :  { %3036 = vmatprep.subr.bf16.mxu1 %v6669_v9  ;;  %3077 = vmatprep.subr.bf16.mxu0 %v6675_v10 }
 0x7c4   :  { %2951 = vmatmul.mubr.bf16.vlgmr.msra.gmra.mrb[92].mxu1 %v2835_v29  ;;  %2992 = vmatmul.mubr.bf16.vlgmr.msra.gmra.mrb[92].mxu0 %v2835_v29 }
 0x7c5   :  { %3037 = vmatpush1.bf16.msra.mxu1 %v6681_v62  ;;  %3078 = vmatpush1.bf16.msra.mxu0 %v6687_v63 }
 0x7c6   :  { %3038 = vmatprep.subr.bf16.mxu1 %v6693_v45  ;;  %3079 = vmatprep.subr.bf16.mxu0 %v6699_v12 }
 0x7c7   :  { %3068 = vmatprep.mubr.bf16.mxu1 %v7920_v41  ;;  %3109 = vmatprep.mubr.bf16.mxu0 %v7920_v41 }
 0x7c9   :  { %3039 = vmatpush1.bf16.msra.mxu1 %v6707_v17  ;;  %3080 = vmatpush1.bf16.msra.mxu0 %v6713_v22 }
 0x7ca   :  { %3040 = vmatprep.subr.bf16.mxu1 %v6719_v37  ;;  %3081 = vmatprep.subr.bf16.mxu0 %v6725_v38 }
 0x7cd   :  { %3041 = vmatpush1.bf16.msra.mxu1 %v6731_v36  ;;  %3082 = vmatpush1.bf16.msra.mxu0 %v6737_v44 }
 0x7ce   :  { %3042 = vmatprep.subr.bf16.mxu1 %v6743_v47  ;;  %3083 = vmatprep.subr.bf16.mxu0 %v6749_v48 }
 0x7d1   :  { %3043 = vmatpush1.bf16.msra.mxu1 %v6755_v52  ;;  %3084 = vmatpush1.bf16.msra.mxu0 %v6761_v28 }
 0x7d2   :  { %3044 = vmatprep.subr.bf16.mxu1 %v6767_v49  ;;  %3085 = vmatprep.subr.bf16.mxu0 %v6773_v54 }
 0x7d5   :  { %3045 = vmatpush1.bf16.msra.mxu1 %v6779_v4  ;;  %3086 = vmatpush1.bf16.msra.mxu0 %v6785_v5 }
 0x7d6   :  { %3046 = vmatprep.subr.bf16.mxu1 %v7059_v20  ;;  %3087 = vmatprep.subr.bf16.mxu0 %v7065_v51 }
 0x7d9   :  { %3047 = vmatpush1.bf16.msra.mxu1 %v7071_v8  ;;  %3088 = vmatpush1.bf16.msra.mxu0 %v7077_v16  ;;  %v7095_v8 = vld [vmem:[%s7625_s1 + $0x140] ss:$16 sps:$4 sm:$0xff]   ;;  %v7101_v16 = vld [vmem:[%s7625_s1 + $0x148] ss:$16 sps:$4 sm:$0xff]  }
 0x7da   :  { %3048 = vmatprep.subr.bf16.mxu1 %v7083_v39  ;;  %3089 = vmatprep.subr.bf16.mxu0 %v7089_v14  ;;  %8261 = vst [vmem:[#allocation19_spill] sm:$0xff] %v7095_v8  ;;  %8262 = vst [vmem:[#allocation60_spill] sm:$0xff] %v7101_v16  ;;  %v7107_v39 = vld [vmem:[%s7625_s1 + $0x164] ss:$16 sps:$4 sm:$0xff]   ;;  %v7113_v14 = vld [vmem:[%s7625_s1 + $0x16c] ss:$16 sps:$4 sm:$0xff]  }
 0x7db   :  { %8263 = vst [vmem:[#allocation61_spill] sm:$0xff] %v7107_v39  ;;  %8264 = vst [vmem:[#allocation62_spill] sm:$0xff] %v7113_v14 }
 0x7dd   :  { %3049 = vmatpush1.bf16.msra.mxu1 %v7095_v8  ;;  %3090 = vmatpush1.bf16.msra.mxu0 %v7101_v16  ;;  %v7119_v8 = vld [vmem:[%s7625_s1 + $0x160] ss:$16 sps:$4 sm:$0xff]   ;;  %v7125_v16 = vld [vmem:[%s7625_s1 + $0x168] ss:$16 sps:$4 sm:$0xff]  }
 0x7de   :  { %3050 = vmatprep.subr.bf16.mxu1 %v7107_v39  ;;  %3091 = vmatprep.subr.bf16.mxu0 %v7113_v14  ;;  %8265 = vst [vmem:[#allocation63_spill] sm:$0xff] %v7119_v8  ;;  %8266 = vst [vmem:[#allocation64_spill] sm:$0xff] %v7125_v16  ;;  %v7131_v39 = vld [vmem:[%s7625_s1 + $0x284] ss:$16 sps:$4 sm:$0xff]   ;;  %v7137_v14 = vld [vmem:[%s7625_s1 + $0x28c] ss:$16 sps:$4 sm:$0xff]  }
 0x7df   :  { %8267 = vst [vmem:[#allocation30_spill] sm:$0xff] %v7131_v39  ;;  %8268 = vst [vmem:[#allocation73_spill] sm:$0xff] %v7137_v14 }
 0x7e1   :  { %3051 = vmatpush1.bf16.msra.mxu1 %v7119_v8  ;;  %3092 = vmatpush1.bf16.msra.mxu0 %v7125_v16  ;;  %v7143_v16 = vld [vmem:[%s7625_s1 + $0x280] ss:$16 sps:$4 sm:$0xff]  }
 0x7e2   :  { %3147 = vmatprep.subr.bf16.mxu1 %v7131_v39  ;;  %3188 = vmatprep.subr.bf16.mxu0 %v7137_v14  ;;  %8269 = vst [vmem:[#allocation74_spill] sm:$0xff] %v7143_v16  ;;  %v7149_v39 = vld [vmem:[%s7625_s1 + $0x288] ss:$16 sps:$4 sm:$0xff]   ;;  %v7155_v14 = vld [vmem:[%s7625_s1 + $0x2a4] ss:$16 sps:$4 sm:$0xff]  }
 0x7e3   :  { %8270 = vst [vmem:[#allocation75_spill] sm:$0xff] %v7149_v39  ;;  %8271 = vst [vmem:[#allocation76_spill] sm:$0xff] %v7155_v14 }
 0x7e4   :  { %3069 = vmatmul.mubr.bf16.vlgmr.msra.gmra.mrb[96].mxu1 %v2835_v29  ;;  %3110 = vmatmul.mubr.bf16.vlgmr.msra.gmra.mrb[96].mxu0 %v2835_v29  ;;  %v7161_v29 = vld [vmem:[%s7625_s1 + $0x2ac] ss:$16 sps:$4 sm:$0xff]  }
 0x7e5   :  { %3148 = vmatpush1.bf16.msra.mxu1 %v7143_v16  ;;  %3189 = vmatpush1.bf16.msra.mxu0 %v7149_v39  ;;  %8272 = vst [vmem:[#allocation31_spill] sm:$0xff] %v7161_v29  ;;  %v7169_v39 = vld [vmem:[%s7625_s1 + $0x2a0] ss:$16 sps:$4 sm:$0xff]   ;;  %v7187_v16 = vld [vmem:[%s7625_s1 + $0x2cc] ss:$16 sps:$4 sm:$0xff]  }
 0x7e6   :  { %3149 = vmatprep.subr.bf16.mxu1 %v7155_v14  ;;  %3190 = vmatprep.subr.bf16.mxu0 %v7161_v29  ;;  %8273 = vst [vmem:[#allocation32_spill] sm:$0xff] %v7169_v39  ;;  %v7175_v14 = vld [vmem:[%s7625_s1 + $0x2a8] ss:$16 sps:$4 sm:$0xff]   ;;  %v7181_v29 = vld [vmem:[%s7625_s1 + $0x2c4] ss:$16 sps:$4 sm:$0xff]   ;;  %8276 = vst [vmem:[#allocation35_spill] sm:$0xff] %v7187_v16 }
 0x7e7   :  { %3179 = vmatprep.mubr.bf16.mxu1 %v7920_v41  ;;  %3220 = vmatprep.mubr.bf16.mxu0 %v7920_v41  ;;  %8274 = vst [vmem:[#allocation33_spill] sm:$0xff] %v7175_v14  ;;  %8275 = vst [vmem:[#allocation34_spill] sm:$0xff] %v7181_v29 }
 0x7e9   :  { %3150 = vmatpush1.bf16.msra.mxu1 %v7169_v39  ;;  %3191 = vmatpush1.bf16.msra.mxu0 %v7175_v14  ;;  %v7193_v39 = vld [vmem:[%s7625_s1 + $0x2c0] ss:$16 sps:$4 sm:$0xff]   ;;  %v7199_v14 = vld [vmem:[%s7625_s1 + $0x2c8] ss:$16 sps:$4 sm:$0xff]  }
 0x7ea   :  { %3151 = vmatprep.subr.bf16.mxu1 %v7181_v29  ;;  %3192 = vmatprep.subr.bf16.mxu0 %v7187_v16  ;;  %8277 = vst [vmem:[#allocation36_spill] sm:$0xff] %v7193_v39  ;;  %8278 = vst [vmem:[#allocation37_spill] sm:$0xff] %v7199_v14  ;;  %v7205_v29 = vld [vmem:[%s7625_s1 + $0x2e4] ss:$16 sps:$4 sm:$0xff]   ;;  %v7211_v16 = vld [vmem:[%s7625_s1 + $0x2ec] ss:$16 sps:$4 sm:$0xff]  }
 0x7eb   :  { %8279 = vst [vmem:[#allocation38_spill] sm:$0xff] %v7205_v29  ;;  %8280 = vst [vmem:[#allocation39_spill] sm:$0xff] %v7211_v16 }
 0x7ed   :  { %3152 = vmatpush1.bf16.msra.mxu1 %v7193_v39  ;;  %3193 = vmatpush1.bf16.msra.mxu0 %v7199_v14  ;;  %v7217_v39 = vld [vmem:[%s7625_s1 + $0x2e0] ss:$16 sps:$4 sm:$0xff]   ;;  %v7223_v14 = vld [vmem:[%s7625_s1 + $0x2e8] ss:$16 sps:$4 sm:$0xff]  }
 0x7ee   :  { %3153 = vmatprep.subr.bf16.mxu1 %v7205_v29  ;;  %3194 = vmatprep.subr.bf16.mxu0 %v7211_v16  ;;  %8281 = vst [vmem:[#allocation40_spill] sm:$0xff] %v7217_v39  ;;  %8282 = vst [vmem:[#allocation41_spill] sm:$0xff] %v7223_v14  ;;  %v7229_v29 = vld [vmem:[%s7625_s1 + $0x304] ss:$16 sps:$4 sm:$0xff]   ;;  %v7235_v16 = vld [vmem:[%s7625_s1 + $0x30c] ss:$16 sps:$4 sm:$0xff]  }
 0x7ef   :  { %8283 = vst [vmem:[#allocation42_spill] sm:$0xff] %v7229_v29  ;;  %8284 = vst [vmem:[#allocation43_spill] sm:$0xff] %v7235_v16 }
 0x7f1   :  { %3154 = vmatpush1.bf16.msra.mxu1 %v7217_v39  ;;  %3195 = vmatpush1.bf16.msra.mxu0 %v7223_v14  ;;  %v7241_v39 = vld [vmem:[%s7625_s1 + $0x300] ss:$16 sps:$4 sm:$0xff]   ;;  %v7247_v14 = vld [vmem:[%s7625_s1 + $0x308] ss:$16 sps:$4 sm:$0xff]  }
 0x7f2   :  { %3155 = vmatprep.subr.bf16.mxu1 %v7229_v29  ;;  %3196 = vmatprep.subr.bf16.mxu0 %v7235_v16  ;;  %8285 = vst [vmem:[#allocation44_spill] sm:$0xff] %v7241_v39  ;;  %8286 = vst [vmem:[#allocation45_spill] sm:$0xff] %v7247_v14  ;;  %v7253_v29 = vld [vmem:[%s7625_s1 + $0x324] ss:$16 sps:$4 sm:$0xff]   ;;  %v7259_v16 = vld [vmem:[%s7625_s1 + $0x32c] ss:$16 sps:$4 sm:$0xff]  }
 0x7f3   :  { %8287 = vst [vmem:[#allocation46_spill] sm:$0xff] %v7253_v29  ;;  %8288 = vst [vmem:[#allocation47_spill] sm:$0xff] %v7259_v16 }
 0x7f5   :  { %3156 = vmatpush1.bf16.msra.mxu1 %v7241_v39  ;;  %3197 = vmatpush1.bf16.msra.mxu0 %v7247_v14  ;;  %v7265_v39 = vld [vmem:[%s7625_s1 + $0x320] ss:$16 sps:$4 sm:$0xff]   ;;  %v7271_v14 = vld [vmem:[%s7625_s1 + $0x328] ss:$16 sps:$4 sm:$0xff]  }
 0x7f6   :  { %3157 = vmatprep.subr.bf16.mxu1 %v7253_v29  ;;  %3198 = vmatprep.subr.bf16.mxu0 %v7259_v16  ;;  %8289 = vst [vmem:[#allocation48_spill] sm:$0xff] %v7265_v39  ;;  %8290 = vst [vmem:[#allocation49_spill] sm:$0xff] %v7271_v14  ;;  %v7277_v29 = vld [vmem:[%s7625_s1 + $0x344] ss:$16 sps:$4 sm:$0xff]   ;;  %v7283_v16 = vld [vmem:[%s7625_s1 + $0x34c] ss:$16 sps:$4 sm:$0xff]  }
 0x7f7   :  { %8291 = vst [vmem:[#allocation50_spill] sm:$0xff] %v7277_v29  ;;  %8292 = vst [vmem:[#allocation51_spill] sm:$0xff] %v7283_v16 }
 0x7f9   :  { %3158 = vmatpush1.bf16.msra.mxu1 %v7265_v39  ;;  %3199 = vmatpush1.bf16.msra.mxu0 %v7271_v14  ;;  %v7289_v39 = vld [vmem:[%s7625_s1 + $0x340] ss:$16 sps:$4 sm:$0xff]   ;;  %v7295_v14 = vld [vmem:[%s7625_s1 + $0x348] ss:$16 sps:$4 sm:$0xff]  }
 0x7fa   :  { %3159 = vmatprep.subr.bf16.mxu1 %v7277_v29  ;;  %3200 = vmatprep.subr.bf16.mxu0 %v7283_v16  ;;  %8293 = vst [vmem:[#allocation52_spill] sm:$0xff] %v7289_v39  ;;  %8294 = vst [vmem:[#allocation53_spill] sm:$0xff] %v7295_v14  ;;  %v7301_v29 = vld [vmem:[%s7625_s1 + $0x364] ss:$16 sps:$4 sm:$0xff]   ;;  %v7307_v16 = vld [vmem:[%s7625_s1 + $0x36c] ss:$16 sps:$4 sm:$0xff]  }
 0x7fb   :  { %8295 = vst [vmem:[#allocation54_spill] sm:$0xff] %v7301_v29  ;;  %8296 = vst [vmem:[#allocation55_spill] sm:$0xff] %v7307_v16 }
 0x7fd   :  { %3160 = vmatpush1.bf16.msra.mxu1 %v7289_v39  ;;  %3201 = vmatpush1.bf16.msra.mxu0 %v7295_v14  ;;  %v7313_v39 = vld [vmem:[%s7625_s1 + $0x360] ss:$16 sps:$4 sm:$0xff]   ;;  %v7319_v14 = vld [vmem:[%s7625_s1 + $0x368] ss:$16 sps:$4 sm:$0xff]  }
 0x7fe   :  { %3161 = vmatprep.subr.bf16.mxu1 %v7301_v29  ;;  %3202 = vmatprep.subr.bf16.mxu0 %v7307_v16  ;;  %8297 = vst [vmem:[#allocation56_spill] sm:$0xff] %v7313_v39  ;;  %8298 = vst [vmem:[#allocation57_spill] sm:$0xff] %v7319_v14  ;;  %v7325_v29 = vld [vmem:[%s7625_s1 + $0x184] ss:$16 sps:$4 sm:$0xff]   ;;  %v7331_v16 = vld [vmem:[%s7625_s1 + $0x18c] ss:$16 sps:$4 sm:$0xff]  }
 0x7ff   :  { %8299 = vst [vmem:[#allocation58_spill] sm:$0xff] %v7325_v29  ;;  %8300 = vst [vmem:[#allocation59_spill] sm:$0xff] %v7331_v16 }
 0x801   :  { %3162 = vmatpush1.bf16.msra.mxu1 %v7313_v39  ;;  %3203 = vmatpush1.bf16.msra.mxu0 %v7319_v14 }
 0x802   :  { %3229 = vmatprep.subr.bf16.mxu1 %v7325_v29  ;;  %3270 = vmatprep.subr.bf16.mxu0 %v7331_v16 }
 0x877   :  { %v2870_v39 = vpop.f32.mrb[88].mxu1  ;;  %v2911_v8 = vpop.f32.mrb[88].mxu0 }
 0x878   :  { %v2872_v51 = vpop.f32.mrb[89].mxu1  ;;  %v2913_v20 = vpop.f32.mrb[89].mxu0 }
 0x879   :  { %v2874_v5 = vpop.f32.mrb[90].mxu1  ;;  %v2915_v14 = vpop.f32.mrb[90].mxu0 }
 0x87a   :  { %v2875_v4 = vpop.f32.mrb[91].mxu1  ;;  %v2916_v54 = vpop.f32.mrb[91].mxu0 }
 0x897   :  { %v2952_v49 = vpop.f32.mrb[92].mxu1  ;;  %v2993_v28 = vpop.f32.mrb[92].mxu0 }
 0x898   :  { %v2953_v52 = vadd.f32 %v2952_v49, %v2870_v39  ;;  %v2994_v48 = vadd.f32 %v2993_v28, %v2911_v8  ;;  %v2954_v29 = vpop.f32.mrb[93].mxu1  ;;  %v2995_v47 = vpop.f32.mrb[93].mxu0  ;;  %v8302_v39 = vld [vmem:[#allocation82_spill] sm:$0xff] }
 0x899   :  { %v2955_v44 = vadd.f32 %v2954_v29, %v2872_v51  ;;  %v2996_v36 = vadd.f32 %v2995_v47, %v2913_v20  ;;  %v2956_v38 = vpop.f32.mrb[94].mxu1  ;;  %v2997_v37 = vpop.f32.mrb[94].mxu0 }
 0x89a   :  { %v3000_v16 = vadd.f32 %v2953_v52, %v5771_v43  ;;  %v2957_v22 = vpop.f32.mrb[95].mxu1  ;;  %v2998_v17 = vpop.f32.mrb[95].mxu0  ;;  %v3002_v54 = vadd.f32 %v2994_v48, %v8249_v27 }
 0x89b   :  { %v3001_v12 = vadd.f32 %v2955_v44, %v5775_v25  ;;  %v3003_v28 = vadd.f32 %v2996_v36, %v8250_v26  ;;  %v8301_v36 = vld [vmem:[#allocation81_spill] sm:$0xff] }
 0x89c   :  { %v4015_v5 = vmul.f32 -1.442695, %v3000_v16  ;;  %v4017_v49 = vmul.f32 -1.442695, %v3002_v54  ;;  %v8303_v54 = vld [vmem:[#allocation83_spill] sm:$0xff] }
 0x89d   :  { %v4016_v14 = vmul.f32 -1.442695, %v3001_v12 }
 0x89e   :  { %4576 = vpow2.f32 %v4015_v5 }
 0x89f   :  { %4578 = vpow2.f32 %v4016_v14 }
 0x8a0   :  { %4580 = vtanh.f32 %v3003_v28 }
 0x8a1   :  { %4582 = vpow2.f32 %v4017_v49  ;;  %v8304_v49 = vld [vmem:[#allocation84_spill] sm:$0xff] }
 0x8a8   :  { %v4577_v4 = vpop.eup %4576 }
 0x8a9   :  { %v3013_v51 = vadd.f32 1.0, %v4577_v4  ;;  %v4579_v38 = vpop.eup %4578 }
 0x8aa   :  { %v3014_v37 = vadd.f32 1.0, %v4579_v38  ;;  %v4581_v17 = vpop.eup %4580 }
 0x8ab   :  { %4584 = vrcp.f32 %v3013_v51  ;;  %v4583_v22 = vpop.eup %4582 }
 0x8ac   :  { %4586 = vrcp.f32 %v3014_v37  ;;  %v3015_v52 = vadd.f32 1.0, %v4583_v22 }
 0x8ae   :  { %4588 = vrcp.f32 %v3015_v52 }
 0x8b5   :  { %v4585_v44 = vpop.eup %4584 }
 0x8b6   :  { %v3024_v47 = vmul.f32 %v4585_v44, %v4581_v17  ;;  %v4587_v12 = vpop.eup %4586 }
 0x8b7   :  { %v3070_v20 = vpop.f32.mrb[96].mxu1  ;;  %v3111_v8 = vpop.f32.mrb[96].mxu0  ;;  %v3023_v48 = vmul.f32 %v4587_v12, %v6845_v40 }
 0x8b8   :  { %v3118_v16 = vadd.f32 %v3070_v20, %v8301_v36  ;;  %v3120_v29 = vadd.f32 %v3111_v8, %v8302_v39  ;;  %v3072_v5 = vpop.f32.mrb[97].mxu1  ;;  %v3113_v14 = vpop.f32.mrb[97].mxu0 }
 0x8b9   :  { %v3119_v28 = vadd.f32 %v3072_v5, %v8303_v54  ;;  %v3121_v4 = vadd.f32 %v3113_v14, %v8304_v49  ;;  %v3074_v51 = vpop.f32.mrb[98].mxu1  ;;  %v3115_v38 = vpop.f32.mrb[98].mxu0  ;;  %v7343_v37 = vadd.f32 %v3024_v47, %v3023_v48 }
 0x8ba   :  { %v4018_v17 = vmul.f32 -1.442695, %v3118_v16  ;;  %v3075_v22 = vpop.f32.mrb[99].mxu1  ;;  %v3116_v44 = vpop.f32.mrb[99].mxu0  ;;  %v4020_v12 = vmul.f32 -1.442695, %v3120_v29 }
 0x8bb   :  { %v4019_v26 = vmul.f32 -1.442695, %v3119_v28  ;;  %4590 = vtanh.f32 %v7343_v37  ;;  %v4589_v40 = vpop.eup %4588  ;;  %v8306_v22 = vld [vmem:[#allocation67_spill] sm:$0xff]  ;;  %v8307_v44 = vld [vmem:[#allocation68_spill] sm:$0xff] }
 0x8bc   :  { %4592 = vpow2.f32 %v4018_v17  ;;  %v8305_v17 = vld [vmem:[#allocation66_spill] sm:$0xff] }
 0x8bd   :  { %4594 = vpow2.f32 %v4019_v26 }
 0x8be   :  { %4596 = vtanh.f32 %v3121_v4 }
 0x8bf   :  { %4598 = vpow2.f32 %v4020_v12  ;;  %v8314_v12 = vld [vmem:[#allocation7_spill] sm:$0xff] }
 0x8c5   :  { %v4591_v20 = vpop.eup %4590 }
 0x8c6   :  { %v4593_v8 = vpop.eup %4592  ;;  %v3027_v36 = vmul.f32 %v4591_v20, %v4589_v40  ;;  %v8310_v40 = vld [vmem:[#allocation71_spill] sm:$0xff]  ;;  %v8315_v20 = vld [vmem:[#allocation8_spill] sm:$0xff] }
 0x8c7   :  { %v3131_v39 = vadd.f32 1.0, %v4593_v8  ;;  %v4595_v5 = vpop.eup %4594  ;;  %v8316_v8 = vld [vmem:[#allocation10_spill] sm:$0xff] }
 0x8c8   :  { %v3028_v47 = vpack.c.bf16 %v3027_v36, %v3027_v36  ;;  %v3132_v48 = vadd.f32 1.0, %v4595_v5  ;;  %v4597_v26 = vpop.eup %4596  ;;  %v8317_v36 = vld [vmem:[#allocation9_spill] sm:$0xff]  ;;  %v8319_v5 = vld [vmem:[#allocation12_spill] sm:$0xff] }
 0x8c9   :  { %4600 = vrcp.f32 %v3131_v39  ;;  %v4599_v52 = vpop.eup %4598  ;;  %v8318_v39 = vld [vmem:[#allocation11_spill] sm:$0xff] }
 0x8ca   :  { %3180 = vmatmul.mubr.bf16.vlgmr.msra.gmra.mrb[100].mxu1 %v3028_v47  ;;  %3221 = vmatmul.mubr.bf16.vlgmr.msra.gmra.mrb[100].mxu0 %v3028_v47  ;;  %4602 = vrcp.f32 %v3132_v48  ;;  %v3133_v54 = vadd.f32 1.0, %v4599_v52  ;;  %v8320_v47 = vld [vmem:[#allocation14_spill] sm:$0xff]  ;;  %v8321_v48 = vld [vmem:[#allocation13_spill] sm:$0xff]  ;;  %v8323_v52 = vld [vmem:[#allocation16_spill] sm:$0xff] }
 0x8cb   :  { %3230 = vmatpush1.bf16.msra.mxu1 %v6851_v56  ;;  %3271 = vmatpush1.bf16.msra.mxu0 %v6857_v57 }
 0x8cc   :  { %3231 = vmatprep.subr.bf16.mxu1 %v6863_v58  ;;  %3272 = vmatprep.subr.bf16.mxu0 %v6869_v60  ;;  %4604 = vrcp.f32 %v3133_v54  ;;  %v8327_v54 = vld [vmem:[#allocation60_spill] sm:$0xff] }
 0x8cd   :  { %3261 = vmatprep.mubr.bf16.mxu1 %v7920_v41  ;;  %3302 = vmatprep.mubr.bf16.mxu0 %v7920_v41 }
 0x8cf   :  { %3232 = vmatpush1.bf16.msra.mxu1 %v6877_v0  ;;  %3273 = vmatpush1.bf16.msra.mxu0 %v6883_v1 }
 0x8d0   :  { %3233 = vmatprep.subr.bf16.mxu1 %v6889_v6  ;;  %3274 = vmatprep.subr.bf16.mxu0 %v6895_v7 }
 0x8d3   :  { %v4601_v16 = vpop.eup %4600  ;;  %3234 = vmatpush1.bf16.msra.mxu1 %v6901_v31  ;;  %3275 = vmatpush1.bf16.msra.mxu0 %v6907_v18 }
 0x8d4   :  { %v3142_v29 = vmul.f32 %v4601_v16, %v4597_v26  ;;  %3235 = vmatprep.subr.bf16.mxu1 %v6913_v32  ;;  %3276 = vmatprep.subr.bf16.mxu0 %v6919_v23  ;;  %v4603_v14 = vpop.eup %4602  ;;  %v8322_v26 = vld [vmem:[#allocation15_spill] sm:$0xff]  ;;  %v8324_v16 = vld [vmem:[#allocation18_spill] sm:$0xff] }
 0x8d5   :  { %v3141_v28 = vmul.f32 %v4603_v14, %v6935_v13  ;;  %v8326_v14 = vld [vmem:[#allocation19_spill] sm:$0xff] }
 0x8d6   :  { %v4605_v13 = vpop.eup %4604 }
 0x8d7   :  { %3236 = vmatpush1.bf16.msra.mxu1 %v6926_v15  ;;  %3277 = vmatpush1.bf16.msra.mxu0 %v6932_v59  ;;  %v7363_v49 = vadd.f32 %v3142_v29, %v3141_v28  ;;  %v8325_v29 = vld [vmem:[#allocation17_spill] sm:$0xff] }
 0x8d8   :  { %3237 = vmatprep.subr.bf16.mxu1 %v6940_v61  ;;  %3278 = vmatprep.subr.bf16.mxu0 %v6946_v3  ;;  %v8328_v28 = vld [vmem:[#allocation61_spill] sm:$0xff] }
 0x8d9   :  { %4606 = vtanh.f32 %v7363_v49 }
 0x8db   :  { %3238 = vmatpush1.bf16.msra.mxu1 %v6953_v21  ;;  %3279 = vmatpush1.bf16.msra.mxu0 %v6959_v34 }
 0x8dc   :  { %3239 = vmatprep.subr.bf16.mxu1 %v6965_v53  ;;  %3280 = vmatprep.subr.bf16.mxu0 %v6971_v35 }
 0x8df   :  { %3240 = vmatpush1.bf16.msra.mxu1 %v6977_v2  ;;  %3281 = vmatpush1.bf16.msra.mxu0 %v6983_v46 }
 0x8e0   :  { %3241 = vmatprep.subr.bf16.mxu1 %v6989_v30  ;;  %3282 = vmatprep.subr.bf16.mxu0 %v6995_v11 }
 0x8e3   :  { %3242 = vmatpush1.bf16.msra.mxu1 %v7001_v24  ;;  %3283 = vmatpush1.bf16.msra.mxu0 %v7007_v19  ;;  %v4607_v4 = vpop.eup %4606 }
 0x8e4   :  { %3243 = vmatprep.subr.bf16.mxu1 %v7013_v55  ;;  %3284 = vmatprep.subr.bf16.mxu0 %v7019_v50  ;;  %v3145_v51 = vmul.f32 %v4607_v4, %v4605_v13  ;;  %v8329_v13 = vld [vmem:[#allocation62_spill] sm:$0xff]  ;;  %v8330_v4 = vld [vmem:[#allocation63_spill] sm:$0xff] }
 0x8e6   :  { %v3146_v38 = vpack.c.bf16 %v3145_v51, %v3145_v51  ;;  %v8331_v51 = vld [vmem:[#allocation64_spill] sm:$0xff] }
 0x8e7   :  { %3244 = vmatpush1.bf16.msra.mxu1 %v7025_v33  ;;  %3285 = vmatpush1.bf16.msra.mxu0 %v7031_v42 }
 0x8e8   :  { %3347 = vmatprep.subr.bf16.mxu1 %v6669_v9  ;;  %3388 = vmatprep.subr.bf16.mxu0 %v6675_v10  ;;  %v8308_v9 = vld [vmem:[#allocation69_spill] sm:$0xff]  ;;  %v8309_v10 = vld [vmem:[#allocation70_spill] sm:$0xff] }
 0x8ea   :  { %3262 = vmatmul.mubr.bf16.vlgmr.msra.gmra.mrb[104].mxu1 %v3146_v38  ;;  %3303 = vmatmul.mubr.bf16.vlgmr.msra.gmra.mrb[104].mxu0 %v3146_v38 }
 0x8eb   :  { %3348 = vmatpush1.bf16.msra.mxu1 %v6681_v62  ;;  %3389 = vmatpush1.bf16.msra.mxu0 %v6687_v63  ;;  %v8311_v62 = vld [vmem:[#allocation72_spill] sm:$0xff]  ;;  %v8312_v63 = vld [vmem:[#allocation6_spill] sm:$0xff] }
 0x8ec   :  { %3349 = vmatprep.subr.bf16.mxu1 %v6693_v45  ;;  %3390 = vmatprep.subr.bf16.mxu0 %v8305_v17  ;;  %v8313_v45 = vld [vmem:[#allocation5_spill] sm:$0xff]  ;;  %v8332_v17 = vld [vmem:[#allocation30_spill] sm:$0xff] }
 0x8ed   :  { %3379 = vmatprep.mubr.bf16.mxu1 %v7920_v41  ;;  %3420 = vmatprep.mubr.bf16.mxu0 %v7920_v41 }
 0x8ef   :  { %3350 = vmatpush1.bf16.msra.mxu1 %v8306_v22  ;;  %3391 = vmatpush1.bf16.msra.mxu0 %v8307_v44  ;;  %v8333_v22 = vld [vmem:[#allocation73_spill] sm:$0xff]  ;;  %v8334_v44 = vld [vmem:[#allocation74_spill] sm:$0xff] }
 0x8f0   :  { %3351 = vmatprep.subr.bf16.mxu1 %v8308_v9  ;;  %3392 = vmatprep.subr.bf16.mxu0 %v8309_v10  ;;  %v8335_v9 = vld [vmem:[#allocation75_spill] sm:$0xff]  ;;  %v8336_v10 = vld [vmem:[#allocation76_spill] sm:$0xff] }
 0x8f3   :  { %3352 = vmatpush1.bf16.msra.mxu1 %v8310_v40  ;;  %3393 = vmatpush1.bf16.msra.mxu0 %v8311_v62  ;;  %v8337_v40 = vld [vmem:[#allocation31_spill] sm:$0xff]  ;;  %v8338_v62 = vld [vmem:[#allocation32_spill] sm:$0xff] }
 0x8f4   :  { %3353 = vmatprep.subr.bf16.mxu1 %v8312_v63  ;;  %3394 = vmatprep.subr.bf16.mxu0 %v8313_v45  ;;  %v8339_v63 = vld [vmem:[#allocation33_spill] sm:$0xff]  ;;  %v8340_v45 = vld [vmem:[#allocation34_spill] sm:$0xff] }
 0x8f7   :  { %3354 = vmatpush1.bf16.msra.mxu1 %v8314_v12  ;;  %3395 = vmatpush1.bf16.msra.mxu0 %v8315_v20  ;;  %v8341_v12 = vld [vmem:[#allocation35_spill] sm:$0xff]  ;;  %v8343_v20 = vld [vmem:[#allocation37_spill] sm:$0xff] }
 0x8f8   :  { %3355 = vmatprep.subr.bf16.mxu1 %v8316_v8  ;;  %3396 = vmatprep.subr.bf16.mxu0 %v8317_v36  ;;  %v8344_v8 = vld [vmem:[#allocation38_spill] sm:$0xff]  ;;  %v8345_v36 = vld [vmem:[#allocation39_spill] sm:$0xff] }
 0x8fb   :  { %3356 = vmatpush1.bf16.msra.mxu1 %v8318_v39  ;;  %3397 = vmatpush1.bf16.msra.mxu0 %v8319_v5  ;;  %v8346_v39 = vld [vmem:[#allocation40_spill] sm:$0xff]  ;;  %v8347_v5 = vld [vmem:[#allocation41_spill] sm:$0xff] }
 0x8fc   :  { %3357 = vmatprep.subr.bf16.mxu1 %v8320_v47  ;;  %3398 = vmatprep.subr.bf16.mxu0 %v8321_v48  ;;  %v8348_v47 = vld [vmem:[#allocation42_spill] sm:$0xff]  ;;  %v8349_v48 = vld [vmem:[#allocation43_spill] sm:$0xff] }
 0x8ff   :  { %3358 = vmatpush1.bf16.msra.mxu1 %v8322_v26  ;;  %3399 = vmatpush1.bf16.msra.mxu0 %v8323_v52  ;;  %v8350_v26 = vld [vmem:[#allocation44_spill] sm:$0xff]  ;;  %v8351_v52 = vld [vmem:[#allocation45_spill] sm:$0xff] }
 0x900   :  { %3359 = vmatprep.subr.bf16.mxu1 %v8324_v16  ;;  %3400 = vmatprep.subr.bf16.mxu0 %v8325_v29  ;;  %v8352_v16 = vld [vmem:[#allocation46_spill] sm:$0xff]  ;;  %v8353_v29 = vld [vmem:[#allocation47_spill] sm:$0xff] }
 0x903   :  { %3360 = vmatpush1.bf16.msra.mxu1 %v8326_v14  ;;  %3401 = vmatpush1.bf16.msra.mxu0 %v8327_v54  ;;  %v8354_v14 = vld [vmem:[#allocation48_spill] sm:$0xff]  ;;  %v8355_v54 = vld [vmem:[#allocation49_spill] sm:$0xff] }
 0x904   :  { %3361 = vmatprep.subr.bf16.mxu1 %v8328_v28  ;;  %3402 = vmatprep.subr.bf16.mxu0 %v8329_v13  ;;  %v8356_v28 = vld [vmem:[#allocation50_spill] sm:$0xff]  ;;  %v8357_v13 = vld [vmem:[#allocation51_spill] sm:$0xff] }
 0x907   :  { %3362 = vmatpush1.bf16.msra.mxu1 %v8330_v4  ;;  %3403 = vmatpush1.bf16.msra.mxu0 %v8331_v51  ;;  %v8358_v4 = vld [vmem:[#allocation52_spill] sm:$0xff]  ;;  %v8359_v51 = vld [vmem:[#allocation53_spill] sm:$0xff] }
 0x908   :  { %3458 = vmatprep.subr.bf16.mxu1 %v8332_v17  ;;  %3499 = vmatprep.subr.bf16.mxu0 %v8333_v22  ;;  %v8360_v17 = vld [vmem:[#allocation54_spill] sm:$0xff]  ;;  %v8361_v22 = vld [vmem:[#allocation55_spill] sm:$0xff] }
 0x90a   :  { %3380 = vmatmul.mubr.bf16.vlgmr.msra.gmra.mrb[108].mxu1 %v3146_v38  ;;  %3421 = vmatmul.mubr.bf16.vlgmr.msra.gmra.mrb[108].mxu0 %v3146_v38  ;;  %v8342_v38 = vld [vmem:[#allocation36_spill] sm:$0xff] }
 0x90b   :  { %3459 = vmatpush1.bf16.msra.mxu1 %v8334_v44  ;;  %3500 = vmatpush1.bf16.msra.mxu0 %v8335_v9  ;;  %v8362_v44 = vld [vmem:[#allocation56_spill] sm:$0xff]  ;;  %v8363_v9 = vld [vmem:[#allocation57_spill] sm:$0xff] }
 0x90c   :  { %3460 = vmatprep.subr.bf16.mxu1 %v8336_v10  ;;  %3501 = vmatprep.subr.bf16.mxu0 %v8337_v40  ;;  %v8364_v10 = vld [vmem:[#allocation58_spill] sm:$0xff]  ;;  %v8365_v40 = vld [vmem:[#allocation59_spill] sm:$0xff] }
 0x90d   :  { %3490 = vmatprep.mubr.bf16.mxu1 %v7920_v41  ;;  %3531 = vmatprep.mubr.bf16.mxu0 %v7920_v41 }
 0x90f   :  { %3461 = vmatpush1.bf16.msra.mxu1 %v8338_v62  ;;  %3502 = vmatpush1.bf16.msra.mxu0 %v8339_v63 }
 0x910   :  { %3462 = vmatprep.subr.bf16.mxu1 %v8340_v45  ;;  %3503 = vmatprep.subr.bf16.mxu0 %v8341_v12 }
 0x913   :  { %3463 = vmatpush1.bf16.msra.mxu1 %v8342_v38  ;;  %3504 = vmatpush1.bf16.msra.mxu0 %v8343_v20 }
 0x914   :  { %3464 = vmatprep.subr.bf16.mxu1 %v8344_v8  ;;  %3505 = vmatprep.subr.bf16.mxu0 %v8345_v36 }
 0x917   :  { %3465 = vmatpush1.bf16.msra.mxu1 %v8346_v39  ;;  %3506 = vmatpush1.bf16.msra.mxu0 %v8347_v5 }
 0x918   :  { %3466 = vmatprep.subr.bf16.mxu1 %v8348_v47  ;;  %3507 = vmatprep.subr.bf16.mxu0 %v8349_v48 }
 0x91b   :  { %3467 = vmatpush1.bf16.msra.mxu1 %v8350_v26  ;;  %3508 = vmatpush1.bf16.msra.mxu0 %v8351_v52 }
 0x91c   :  { %3468 = vmatprep.subr.bf16.mxu1 %v8352_v16  ;;  %3509 = vmatprep.subr.bf16.mxu0 %v8353_v29 }
 0x91f   :  { %3469 = vmatpush1.bf16.msra.mxu1 %v8354_v14  ;;  %3510 = vmatpush1.bf16.msra.mxu0 %v8355_v54 }
 0x920   :  { %3470 = vmatprep.subr.bf16.mxu1 %v8356_v28  ;;  %3511 = vmatprep.subr.bf16.mxu0 %v8357_v13 }
 0x923   :  { %3471 = vmatpush1.bf16.msra.mxu1 %v8358_v4  ;;  %3512 = vmatpush1.bf16.msra.mxu0 %v8359_v51 }
 0x924   :  { %3472 = vmatprep.subr.bf16.mxu1 %v8360_v17  ;;  %3513 = vmatprep.subr.bf16.mxu0 %v8361_v22 }
 0x927   :  { %3473 = vmatpush1.bf16.msra.mxu1 %v8362_v44  ;;  %3514 = vmatpush1.bf16.msra.mxu0 %v8363_v9  ;;  %v8366_v9 = vld [vmem:[#allocation4_spill] sm:$0xff] }
 0x928   :  { %3540 = vmatprep.subr.bf16.mxu1 %v8364_v10  ;;  %3581 = vmatprep.subr.bf16.mxu0 %v8365_v40 }
 0x99d   :  { %v3181_v62 = vpop.f32.mrb[100].mxu1  ;;  %v3222_v63 = vpop.f32.mrb[100].mxu0 }
 0x99e   :  { %v3183_v45 = vpop.f32.mrb[101].mxu1  ;;  %v3224_v12 = vpop.f32.mrb[101].mxu0 }
 0x99f   :  { %v3185_v38 = vpop.f32.mrb[102].mxu1  ;;  %v3226_v20 = vpop.f32.mrb[102].mxu0 }
 0x9a0   :  { %v3186_v8 = vpop.f32.mrb[103].mxu1  ;;  %v3227_v36 = vpop.f32.mrb[103].mxu0 }
 0x9bd   :  { %v3263_v39 = vpop.f32.mrb[104].mxu1  ;;  %v3304_v5 = vpop.f32.mrb[104].mxu0 }
 0x9be   :  { %v3264_v47 = vadd.f32 %v3263_v39, %v3181_v62  ;;  %v3305_v48 = vadd.f32 %v3304_v5, %v3222_v63  ;;  %v3265_v26 = vpop.f32.mrb[105].mxu1  ;;  %v3306_v52 = vpop.f32.mrb[105].mxu0 }
 0x9bf   :  { %v3266_v16 = vadd.f32 %v3265_v26, %v3183_v45  ;;  %v3307_v29 = vadd.f32 %v3306_v52, %v3224_v12  ;;  %v3267_v14 = vpop.f32.mrb[106].mxu1  ;;  %v3308_v54 = vpop.f32.mrb[106].mxu0  ;;  %v8367_v52 = vld [vmem:[#allocation85_spill] sm:$0xff] }
 0x9c0   :  { %v3311_v28 = vadd.f32 %v3264_v47, %v5771_v43  ;;  %v3268_v13 = vpop.f32.mrb[107].mxu1  ;;  %v3309_v4 = vpop.f32.mrb[107].mxu0  ;;  %v3313_v44 = vadd.f32 %v3305_v48, %v8249_v27 }
 0x9c1   :  { %v3312_v51 = vadd.f32 %v3266_v16, %v5775_v25  ;;  %v3314_v10 = vadd.f32 %v3307_v29, %v8366_v9  ;;  %v8368_v29 = vld [vmem:[#allocation86_spill] sm:$0xff]  ;;  %v8369_v13 = vld [vmem:[#allocation87_spill] sm:$0xff] }
 0x9c2   :  { %v4021_v17 = vmul.f32 -1.442695, %v3311_v28  ;;  %v4023_v40 = vmul.f32 -1.442695, %v3313_v44 }
 0x9c3   :  { %v4022_v22 = vmul.f32 -1.442695, %v3312_v51  ;;  %v8370_v51 = vld [vmem:[#allocation88_spill] sm:$0xff] }
 0x9c4   :  { %4608 = vpow2.f32 %v4021_v17 }
 0x9c5   :  { %4610 = vpow2.f32 %v4022_v22 }
 0x9c6   :  { %4612 = vtanh.f32 %v3314_v10 }
 0x9c7   :  { %4614 = vpow2.f32 %v4023_v40 }
 0x9ce   :  { %v4609_v62 = vpop.eup %4608 }
 0x9cf   :  { %v3324_v63 = vadd.f32 1.0, %v4609_v62  ;;  %v4611_v45 = vpop.eup %4610 }
 0x9d0   :  { %v3325_v12 = vadd.f32 1.0, %v4611_v45  ;;  %v4613_v38 = vpop.eup %4612 }
 0x9d1   :  { %4616 = vrcp.f32 %v3324_v63  ;;  %v4615_v20 = vpop.eup %4614 }
 0x9d2   :  { %4618 = vrcp.f32 %v3325_v12  ;;  %v3326_v5 = vadd.f32 1.0, %v4615_v20 }
 0x9d4   :  { %4620 = vrcp.f32 %v3326_v5 }
 0x9db   :  { %v4617_v8 = vpop.eup %4616 }
 0x9dc   :  { %v3335_v36 = vmul.f32 %v4617_v8, %v4613_v38  ;;  %v4619_v39 = vpop.eup %4618 }
 0x9dd   :  { %v3381_v47 = vpop.f32.mrb[108].mxu1  ;;  %v3422_v26 = vpop.f32.mrb[108].mxu0  ;;  %v3334_v48 = vmul.f32 %v4619_v39, %v7343_v37 }
 0x9de   :  { %v3429_v16 = vadd.f32 %v3381_v47, %v8367_v52  ;;  %v3431_v14 = vadd.f32 %v3422_v26, %v8368_v29  ;;  %v3383_v54 = vpop.f32.mrb[109].mxu1  ;;  %v3424_v28 = vpop.f32.mrb[109].mxu0  ;;  %v3667_v29 = vld [vmem:[%s7623_s2 + $0x220] sm:$0xff] }
 0x9df   :  { %v3430_v4 = vadd.f32 %v3383_v54, %v8369_v13  ;;  %v3432_v17 = vadd.f32 %v3424_v28, %v8370_v51  ;;  %v3385_v22 = vpop.f32.mrb[110].mxu1  ;;  %v3426_v44 = vpop.f32.mrb[110].mxu0  ;;  %v7461_v10 = vadd.f32 %v3335_v36, %v3334_v48  ;;  %v3669_v54 = vld [vmem:[%s7623_s2 + $0x48] sm:$0xff] }
 0x9e0   :  { %v4024_v40 = vmul.f32 -1.442695, %v3429_v16  ;;  %v3386_v62 = vpop.f32.mrb[111].mxu1  ;;  %v3427_v63 = vpop.f32.mrb[111].mxu0  ;;  %v4026_v12 = vmul.f32 -1.442695, %v3431_v14 }
 0x9e1   :  { %v4025_v45 = vmul.f32 -1.442695, %v3430_v4  ;;  %4622 = vtanh.f32 %v7461_v10  ;;  %v4621_v37 = vpop.eup %4620  ;;  %v3666_v16 = vld [vmem:[%s7623_s2 + $0x200] sm:$0xff]  ;;  %v3670_v28 = vld [vmem:[%s7623_s2 + $0x68] sm:$0xff] }
 0x9e2   :  { %4624 = vpow2.f32 %v4024_v40  ;;  %v4200_v14 = vpack.c.bf16 %v3667_v29, %v3666_v16  ;;  %v3671_v13 = vld [vmem:[%s7623_s2 + $0x88] sm:$0xff]  ;;  %v4203_v4 = vpack.c.bf16 %v3670_v28, %v3669_v54 }
 0x9e3   :  { %4626 = vpow2.f32 %v4025_v45  ;;  %v3672_v51 = vld [vmem:[%s7623_s2 + $0xa8] sm:$0xff] }
 0x9e4   :  { %4628 = vtanh.f32 %v3432_v17  ;;  %v4206_v17 = vpack.c.bf16 %v3672_v51, %v3671_v13  ;;  %v3673_v22 = vld [vmem:[%s7623_s2 + $0xc8] sm:$0xff] }
 0x9e5   :  { %4630 = vpow2.f32 %v4026_v12  ;;  %v3674_v44 = vld [vmem:[%s7623_s2 + $0xe8] sm:$0xff] }
 0x9e6   :  { %v4209_v40 = vpack.c.bf16 %v3674_v44, %v3673_v22  ;;  %v3675_v62 = vld [vmem:[%s7623_s2 + $0x108] sm:$0xff]  ;;  %v3685_v44 = vld [vmem:[%s7623_s2 + $0x4] ss:$0 sm:$0xff] }
 0x9e7   :  { %v3676_v63 = vld [vmem:[%s7623_s2 + $0x128] sm:$0xff] }
 0x9e8   :  { %v4212_v45 = vpack.c.bf16 %v3676_v63, %v3675_v62  ;;  %v3678_v12 = vld [vmem:[%s7623_s2 + $0x168] sm:$0xff] }
 0x9e9   :  { %v3683_v54 = vld [vmem:[%s7623_s2 + $0x208] sm:$0xff] }
 0x9ea   :  { %v3684_v28 = vld [vmem:[%s7623_s2 + $0x228] sm:$0xff] }
 0x9eb   :  { %v4623_v38 = vpop.eup %4622  ;;  %v4224_v13 = vpack.c.bf16 %v3684_v28, %v3683_v54 }
 0x9ec   :  { %v4625_v20 = vpop.eup %4624  ;;  %v3338_v8 = vmul.f32 %v4623_v38, %v4621_v37  ;;  %v3677_v37 = vld [vmem:[%s7623_s2 + $0x148] sm:$0xff] }
 0x9ed   :  { %v3442_v39 = vadd.f32 1.0, %v4625_v20  ;;  %v4627_v47 = vpop.eup %4626  ;;  %v4215_v38 = vpack.c.bf16 %v3678_v12, %v3677_v37  ;;  %v3679_v20 = vld [vmem:[%s7623_s2 + $0x188] sm:$0xff] }
 0x9ee   :  { %v3339_v36 = vpack.c.bf16 %v3338_v8, %v3338_v8  ;;  %v3443_v26 = vadd.f32 1.0, %v4627_v47  ;;  %v4629_v5 = vpop.eup %4628  ;;  %v3680_v8 = vld [vmem:[%s7623_s2 + $0x1a8] sm:$0xff] }
 0x9ef   :  { %4632 = vrcp.f32 %v3442_v39  ;;  %v4218_v39 = vpack.c.bf16 %v3680_v8, %v3679_v20  ;;  %v3681_v47 = vld [vmem:[%s7623_s2 + $0x1c8] sm:$0xff] }
 0x9f0   :  { %3491 = vmatmul.mubr.bf16.vlgmr.msra.gmra.mrb[112].mxu1 %v3339_v36  ;;  %3532 = vmatmul.mubr.bf16.vlgmr.msra.gmra.mrb[112].mxu0 %v3339_v36  ;;  %4634 = vrcp.f32 %v3443_v26  ;;  %v3682_v36 = vld [vmem:[%s7623_s2 + $0x1e8] sm:$0xff] }
 0x9f1   :  { %3541 = vmatpush1.bf16.msra.mxu1 %v6851_v56  ;;  %3582 = vmatpush1.bf16.msra.mxu0 %v6857_v57  ;;  %v4631_v56 = vpop.eup %4630  ;;  %v4221_v26 = vpack.c.bf16 %v3682_v36, %v3681_v47 }
 0x9f2   :  { %3542 = vmatprep.subr.bf16.mxu1 %v6863_v58  ;;  %3583 = vmatprep.subr.bf16.mxu0 %v6869_v60  ;;  %v3444_v58 = vadd.f32 1.0, %v4631_v56 }
 0x9f3   :  { %3572 = vmatprep.mubr.bf16.mxu1 %v7920_v41  ;;  %3613 = vmatprep.mubr.bf16.mxu0 %v7920_v41 }
 0x9f4   :  { %4636 = vrcp.f32 %v3444_v58 }
 0x9f5   :  { %3543 = vmatpush1.bf16.msra.mxu1 %v6877_v0  ;;  %3584 = vmatpush1.bf16.msra.mxu0 %v6883_v1 }
 0x9f6   :  { %3544 = vmatprep.subr.bf16.mxu1 %v6889_v6  ;;  %3585 = vmatprep.subr.bf16.mxu0 %v6895_v7 }
 0x9f9   :  { %v4633_v48 = vpop.eup %4632  ;;  %3545 = vmatpush1.bf16.msra.mxu1 %v6901_v31  ;;  %3586 = vmatpush1.bf16.msra.mxu0 %v6907_v18  ;;  %v3652_v18 = vld [vmem:[%s7623_s2 + $0x40] sm:$0xff] }
 0x9fa   :  { %v3453_v57 = vmul.f32 %v4633_v48, %v4629_v5  ;;  %3546 = vmatprep.subr.bf16.mxu1 %v6913_v32  ;;  %3587 = vmatprep.subr.bf16.mxu0 %v6919_v23  ;;  %v4635_v41 = vpop.eup %4634  ;;  %v3653_v32 = vld [vmem:[%s7623_s2 + $0x60] sm:$0xff] }
 0x9fb   :  { %v3452_v60 = vmul.f32 %v4635_v41, %v7363_v49  ;;  %v4179_v23 = vpack.c.bf16 %v3653_v32, %v3652_v18  ;;  %v4855_v49 = vmov 0.0  }
 0x9fd   :  { %3547 = vmatpush1.bf16.msra.mxu1 %v6926_v15  ;;  %3588 = vmatpush1.bf16.msra.mxu0 %v6932_v59  ;;  %v3454_v0 = vadd.f32 %v3453_v57, %v3452_v60  ;;  %v4853_v15 = vmov 0.0|0.0   ;;  %v3654_v59 = vld [vmem:[%s7623_s2 + $0x80] sm:$0xff] }
 0x9fe   :  { %3548 = vmatprep.subr.bf16.mxu1 %v6940_v61  ;;  %3589 = vmatprep.subr.bf16.mxu0 %v6946_v3  ;;  %v4637_v1 = vpop.eup %4636  ;;  %v3655_v61 = vld [vmem:[%s7623_s2 + $0xa0] sm:$0xff] }
 0x9ff   :  { %4638 = vtanh.f32 %v3454_v0  ;;  %v4182_v3 = vpack.c.bf16 %v3655_v61, %v3654_v59 }
 0xa01   :  { %3549 = vmatpush1.bf16.msra.mxu1 %v6953_v21  ;;  %3590 = vmatpush1.bf16.msra.mxu0 %v6959_v34  ;;  %v3656_v21 = vld [vmem:[%s7623_s2 + $0xc0] sm:$0xff] }
 0xa02   :  { %3550 = vmatprep.subr.bf16.mxu1 %v6965_v53  ;;  %3591 = vmatprep.subr.bf16.mxu0 %v6971_v35  ;;  %v3657_v34 = vld [vmem:[%s7623_s2 + $0xe0] sm:$0xff] }
 0xa03   :  { %v4185_v53 = vpack.c.bf16 %v3657_v34, %v3656_v21  ;;  %v3658_v35 = vld [vmem:[%s7623_s2 + $0x100] sm:$0xff] }
 0xa05   :  { %3551 = vmatpush1.bf16.msra.mxu1 %v6977_v2  ;;  %3592 = vmatpush1.bf16.msra.mxu0 %v6983_v46  ;;  %v3659_v2 = vld [vmem:[%s7623_s2 + $0x120] sm:$0xff] }
 0xa06   :  { %3552 = vmatprep.subr.bf16.mxu1 %v6989_v30  ;;  %3593 = vmatprep.subr.bf16.mxu0 %v6995_v11  ;;  %v4188_v46 = vpack.c.bf16 %v3659_v2, %v3658_v35  ;;  %v3660_v30 = vld [vmem:[%s7623_s2 + $0x140] sm:$0xff] }
 0xa07   :  { %v3661_v11 = vld [vmem:[%s7623_s2 + $0x160] sm:$0xff] }
 0xa09   :  { %3553 = vmatpush1.bf16.msra.mxu1 %v7001_v24  ;;  %3594 = vmatpush1.bf16.msra.mxu0 %v7007_v19  ;;  %v4639_v6 = vpop.eup %4638  ;;  %v4191_v24 = vpack.c.bf16 %v3661_v11, %v3660_v30  ;;  %v3662_v19 = vld [vmem:[%s7623_s2 + $0x180] sm:$0xff] }
 0xa0a   :  { %3554 = vmatprep.subr.bf16.mxu1 %v7013_v55  ;;  %3595 = vmatprep.subr.bf16.mxu0 %v7019_v50  ;;  %v3456_v7 = vmul.f32 %v4639_v6, %v4637_v1  ;;  %v3663_v55 = vld [vmem:[%s7623_s2 + $0x1a0] sm:$0xff] }
 0xa0b   :  { %v4194_v50 = vpack.c.bf16 %v3663_v55, %v3662_v19 }
 0xa0c   :  { %v3457_v31 = vpack.c.bf16 %v3456_v7, %v3456_v7 }
 0xa0d   :  { %3555 = vmatpush1.bf16.msra.mxu1 %v7025_v33  ;;  %3596 = vmatpush1.bf16.msra.mxu0 %v7031_v42  ;;  %v3664_v33 = vld [vmem:[%s7623_s2 + $0x1c0] sm:$0xff] }
 0xa0e   :  { %4178 = vmatprep.subr.bf16.mxu1 %v4853_v15  ;;  %4202 = vmatprep.subr.bf16.mxu0 %v4853_v15  ;;  %v3665_v42 = vld [vmem:[%s7623_s2 + $0x1e0] sm:$0xff] }
 0xa0f   :  { %v4197_v52 = vpack.c.bf16 %v3665_v42, %v3664_v33 }
 0xa10   :  { %3573 = vmatmul.mubr.bf16.vlgmr.msra.gmra.mrb[116].mxu1 %v3457_v31  ;;  %3614 = vmatmul.mubr.bf16.vlgmr.msra.gmra.mrb[116].mxu0 %v3457_v31 }
 0xa11   :  { %4180 = vmatpush3.bf16.msra.mxu1 %v4179_v23  ;;  %4140 = vmatprep.mubr.msk.f32.mxu1 %vm4854_vm2, %v4855_v49 }
 0xa12   :  { %4181 = vmatprep.subr.bf16.mxu1 %v4853_v15  ;;  %4175 = vmatprep.mubr.msk.f32.mxu0 %vm4854_vm2, %v4855_v49 }
 0xa13   :  { %4204 = vmatpush3.bf16.msra.mxu0 %v4203_v4 }
 0xa14   :  { %4205 = vmatprep.subr.bf16.mxu0 %v4853_v15 }
 0xa15   :  { %4183 = vmatpush3.bf16.msra.mxu1 %v4182_v3 }
 0xa16   :  { %4184 = vmatprep.subr.bf16.mxu1 %v4853_v15 }
 0xa17   :  { %4207 = vmatpush3.bf16.msra.mxu0 %v4206_v17 }
 0xa18   :  { %4208 = vmatprep.subr.bf16.mxu0 %v4853_v15 }
 0xa19   :  { %4186 = vmatpush3.bf16.msra.mxu1 %v4185_v53 }
 0xa1a   :  { %4187 = vmatprep.subr.bf16.mxu1 %v4853_v15 }
 0xa1b   :  { %4210 = vmatpush3.bf16.msra.mxu0 %v4209_v40 }
 0xa1c   :  { %4211 = vmatprep.subr.bf16.mxu0 %v4853_v15 }
 0xa1d   :  { %4189 = vmatpush3.bf16.msra.mxu1 %v4188_v46 }
 0xa1e   :  { %4190 = vmatprep.subr.bf16.mxu1 %v4853_v15 }
 0xa1f   :  { %4213 = vmatpush3.bf16.msra.mxu0 %v4212_v45 }
 0xa20   :  { %4214 = vmatprep.subr.bf16.mxu0 %v4853_v15 }
 0xa21   :  { %4192 = vmatpush3.bf16.msra.mxu1 %v4191_v24 }
 0xa22   :  { %4193 = vmatprep.subr.bf16.mxu1 %v4853_v15 }
 0xa23   :  { %4216 = vmatpush3.bf16.msra.mxu0 %v4215_v38 }
 0xa24   :  { %4217 = vmatprep.subr.bf16.mxu0 %v4853_v15 }
 0xa25   :  { %4195 = vmatpush3.bf16.msra.mxu1 %v4194_v50 }
 0xa26   :  { %4196 = vmatprep.subr.bf16.mxu1 %v4853_v15 }
 0xa27   :  { %4219 = vmatpush3.bf16.msra.mxu0 %v4218_v39 }
 0xa28   :  { %4220 = vmatprep.subr.bf16.mxu0 %v4853_v15 }
 0xa29   :  { %4198 = vmatpush3.bf16.msra.mxu1 %v4197_v52 }
 0xa2a   :  { %4199 = vmatprep.subr.bf16.mxu1 %v4853_v15 }
 0xa2b   :  { %4222 = vmatpush3.bf16.msra.mxu0 %v4221_v26 }
 0xa2c   :  { %4223 = vmatprep.subr.bf16.mxu0 %v4853_v15 }
 0xa2d   :  { %4201 = vmatpush3.bf16.msra.mxu1 %v4200_v14 }
 0xa2f   :  { %4225 = vmatpush3.bf16.msra.mxu0 %v4224_v13 }
 0xac3   :  { %v3492_v5 = vpop.f32.mrb[112].mxu1  ;;  %v3533_v56 = vpop.f32.mrb[112].mxu0 }
 0xac4   :  { %v3494_v48 = vpop.f32.mrb[113].mxu1  ;;  %v3535_v57 = vpop.f32.mrb[113].mxu0 }
 0xac5   :  { %v3496_v41 = vpop.f32.mrb[114].mxu1  ;;  %v3537_v58 = vpop.f32.mrb[114].mxu0 }
 0xac6   :  { %v3497_v60 = vpop.f32.mrb[115].mxu1  ;;  %v3538_v0 = vpop.f32.mrb[115].mxu0 }
 0xae3   :  { %v3574_v1 = vpop.f32.mrb[116].mxu1  ;;  %v3615_v6 = vpop.f32.mrb[116].mxu0 }
 0xae4   :  { %v3575_v7 = vadd.f32 %v3574_v1, %v3492_v5  ;;  %v3616_v31 = vadd.f32 %v3615_v6, %v3533_v56  ;;  %v3576_v18 = vpop.f32.mrb[117].mxu1  ;;  %v3617_v32 = vpop.f32.mrb[117].mxu0 }
 0xae5   :  { %v3577_v23 = vadd.f32 %v3576_v18, %v3494_v48  ;;  %v3618_v59 = vadd.f32 %v3617_v32, %v3535_v57  ;;  %v3578_v61 = vpop.f32.mrb[118].mxu1  ;;  %v3619_v3 = vpop.f32.mrb[118].mxu0 }
 0xae6   :  { %v3622_v15 = vadd.f32 %v3575_v7, %v5771_v43  ;;  %v3579_v21 = vpop.f32.mrb[119].mxu1  ;;  %v3620_v34 = vpop.f32.mrb[119].mxu0  ;;  %v3624_v46 = vadd.f32 %v3616_v31, %v8249_v27 }
 0xae7   :  { %v3623_v53 = vadd.f32 %v3577_v23, %v5775_v25  ;;  %v3625_v30 = vadd.f32 %v3618_v59, %v8366_v9 }
 0xae8   :  { %v4027_v35 = vmul.f32 -1.442695, %v3622_v15  ;;  %v4029_v11 = vmul.f32 -1.442695, %v3624_v46 }
 0xae9   :  { %v4028_v2 = vmul.f32 -1.442695, %v3623_v53 }
 0xaea   :  { %4640 = vpow2.f32 %v4027_v35 }
 0xaeb   :  { %4642 = vpow2.f32 %v4028_v2 }
 0xaec   :  { %4644 = vtanh.f32 %v3625_v30 }
 0xaed   :  { %4646 = vpow2.f32 %v4029_v11 }
 0xaf4   :  { %v4641_v24 = vpop.eup %4640 }
 0xaf5   :  { %v3635_v19 = vadd.f32 1.0, %v4641_v24  ;;  %v4643_v55 = vpop.eup %4642 }
 0xaf6   :  { %v3636_v43 = vadd.f32 1.0, %v4643_v55  ;;  %v4645_v50 = vpop.eup %4644 }
 0xaf7   :  { %4648 = vrcp.f32 %v3635_v19  ;;  %v4647_v33 = vpop.eup %4646 }
 0xaf8   :  { %4650 = vrcp.f32 %v3636_v43  ;;  %v3637_v52 = vadd.f32 1.0, %v4647_v33 }
 0xafa   :  { %4652 = vrcp.f32 %v3637_v52 }
 0xb01   :  { %v4649_v25 = vpop.eup %4648 }
 0xb02   :  { %v3646_v42 = vmul.f32 %v4649_v25, %v4645_v50  ;;  %v4651_v49 = vpop.eup %4650 }
 0xb03   :  { %v3645_v16 = vmul.f32 %v4651_v49, %v7461_v10  ;;  %v3668_v10 = vld [vmem:[%s7623_s2 + $0x3] ss:$0 sm:$0xff] }
 0xb04   :  { %v4653_v9 = vpop.eup %4652 }
 0xb05   :  { %v3647_v27 = vadd.f32 %v3646_v42, %v3645_v16 }
 0xb07   :  { %4654 = vtanh.f32 %v3647_v27 }
 0xb11   :  { %v4655_v29 = vpop.eup %4654 }
 0xb12   :  { %v3649_v14 = vmul.f32 %v4655_v29, %v4653_v9 }
 0xb14   :  { %4141 = vmatmul.mubr.f32.vlgmr.msra.gmra.mrb[120].mxu1 %v3649_v14 }
 0xbe7   :  { %v3752_v4 = vpop.f32.mrb[120].mxu1 }
 0xbe8   :  { %v3753_v51 = vadd.f32 %v3752_v4, %v3668_v10  ;;  %v4142_v17 = vpop.f32.mrb[121].mxu1 }
 0xbea   :  { %v3756_v22 = vmax.f32 %v3753_v51, 0.0 }
 0xbec   :  { %4176 = vmatmul.mubr.f32.vlgmr.msra.gmra.mrb[120].mxu0 %v3756_v22 }
 0xcbf   :  { %v3823_v40 = vpop.f32.mrb[120].mxu0 }
 0xcc0   :  { %v3824_v62 = vadd.f32 %v3823_v40, %v3685_v44  ;;  %v4177_v63 = vpop.f32.mrb[121].mxu0 }
 0xcc2   :  { %v4030_v45 = vmul.f32 -1.442695, %v3824_v62 }
 0xcc4   :  { %4656 = vpow2.f32 %v4030_v45 }
 0xcce   :  { %v4657_v37 = vpop.eup %4656 }
 0xccf   :  { %v3830_v12 = vadd.f32 1.0, %v4657_v37 }
 0xcd1   :  { %4658 = vrcp.f32 %v3830_v12 }
 0xcdb   :  { %v4659_v38 = vpop.eup %4658 }
 0xcdc   :  { %3833 = vst [vmem:[%s7626_s3] sm:$0xff] %v4659_v38 }

</bundles_post_ra>
